<compile_context>
chip_gen: v5e
topology: v5e:2x2
jax: 0.10.0
libtpu: 0.0.40
codegen_flags: <defaults>
</compile_context>

<pallas_src>
import math

import jax
import jax.numpy as jnp
from jax.experimental import pallas as pl
from jax.experimental.pallas import tpu as pltpu


def _pe_kernel(col_tab_ref, row_tab_ref, out_ref):
    """One grid step emits a (2F, tile_h, w) slab of the positional encoding.

    col_tab_ref : (2F, 1, w)      rows [0:F] = sin(2*pi*G0[f]*x_c), [F:2F] = cos(...)
    row_tab_ref : (2F, tile_h, 1) rows [0:F] = sin(2*pi*G1[f]*y_r), [F:2F] = cos(...)
    out_ref     : (2F, tile_h, w)

    Per output element: 2 mul + 1 add on the VPU (no transcendental).
    """
    f2, tile_h, w = out_ref.shape
    f = f2 // 2
    shape = (f, tile_h, w)

    col = col_tab_ref[...]          # (2F, 1, w)
    row = row_tab_ref[...]          # (2F, tile_h, 1)

    # Broadcast each small table exactly once and reuse for both output halves.
    sa = jnp.broadcast_to(col[:f], shape)     # sin(A): sublane broadcast
    ca = jnp.broadcast_to(col[f:], shape)     # cos(A)
    sb = jnp.broadcast_to(row[:f], shape)     # sin(B): lane broadcast
    cb = jnp.broadcast_to(row[f:], shape)     # cos(B)

    out_ref[:f, :, :] = sa * cb + ca * sb     # sin(A + B)  -> features [0:F]
    out_ref[f:, :, :] = ca * cb - sa * sb     # cos(A + B)  -> features [F:2F]


def _pick_tile_h(h, out_feats, w, target_block_bytes=4 << 20):
    """Rows of the pixel grid handled per grid step.

    * tile_h divides h and is a multiple of 8 (or equals h)  [BlockSpec (8,128) rule]
    * output block (out_feats, tile_h, w) <= target_block_bytes (VMEM-padded)
    * lane-padded row-table block (out_feats, tile_h, 1) kept <= 2 MiB
    * tiny outputs -> single block; non-trivial outputs -> >= 2 blocks (v7x megacore)
    """
    lane_pad = lambda n: ((n + 127) // 128) * 128
    out_row_bytes = out_feats * lane_pad(w) * 4      # per output row, VMEM-padded
    tbl_row_bytes = out_feats * 128 * 4              # per row-table row (lane pad 1->128)
    total_out_bytes = out_feats * h * w * 4

    cands = sorted({t for t in range(8, h, 8) if h % t == 0} | {h})

    def fits(t):
        return (t * out_row_bytes <= target_block_bytes
                and t * tbl_row_bytes <= (2 << 20))

    fitting = [t for t in cands if fits(t)] or [cands[0]]

    if total_out_bytes < (2 << 20):
        # Tiny output: one block avoids per-step overhead on 1-TC chips (v5e/v6e).
        return fitting[-1]
    # Non-trivial output: prefer >= 2 grid steps so the 2nd v7x TensorCore has work.
    multi = [t for t in fitting if t < h]
    return multi[-1] if multi else fitting[-1]


def position_embedding_random_forward(gaussian_matrix, size,
                                      target_block_bytes=4 << 20):
    """Equivalent of PositionEmbeddingRandom.forward(size) -> (2F, h, w) f32."""
    h, w = size
    g = gaussian_matrix.astype(jnp.float32)
    num_pos_feats = g.shape[1]
    out_feats = 2 * num_pos_feats

    # ---- tiny wrapper-side precompute: O(F*(h+w)) transcendentals ----
    # Coordinates already through `2*coords - 1`.
    x_lin = 2.0 * (jnp.arange(w, dtype=jnp.float32) + 0.5) / w - 1.0     # (w,)
    y_lin = 2.0 * (jnp.arange(h, dtype=jnp.float32) + 0.5) / h - 1.0     # (h,)
    two_pi = 2.0 * math.pi
    ax = (two_pi * g[0])[:, None] * x_lin[None, :]                        # (F, w) column angles
    by = (two_pi * g[1])[:, None] * y_lin[None, :]                        # (F, h) row angles

    # Fused constant tables: [sin; cos] stacked on the leading (feature) axis,
    # so the kernel slices them with free static leading-dim slices.
    col_tab = jnp.concatenate([jnp.sin(ax), jnp.cos(ax)], axis=0)[:, None, :]  # (2F, 1, w)
    row_tab = jnp.concatenate([jnp.sin(by), jnp.cos(by)], axis=0)[:, :, None]  # (2F, h, 1)

    tile_h = _pick_tile_h(h, out_feats, w, target_block_bytes)
    n_blocks = h // tile_h

    pe = pl.pallas_call(
        _pe_kernel,
        out_shape=jax.ShapeDtypeStruct((out_feats, h, w), jnp.float32),
        grid_spec=pltpu.PrefetchScalarGridSpec(
            num_scalar_prefetch=0,
            grid=(n_blocks,),
            in_specs=[
                pl.BlockSpec((out_feats, 1, w), lambda i: (0, 0, 0)),       # column table (grid-invariant)
                pl.BlockSpec((out_feats, tile_h, 1), lambda i: (0, i, 0)),  # row table (per row tile)
            ],
            out_specs=pl.BlockSpec((out_feats, tile_h, w), lambda i: (0, i, 0)),
        ),
        compiler_params=pltpu.CompilerParams(
            dimension_semantics=("parallel",),
            vmem_limit_bytes=32 * 1024 * 1024,
        ),
    )(col_tab, row_tab)

    # Output is produced directly in CHW layout == pe.permute(2, 0, 1).
    return pe


def _reference_forward(gaussian_matrix, size):
    """Pure-JAX reference mirroring the PyTorch code for a correctness check."""
    h, w = size
    grid = jnp.ones((h, w), dtype=jnp.float32)
    y_embed = (jnp.cumsum(grid, axis=0) - 0.5) / h
    x_embed = (jnp.cumsum(grid, axis=1) - 0.5) / w
    coords = jnp.stack([x_embed, y_embed], axis=-1)
    coords = 2.0 * coords - 1.0
    coords = coords @ gaussian_matrix.astype(jnp.float32)
    coords = 2.0 * math.pi * coords
    pe = jnp.concatenate([jnp.sin(coords), jnp.cos(coords)], axis=-1)
    return jnp.transpose(pe, (2, 0, 1))


if __name__ == "__main__":
    num_pos_feats = 64
    scale = 1.0

    # Deterministic "buffer" init: scale * randn((2, num_pos_feats))
    key = jax.random.PRNGKey(0)
    gaussian_matrix = scale * jax.random.normal(
        key, (2, num_pos_feats), dtype=jnp.float32
    )

    # Small demo size (single-block path).
    h, w = 16, 16
    pe = position_embedding_random_forward(gaussian_matrix, (h, w))
    pe = jax.block_until_ready(pe)
    assert pe.shape == (2 * num_pos_feats, h, w)
    assert pe.dtype == jnp.float32
    ref = _reference_forward(gaussian_matrix, (h, w))
    # Angle-addition (sinA*cosB + cosA*sinB vs sin(A+B)) costs a few f32 ulps.
    assert jnp.allclose(pe, ref, atol=1e-4, rtol=1e-4), "mismatch vs reference (16x16)"

    # SAM-like size (multi-block "parallel" grid path).
    h2, w2 = 64, 64
    pe2 = jax.block_until_ready(
        position_embedding_random_forward(gaussian_matrix, (h2, w2)))
    ref2 = _reference_forward(gaussian_matrix, (h2, w2))
    assert pe2.shape == (2 * num_pos_feats, h2, w2)
    assert jnp.allclose(pe2, ref2, atol=1e-4, rtol=1e-4), "mismatch vs reference (64x64)"

    # TODO(synk): forward_with_coords (point-prompt path) not implemented; the shared
    # _pe_encoding math is what the kernel above covers.
    print("KERNEL_OK")
</pallas_src>

<mosaic_0001>
module attributes {stable_mosaic.version = 11 : i64} {
  func.func @_pe_kernel(%arg0: i32, %arg1: memref<128x1x16xf32, #tpu.memory_space<vmem>>, %arg2: memref<128x16x1xf32, #tpu.memory_space<vmem>>, %arg3: memref<128x16x16xf32, #tpu.memory_space<vmem>>) attributes {dimension_semantics = [#tpu.dimension_semantics<parallel>], iteration_bounds = array<i64: 1>, scalar_prefetch = 0 : i64, scratch_operands = 0 : i64, tpu.core_type = #tpu.core_type<tc>, window_params = [{pipeline_mode = #tpu.pipeline_mode<synchronous>, transform_indices = @transform_0, window_bounds = array<i64: 128, 1, 16>}, {transform_indices = @transform_1, window_bounds = array<i64: 128, 16, 1>}, {transform_indices = @transform_2, window_bounds = array<i64: 128, 16, 16>}]} {
    %c0 = arith.constant 0 : index
    %c0_0 = arith.constant 0 : index
    %c0_1 = arith.constant 0 : index
    %0 = vector.load %arg1[%c0, %c0_0, %c0_1] : memref<128x1x16xf32, #tpu.memory_space<vmem>>, vector<128x1x16xf32>
    %c0_2 = arith.constant 0 : index
    %c0_3 = arith.constant 0 : index
    %c0_4 = arith.constant 0 : index
    %1 = vector.load %arg2[%c0_2, %c0_3, %c0_4] : memref<128x16x1xf32, #tpu.memory_space<vmem>>, vector<128x16x1xf32>
    %2 = vector.extract_strided_slice %0 {offsets = [0, 0, 0], sizes = [64, 1, 16], strides = [1, 1, 1]} : vector<128x1x16xf32> to vector<64x1x16xf32>
    %3 = vector.shape_cast %2 : vector<64x1x16xf32> to vector<64x1x16xf32>
    %4 = vector.broadcast %3 : vector<64x1x16xf32> to vector<64x16x16xf32>
    %5 = vector.extract_strided_slice %0 {offsets = [64, 0, 0], sizes = [64, 1, 16], strides = [1, 1, 1]} : vector<128x1x16xf32> to vector<64x1x16xf32>
    %6 = vector.shape_cast %5 : vector<64x1x16xf32> to vector<64x1x16xf32>
    %7 = vector.broadcast %6 : vector<64x1x16xf32> to vector<64x16x16xf32>
    %8 = vector.extract_strided_slice %1 {offsets = [0, 0, 0], sizes = [64, 16, 1], strides = [1, 1, 1]} : vector<128x16x1xf32> to vector<64x16x1xf32>
    %9 = vector.shape_cast %8 : vector<64x16x1xf32> to vector<64x16x1xf32>
    %10 = vector.broadcast %9 : vector<64x16x1xf32> to vector<64x16x16xf32>
    %11 = vector.extract_strided_slice %1 {offsets = [64, 0, 0], sizes = [64, 16, 1], strides = [1, 1, 1]} : vector<128x16x1xf32> to vector<64x16x1xf32>
    %12 = vector.shape_cast %11 : vector<64x16x1xf32> to vector<64x16x1xf32>
    %13 = vector.broadcast %12 : vector<64x16x1xf32> to vector<64x16x16xf32>
    %14 = arith.mulf %4, %13 : vector<64x16x16xf32>
    %15 = arith.mulf %7, %10 : vector<64x16x16xf32>
    %16 = arith.addf %14, %15 : vector<64x16x16xf32>
    %c0_5 = arith.constant 0 : index
    %c0_6 = arith.constant 0 : index
    %c0_7 = arith.constant 0 : index
    %17 = vector.load %arg3[%c0_5, %c0_6, %c0_7] : memref<128x16x16xf32, #tpu.memory_space<vmem>>, vector<64x16x16xf32>
    tpu.vector_store %arg3[%c0_5, %c0_6, %c0_7], %16 {strides = array<i32>} : memref<128x16x16xf32, #tpu.memory_space<vmem>>, vector<64x16x16xf32>,
    %18 = arith.mulf %7, %13 : vector<64x16x16xf32>
    %19 = arith.mulf %4, %10 : vector<64x16x16xf32>
    %20 = arith.subf %18, %19 : vector<64x16x16xf32>
    %c64 = arith.constant 64 : index
    %c0_8 = arith.constant 0 : index
    %c0_9 = arith.constant 0 : index
    %21 = vector.load %arg3[%c64, %c0_8, %c0_9] : memref<128x16x16xf32, #tpu.memory_space<vmem>>, vector<64x16x16xf32>
    tpu.vector_store %arg3[%c64, %c0_8, %c0_9], %20 {strides = array<i32>} : memref<128x16x16xf32, #tpu.memory_space<vmem>>, vector<64x16x16xf32>,
    return
  }
  func.func @transform_0(%arg0: i32) -> (i32, i32, i32) {
    %c0_i32 = arith.constant 0 : i32
    %c0_i32_0 = arith.constant 0 : i32
    %c0_i32_1 = arith.constant 0 : i32
    %c0_i32_2 = arith.constant 0 : i32
    return %c0_i32, %c0_i32_0, %c0_i32_1 : i32, i32, i32
  }
  func.func @transform_1(%arg0: i32) -> (i32, i32, i32) {
    %c0_i32 = arith.constant 0 : i32
    %c0_i32_0 = arith.constant 0 : i32
    %c0_i32_1 = arith.constant 0 : i32
    return %c0_i32, %arg0, %c0_i32_0 : i32, i32, i32
  }
  func.func @transform_2(%arg0: i32) -> (i32, i32, i32) {
    %c0_i32 = arith.constant 0 : i32
    %c0_i32_0 = arith.constant 0 : i32
    %c0_i32_1 = arith.constant 0 : i32
    return %c0_i32, %arg0, %c0_i32_0 : i32, i32, i32
  }
}

</mosaic_0001>

<bundles_post_ra>
// kernel: tpu_custom_call.1
= control target key start
LH: loop header
LB: loop body
LE: loop exit
PB: predicated region body
PF: predicated region fallthrough
CT: control target
= control target key end

     0   :  { %v3349_v0 = vmov 0   ;;  %vm2443_vm0 = vcmask 130048   ;;  %s6569_s1 = inlined_call_operand.vmem [shape: f32[128,16,1], index: 1, kind: input, shape index: {}]   ;;  %s6570_s0 = inlined_call_operand.vmem [shape: f32[128,1,16], index: 0, kind: input, shape index: {}]   ;;  %s6571_s2 = inlined_call_operand.vmem [shape: f32[128,16,16], index: 2, kind: output, shape index: {}]  }
   0x1   :  { %3220 = vset.pattern.permute.xlu2 %v3349_v0  ;;  %3219 = vset.pattern.permute.xlu1 %v3349_v0  ;;  %v143_v1 = vld [vmem:[%s6569_s1 + $0x20] sm:$0xff]  ;;  %v141_v2 = vld [vmem:[%s6569_s1 + $0x10] sm:$0xff]  ;;  %v144_v4 = vld [vmem:[%s6569_s1 + $0x28] sm:$0xff] }
   0x2   :  { %v139_v3 = vld [vmem:[%s6569_s1] sm:$0xff]  ;;  %3218 = vset.pattern.permute.xlu0 %v3349_v0  ;;  %801 = vperm.xlu2 %3220, %v143_v1   ;;  %v142_v5 = vld [vmem:[%s6569_s1 + $0x18] sm:$0xff]  ;;  %v140_v6 = vld [vmem:[%s6569_s1 + $0x8] sm:$0xff] }
   0x3   :  { %791 = vperm.xlu1 %3219, %v141_v2   ;;  %781 = vperm.xlu0 %3218, %v139_v3   ;;  %v147_v7 = vld [vmem:[%s6569_s1 + $0x40] sm:$0xff]  ;;  %v146_v8 = vld [vmem:[%s6569_s1 + $0x38] sm:$0xff]  ;;  %v145_v9 = vld [vmem:[%s6569_s1 + $0x30] sm:$0xff] }
   0x4   :  { %v150_v10 = vld [vmem:[%s6569_s1 + $0x58] sm:$0xff]  ;;  %v149_v11 = vld [vmem:[%s6569_s1 + $0x50] sm:$0xff]  ;;  %v148_v12 = vld [vmem:[%s6569_s1 + $0x48] sm:$0xff] }
   0x5   :  { %v153_v13 = vld [vmem:[%s6569_s1 + $0x70] sm:$0xff]  ;;  %v152_v14 = vld [vmem:[%s6569_s1 + $0x68] sm:$0xff]  ;;  %v151_v15 = vld [vmem:[%s6569_s1 + $0x60] sm:$0xff] }
   0x6   :  { %v156_v16 = vld [vmem:[%s6569_s1 + $0x88] sm:$0xff]  ;;  %v155_v17 = vld [vmem:[%s6569_s1 + $0x80] sm:$0xff]  ;;  %v154_v18 = vld [vmem:[%s6569_s1 + $0x78] sm:$0xff] }
   0x7   :  { %v159_v19 = vld [vmem:[%s6569_s1 + $0xa0] sm:$0xff]  ;;  %v158_v20 = vld [vmem:[%s6569_s1 + $0x98] sm:$0xff]  ;;  %v157_v21 = vld [vmem:[%s6569_s1 + $0x90] sm:$0xff] }
   0x8   :  { %v162_v22 = vld [vmem:[%s6569_s1 + $0xb8] sm:$0xff]  ;;  %v161_v23 = vld [vmem:[%s6569_s1 + $0xb0] sm:$0xff]  ;;  %v160_v24 = vld [vmem:[%s6569_s1 + $0xa8] sm:$0xff] }
   0x9   :  { %v165_v25 = vld [vmem:[%s6569_s1 + $0xd0] sm:$0xff]  ;;  %v164_v26 = vld [vmem:[%s6569_s1 + $0xc8] sm:$0xff]  ;;  %v163_v27 = vld [vmem:[%s6569_s1 + $0xc0] sm:$0xff] }
   0xa   :  { %806 = vperm.xlu2 %3220, %v144_v4   ;;  %v168_v28 = vld [vmem:[%s6569_s1 + $0xe8] sm:$0xff]  ;;  %v167_v29 = vld [vmem:[%s6569_s1 + $0xe0] sm:$0xff]  ;;  %v166_v30 = vld [vmem:[%s6569_s1 + $0xd8] sm:$0xff] }
   0xb   :  { %796 = vperm.xlu1 %3219, %v142_v5   ;;  %786 = vperm.xlu0 %3218, %v140_v6   ;;  %v171_v31 = vld [vmem:[%s6569_s1 + $0x100] sm:$0xff]  ;;  %v170_v32 = vld [vmem:[%s6569_s1 + $0xf8] sm:$0xff]  ;;  %v169_v33 = vld [vmem:[%s6569_s1 + $0xf0] sm:$0xff] }
   0xc   :  { %v174_v34 = vld [vmem:[%s6569_s1 + $0x118] sm:$0xff]  ;;  %v173_v35 = vld [vmem:[%s6569_s1 + $0x110] sm:$0xff]  ;;  %v172_v36 = vld [vmem:[%s6569_s1 + $0x108] sm:$0xff] }
   0xd   :  { %v177_v38 = vld [vmem:[%s6569_s1 + $0x130] sm:$0xff]  ;;  %v176_v39 = vld [vmem:[%s6569_s1 + $0x128] sm:$0xff]  ;;  %v175_v40 = vld [vmem:[%s6569_s1 + $0x120] sm:$0xff] }
   0xe   :  { %v180_v42 = vld [vmem:[%s6569_s1 + $0x148] sm:$0xff]  ;;  %v179_v43 = vld [vmem:[%s6569_s1 + $0x140] sm:$0xff]  ;;  %v178_v44 = vld [vmem:[%s6569_s1 + $0x138] sm:$0xff] }
   0xf   :  { %v183_v46 = vld [vmem:[%s6569_s1 + $0x160] sm:$0xff]  ;;  %v182_v47 = vld [vmem:[%s6569_s1 + $0x158] sm:$0xff]  ;;  %v181_v48 = vld [vmem:[%s6569_s1 + $0x150] sm:$0xff] }
  0x10   :  { %v186_v52 = vld [vmem:[%s6569_s1 + $0x178] sm:$0xff]  ;;  %v185_v53 = vld [vmem:[%s6569_s1 + $0x170] sm:$0xff]  ;;  %v184_v54 = vld [vmem:[%s6569_s1 + $0x168] sm:$0xff] }
  0x11   :  { %v189_v58 = vld [vmem:[%s6569_s1 + $0x190] sm:$0xff]  ;;  %v188_v59 = vld [vmem:[%s6569_s1 + $0x188] sm:$0xff]  ;;  %v187_v60 = vld [vmem:[%s6569_s1 + $0x180] sm:$0xff] }
  0x12   :  { %821 = vperm.xlu2 %3220, %v147_v7   ;;  %v192_v0 = vld [vmem:[%s6569_s1 + $0x1a8] sm:$0xff]  ;;  %v191_v1 = vld [vmem:[%s6569_s1 + $0x1a0] sm:$0xff]  ;;  %v190_v2 = vld [vmem:[%s6569_s1 + $0x198] sm:$0xff] }
  0x13   :  { %816 = vperm.xlu1 %3219, %v146_v8   ;;  %811 = vperm.xlu0 %3218, %v145_v9   ;;  %v195_v6 = vld [vmem:[%s6569_s1 + $0x1c0] sm:$0xff]  ;;  %v194_v7 = vld [vmem:[%s6569_s1 + $0x1b8] sm:$0xff]  ;;  %v193_v8 = vld [vmem:[%s6569_s1 + $0x1b0] sm:$0xff] }
  0x1a   :  { %836 = vperm.xlu2 %3220, %v150_v10  }
  0x1b   :  { %831 = vperm.xlu1 %3219, %v149_v11   ;;  %826 = vperm.xlu0 %3218, %v148_v12   ;;  %v198_v12 = vld [vmem:[%s6569_s1 + $0x1d8] sm:$0xff] }
  0x22   :  { %851 = vperm.xlu2 %3220, %v153_v13   ;;  %v197_v13 = vld [vmem:[%s6569_s1 + $0x1d0] sm:$0xff] }
  0x23   :  { %846 = vperm.xlu1 %3219, %v152_v14   ;;  %841 = vperm.xlu0 %3218, %v151_v15   ;;  %v196_v14 = vld [vmem:[%s6569_s1 + $0x1c8] sm:$0xff] }
  0x2a   :  { %866 = vperm.xlu2 %3220, %v156_v16  }
  0x2b   :  { %861 = vperm.xlu1 %3219, %v155_v17   ;;  %856 = vperm.xlu0 %3218, %v154_v18   ;;  %v201_v18 = vld [vmem:[%s6569_s1 + $0x1f0] sm:$0xff] }
  0x32   :  { %881 = vperm.xlu2 %3220, %v159_v19   ;;  %v200_v19 = vld [vmem:[%s6569_s1 + $0x1e8] sm:$0xff] }
  0x33   :  { %876 = vperm.xlu1 %3219, %v158_v20   ;;  %871 = vperm.xlu0 %3218, %v157_v21   ;;  %v199_v20 = vld [vmem:[%s6569_s1 + $0x1e0] sm:$0xff] }
  0x3a   :  { %896 = vperm.xlu2 %3220, %v162_v22  }
  0x3b   :  { %891 = vperm.xlu1 %3219, %v161_v23   ;;  %886 = vperm.xlu0 %3218, %v160_v24   ;;  %v204_v24 = vld [vmem:[%s6569_s1 + $0x208] sm:$0xff] }
  0x42   :  { %911 = vperm.xlu2 %3220, %v165_v25   ;;  %v203_v25 = vld [vmem:[%s6569_s1 + $0x200] sm:$0xff] }
  0x43   :  { %906 = vperm.xlu1 %3219, %v164_v26   ;;  %901 = vperm.xlu0 %3218, %v163_v27   ;;  %v202_v26 = vld [vmem:[%s6569_s1 + $0x1f8] sm:$0xff] }
  0x4a   :  { %926 = vperm.xlu2 %3220, %v168_v28  }
  0x4b   :  { %921 = vperm.xlu1 %3219, %v167_v29   ;;  %916 = vperm.xlu0 %3218, %v166_v30   ;;  %v207_v30 = vld [vmem:[%s6569_s1 + $0x220] sm:$0xff] }
  0x52   :  { %941 = vperm.xlu2 %3220, %v171_v31   ;;  %v206_v31 = vld [vmem:[%s6569_s1 + $0x218] sm:$0xff] }
  0x53   :  { %936 = vperm.xlu1 %3219, %v170_v32   ;;  %931 = vperm.xlu0 %3218, %v169_v33   ;;  %v205_v32 = vld [vmem:[%s6569_s1 + $0x210] sm:$0xff] }
  0x5a   :  { %956 = vperm.xlu2 %3220, %v174_v34  }
  0x5b   :  { %951 = vperm.xlu1 %3219, %v173_v35   ;;  %946 = vperm.xlu0 %3218, %v172_v36   ;;  %v210_v36 = vld [vmem:[%s6569_s1 + $0x238] sm:$0xff] }
  0x5c   :  { %v3473_v37 = vpop.permute.xlu2 %801 }
  0x62   :  { %971 = vperm.xlu2 %3220, %v177_v38   ;;  %v209_v38 = vld [vmem:[%s6569_s1 + $0x230] sm:$0xff] }
  0x63   :  { %966 = vperm.xlu1 %3219, %v176_v39   ;;  %961 = vperm.xlu0 %3218, %v175_v40   ;;  %v208_v39 = vld [vmem:[%s6569_s1 + $0x228] sm:$0xff] }
  0x64   :  { %v3484_v41 = vpop.permute.xlu2 %806 }
  0x6a   :  { %986 = vperm.xlu2 %3220, %v180_v42  }
  0x6b   :  { %981 = vperm.xlu1 %3219, %v179_v43   ;;  %976 = vperm.xlu0 %3218, %v178_v44   ;;  %v213_v44 = vld [vmem:[%s6569_s1 + $0x250] sm:$0xff] }
  0x6c   :  { %v3495_v45 = vpop.permute.xlu2 %821 }
  0x72   :  { %1001 = vperm.xlu2 %3220, %v183_v46   ;;  %v212_v46 = vld [vmem:[%s6569_s1 + $0x248] sm:$0xff] }
  0x73   :  { %996 = vperm.xlu1 %3219, %v182_v47   ;;  %991 = vperm.xlu0 %3218, %v181_v48   ;;  %v211_v47 = vld [vmem:[%s6569_s1 + $0x240] sm:$0xff] }
  0x74   :  { %v3506_v49 = vpop.permute.xlu2 %836 }
  0x75   :  { %v3508_v50 = vpop.permute.xlu1 %791  ;;  %v3510_v51 = vpop.permute.xlu0 %781 }
  0x7a   :  { %1016 = vperm.xlu2 %3220, %v186_v52  }
  0x7b   :  { %1011 = vperm.xlu1 %3219, %v185_v53   ;;  %1006 = vperm.xlu0 %3218, %v184_v54   ;;  %v216_v54 = vld [vmem:[%s6569_s1 + $0x268] sm:$0xff] }
  0x7c   :  { %v3521_v55 = vpop.permute.xlu2 %851 }
  0x7d   :  { %v3523_v56 = vpop.permute.xlu1 %796  ;;  %v3525_v57 = vpop.permute.xlu0 %786 }
  0x82   :  { %1031 = vperm.xlu2 %3220, %v189_v58   ;;  %v215_v58 = vld [vmem:[%s6569_s1 + $0x260] sm:$0xff] }
  0x83   :  { %1026 = vperm.xlu1 %3219, %v188_v59   ;;  %1021 = vperm.xlu0 %3218, %v187_v60   ;;  %v214_v59 = vld [vmem:[%s6569_s1 + $0x258] sm:$0xff] }
  0x84   :  { %v3536_v61 = vpop.permute.xlu2 %866 }
  0x85   :  { %v3538_v62 = vpop.permute.xlu1 %816  ;;  %v3540_v63 = vpop.permute.xlu0 %811 }
  0x8a   :  { %1046 = vperm.xlu2 %3220, %v192_v0  }
  0x8b   :  { %1041 = vperm.xlu1 %3219, %v191_v1   ;;  %1036 = vperm.xlu0 %3218, %v190_v2   ;;  %v219_v2 = vld [vmem:[%s6569_s1 + $0x280] sm:$0xff] }
  0x8c   :  { %v3551_v3 = vpop.permute.xlu2 %881 }
  0x8d   :  { %v3553_v4 = vpop.permute.xlu1 %831  ;;  %v3555_v5 = vpop.permute.xlu0 %826 }
  0x92   :  { %1061 = vperm.xlu2 %3220, %v195_v6   ;;  %v218_v6 = vld [vmem:[%s6569_s1 + $0x278] sm:$0xff] }
  0x93   :  { %1056 = vperm.xlu1 %3219, %v194_v7   ;;  %1051 = vperm.xlu0 %3218, %v193_v8   ;;  %v217_v7 = vld [vmem:[%s6569_s1 + $0x270] sm:$0xff] }
  0x94   :  { %v3566_v9 = vpop.permute.xlu2 %896 }
  0x95   :  { %v3568_v10 = vpop.permute.xlu1 %846  ;;  %v3570_v11 = vpop.permute.xlu0 %841 }
  0x9a   :  { %1076 = vperm.xlu2 %3220, %v198_v12  }
  0x9b   :  { %1071 = vperm.xlu1 %3219, %v197_v13   ;;  %1066 = vperm.xlu0 %3218, %v196_v14   ;;  %v222_v14 = vld [vmem:[%s6569_s1 + $0x298] sm:$0xff] }
  0x9c   :  { %v3581_v15 = vpop.permute.xlu2 %911 }
  0x9d   :  { %v3583_v16 = vpop.permute.xlu1 %861  ;;  %v3585_v17 = vpop.permute.xlu0 %856 }
  0xa2   :  { %1091 = vperm.xlu2 %3220, %v201_v18   ;;  %v221_v18 = vld [vmem:[%s6569_s1 + $0x290] sm:$0xff] }
  0xa3   :  { %1086 = vperm.xlu1 %3219, %v200_v19   ;;  %1081 = vperm.xlu0 %3218, %v199_v20   ;;  %v220_v19 = vld [vmem:[%s6569_s1 + $0x288] sm:$0xff] }
  0xa4   :  { %v3596_v21 = vpop.permute.xlu2 %926 }
  0xa5   :  { %v3598_v22 = vpop.permute.xlu1 %876  ;;  %v3600_v23 = vpop.permute.xlu0 %871 }
  0xaa   :  { %1106 = vperm.xlu2 %3220, %v204_v24  }
  0xab   :  { %1101 = vperm.xlu1 %3219, %v203_v25   ;;  %1096 = vperm.xlu0 %3218, %v202_v26   ;;  %v225_v26 = vld [vmem:[%s6569_s1 + $0x2b0] sm:$0xff] }
  0xac   :  { %v3611_v27 = vpop.permute.xlu2 %941 }
  0xad   :  { %v3613_v28 = vpop.permute.xlu1 %891  ;;  %v3615_v29 = vpop.permute.xlu0 %886 }
  0xb2   :  { %1121 = vperm.xlu2 %3220, %v207_v30   ;;  %v224_v30 = vld [vmem:[%s6569_s1 + $0x2a8] sm:$0xff] }
  0xb3   :  { %1116 = vperm.xlu1 %3219, %v206_v31   ;;  %1111 = vperm.xlu0 %3218, %v205_v32   ;;  %v223_v31 = vld [vmem:[%s6569_s1 + $0x2a0] sm:$0xff] }
  0xb4   :  { %v3626_v33 = vpop.permute.xlu2 %956 }
  0xb5   :  { %v3628_v34 = vpop.permute.xlu1 %906  ;;  %v3630_v35 = vpop.permute.xlu0 %901 }
  0xba   :  { %1136 = vperm.xlu2 %3220, %v210_v36  }
  0xbb   :  { %1131 = vperm.xlu1 %3219, %v209_v38   ;;  %1126 = vperm.xlu0 %3218, %v208_v39   ;;  %v228_v39 = vld [vmem:[%s6569_s1 + $0x2c8] sm:$0xff] }
  0xbc   :  { %v3641_v40 = vpop.permute.xlu2 %971 }
  0xbd   :  { %v3643_v42 = vpop.permute.xlu1 %921  ;;  %v3645_v43 = vpop.permute.xlu0 %916 }
  0xc2   :  { %1151 = vperm.xlu2 %3220, %v213_v44   ;;  %v227_v44 = vld [vmem:[%s6569_s1 + $0x2c0] sm:$0xff] }
  0xc3   :  { %1146 = vperm.xlu1 %3219, %v212_v46   ;;  %1141 = vperm.xlu0 %3218, %v211_v47   ;;  %v226_v46 = vld [vmem:[%s6569_s1 + $0x2b8] sm:$0xff] }
  0xc4   :  { %v3656_v48 = vpop.permute.xlu2 %986 }
  0xc5   :  { %6658 = vst [vmem:[#allocation2_spill] sm:$0xff] %v3656_v48  ;;  %v3658_v52 = vpop.permute.xlu1 %936  ;;  %v3660_v53 = vpop.permute.xlu0 %931 }
  0xca   :  { %1166 = vperm.xlu2 %3220, %v216_v54  }
  0xcb   :  { %1161 = vperm.xlu1 %3219, %v215_v58   ;;  %1156 = vperm.xlu0 %3218, %v214_v59   ;;  %v231_v59 = vld [vmem:[%s6569_s1 + $0x2e0] sm:$0xff] }
  0xcc   :  { %v3671_v60 = vpop.permute.xlu2 %1001 }
  0xcd   :  { %6659 = vst [vmem:[#allocation3_spill] sm:$0xff] %v3671_v60  ;;  %v3673_v0 = vpop.permute.xlu1 %951  ;;  %v3675_v1 = vpop.permute.xlu0 %946 }
  0xd2   :  { %1181 = vperm.xlu2 %3220, %v219_v2   ;;  %v230_v2 = vld [vmem:[%s6569_s1 + $0x2d8] sm:$0xff] }
  0xd3   :  { %1176 = vperm.xlu1 %3219, %v218_v6   ;;  %1171 = vperm.xlu0 %3218, %v217_v7   ;;  %v229_v6 = vld [vmem:[%s6569_s1 + $0x2d0] sm:$0xff] }
  0xd4   :  { %v3686_v8 = vpop.permute.xlu2 %1016 }
  0xd5   :  { %6660 = vst [vmem:[#allocation4_spill] sm:$0xff] %v3686_v8  ;;  %v3688_v12 = vpop.permute.xlu1 %966  ;;  %v3690_v13 = vpop.permute.xlu0 %961 }
  0xd6   :  { %6661 = vst [vmem:[#allocation5_spill] sm:$0xff] %v3688_v12  ;;  %v314_v12 = vld [vmem:[%s6569_s1 + $0x578] sm:$0xff] }
  0xda   :  { %1196 = vperm.xlu2 %3220, %v222_v14  }
  0xdb   :  { %1191 = vperm.xlu1 %3219, %v221_v18   ;;  %1186 = vperm.xlu0 %3218, %v220_v19   ;;  %v234_v19 = vld [vmem:[%s6569_s1 + $0x2f8] sm:$0xff] }
  0xdc   :  { %v3701_v20 = vpop.permute.xlu2 %1031 }
  0xdd   :  { %6662 = vst [vmem:[#allocation6_spill] sm:$0xff] %v3701_v20  ;;  %v3703_v24 = vpop.permute.xlu1 %981  ;;  %v3705_v25 = vpop.permute.xlu0 %976 }
  0xde   :  { %6663 = vst [vmem:[#allocation7_spill] sm:$0xff] %v3703_v24  ;;  %v3221_v24 = vld [vmem:[%s6570_s0 + $0x2] ss:$0 sm:$0xff] }
  0xe2   :  { %1211 = vperm.xlu2 %3220, %v225_v26   ;;  %v233_v26 = vld [vmem:[%s6569_s1 + $0x2f0] sm:$0xff] }
  0xe3   :  { %1206 = vperm.xlu1 %3219, %v224_v30   ;;  %1201 = vperm.xlu0 %3218, %v223_v31   ;;  %v232_v30 = vld [vmem:[%s6569_s1 + $0x2e8] sm:$0xff] }
  0xe4   :  { %v3716_v32 = vpop.permute.xlu2 %1046 }
  0xe5   :  { %6664 = vst [vmem:[#allocation8_spill] sm:$0xff] %v3716_v32  ;;  %v3718_v36 = vpop.permute.xlu1 %996  ;;  %v3720_v38 = vpop.permute.xlu0 %991 }
  0xe6   :  { %6665 = vst [vmem:[#allocation9_spill] sm:$0xff] %v3718_v36 }
  0xea   :  { %1226 = vperm.xlu2 %3220, %v228_v39  }
  0xeb   :  { %1221 = vperm.xlu1 %3219, %v227_v44   ;;  %1216 = vperm.xlu0 %3218, %v226_v46   ;;  %v237_v46 = vld [vmem:[%s6569_s1 + $0x310] sm:$0xff] }
  0xec   :  { %v3731_v47 = vpop.permute.xlu2 %1061 }
  0xed   :  { %6666 = vst [vmem:[#allocation10_spill] sm:$0xff] %v3731_v47  ;;  %v3733_v54 = vpop.permute.xlu1 %1011  ;;  %v3735_v58 = vpop.permute.xlu0 %1006  ;;  %v245_v47 = vld [vmem:[%s6569_s1 + $0x350] sm:$0xff] }
  0xee   :  { %6667 = vst [vmem:[#allocation11_spill] sm:$0xff] %v3733_v54 }
  0xf2   :  { %1241 = vperm.xlu2 %3220, %v231_v59   ;;  %v236_v59 = vld [vmem:[%s6569_s1 + $0x308] sm:$0xff] }
  0xf3   :  { %1236 = vperm.xlu1 %3219, %v230_v2   ;;  %1231 = vperm.xlu0 %3218, %v229_v6   ;;  %v235_v2 = vld [vmem:[%s6569_s1 + $0x300] sm:$0xff] }
  0xf4   :  { %v3746_v7 = vpop.permute.xlu2 %1076 }
  0xf5   :  { %6668 = vst [vmem:[#allocation12_spill] sm:$0xff] %v3746_v7  ;;  %v3748_v14 = vpop.permute.xlu1 %1026  ;;  %v3750_v18 = vpop.permute.xlu0 %1021  ;;  %v243_v7 = vld [vmem:[%s6569_s1 + $0x340] sm:$0xff] }
  0xf6   :  { %6669 = vst [vmem:[#allocation13_spill] sm:$0xff] %v3748_v14 }
  0xfa   :  { %1256 = vperm.xlu2 %3220, %v234_v19  }
  0xfb   :  { %1251 = vperm.xlu1 %3219, %v233_v26   ;;  %1246 = vperm.xlu0 %3218, %v232_v30   ;;  %v240_v30 = vld [vmem:[%s6569_s1 + $0x328] sm:$0xff] }
  0xfc   :  { %v3761_v31 = vpop.permute.xlu2 %1091 }
  0xfd   :  { %6670 = vst [vmem:[#allocation14_spill] sm:$0xff] %v3761_v31  ;;  %v3763_v39 = vpop.permute.xlu1 %1041  ;;  %v3765_v44 = vpop.permute.xlu0 %1036  ;;  %v239_v31 = vld [vmem:[%s6569_s1 + $0x320] sm:$0xff] }
  0xfe   :  { %6671 = vst [vmem:[#allocation15_spill] sm:$0xff] %v3763_v39  ;;  %v248_v39 = vld [vmem:[%s6569_s1 + $0x368] sm:$0xff] }
  0xff   :  { %6672 = vst [vmem:[#allocation16_spill] sm:$0xff] %v3765_v44 }
 0x102   :  { %1271 = vperm.xlu2 %3220, %v237_v46   ;;  %v238_v46 = vld [vmem:[%s6569_s1 + $0x318] sm:$0xff] }
 0x103   :  { %1266 = vperm.xlu1 %3219, %v236_v59   ;;  %1261 = vperm.xlu0 %3218, %v235_v2  }
 0x104   :  { %v3776_v6 = vpop.permute.xlu2 %1106 }
 0x105   :  { %6673 = vst [vmem:[#allocation17_spill] sm:$0xff] %v3776_v6  ;;  %v3778_v19 = vpop.permute.xlu1 %1056  ;;  %v3780_v26 = vpop.permute.xlu0 %1051 }
 0x106   :  { %6674 = vst [vmem:[#allocation18_spill] sm:$0xff] %v3778_v19  ;;  %v242_v19 = vld [vmem:[%s6569_s1 + $0x338] sm:$0xff] }
 0x107   :  { %6675 = vst [vmem:[#allocation19_spill] sm:$0xff] %v3780_v26 }
 0x10a   :  { %1286 = vperm.xlu2 %3220, %v240_v30   ;;  %v241_v30 = vld [vmem:[%s6569_s1 + $0x330] sm:$0xff] }
 0x10b   :  { %1281 = vperm.xlu1 %3219, %v239_v31   ;;  %1276 = vperm.xlu0 %3218, %v238_v46  }
 0x10c   :  { %v3791_v59 = vpop.permute.xlu2 %1121 }
 0x10d   :  { %6676 = vst [vmem:[#allocation20_spill] sm:$0xff] %v3791_v59  ;;  %v3793_v2 = vpop.permute.xlu1 %1071  ;;  %v3795_v6 = vpop.permute.xlu0 %1066 }
 0x10e   :  { %6677 = vst [vmem:[#allocation21_spill] sm:$0xff] %v3793_v2  ;;  %v246_v2 = vld [vmem:[%s6569_s1 + $0x358] sm:$0xff] }
 0x10f   :  { %6678 = vst [vmem:[#allocation22_spill] sm:$0xff] %v3795_v6 }
 0x112   :  { %1301 = vperm.xlu2 %3220, %v243_v7   ;;  %v244_v7 = vld [vmem:[%s6569_s1 + $0x348] sm:$0xff] }
 0x113   :  { %1296 = vperm.xlu1 %3219, %v242_v19   ;;  %1291 = vperm.xlu0 %3218, %v241_v30  }
 0x114   :  { %v3806_v31 = vpop.permute.xlu2 %1136 }
 0x115   :  { %6679 = vst [vmem:[#allocation23_spill] sm:$0xff] %v3806_v31  ;;  %v3808_v46 = vpop.permute.xlu1 %1086  ;;  %v3810_v59 = vpop.permute.xlu0 %1081 }
 0x116   :  { %6680 = vst [vmem:[#allocation24_spill] sm:$0xff] %v3808_v46  ;;  %v249_v46 = vld [vmem:[%s6569_s1 + $0x370] sm:$0xff] }
 0x117   :  { %6681 = vst [vmem:[#allocation25_spill] sm:$0xff] %v3810_v59 }
 0x11a   :  { %1316 = vperm.xlu2 %3220, %v246_v2   ;;  %v247_v2 = vld [vmem:[%s6569_s1 + $0x360] sm:$0xff] }
 0x11b   :  { %1311 = vperm.xlu1 %3219, %v245_v47   ;;  %1306 = vperm.xlu0 %3218, %v244_v7  }
 0x11c   :  { %v3821_v19 = vpop.permute.xlu2 %1151 }
 0x11d   :  { %6682 = vst [vmem:[#allocation26_spill] sm:$0xff] %v3821_v19  ;;  %v3823_v30 = vpop.permute.xlu1 %1101  ;;  %v3825_v31 = vpop.permute.xlu0 %1096 }
 0x11e   :  { %6683 = vst [vmem:[#allocation27_spill] sm:$0xff] %v3823_v30  ;;  %v252_v30 = vld [vmem:[%s6569_s1 + $0x388] sm:$0xff] }
 0x11f   :  { %6684 = vst [vmem:[#allocation28_spill] sm:$0xff] %v3825_v31  ;;  %v251_v31 = vld [vmem:[%s6569_s1 + $0x380] sm:$0xff] }
 0x122   :  { %1331 = vperm.xlu2 %3220, %v249_v46   ;;  %v250_v46 = vld [vmem:[%s6569_s1 + $0x378] sm:$0xff] }
 0x123   :  { %1326 = vperm.xlu1 %3219, %v248_v39   ;;  %1321 = vperm.xlu0 %3218, %v247_v2  }
 0x124   :  { %v3836_v47 = vpop.permute.xlu2 %1166 }
 0x125   :  { %6685 = vst [vmem:[#allocation29_spill] sm:$0xff] %v3836_v47  ;;  %v3838_v7 = vpop.permute.xlu1 %1116  ;;  %v3840_v19 = vpop.permute.xlu0 %1111 }
 0x126   :  { %6686 = vst [vmem:[#allocation30_spill] sm:$0xff] %v3838_v7  ;;  %v255_v7 = vld [vmem:[%s6569_s1 + $0x3a0] sm:$0xff] }
 0x127   :  { %6687 = vst [vmem:[#allocation31_spill] sm:$0xff] %v3840_v19  ;;  %v254_v19 = vld [vmem:[%s6569_s1 + $0x398] sm:$0xff] }
 0x12a   :  { %1346 = vperm.xlu2 %3220, %v252_v30   ;;  %v253_v30 = vld [vmem:[%s6569_s1 + $0x390] sm:$0xff] }
 0x12b   :  { %1341 = vperm.xlu1 %3219, %v251_v31   ;;  %1336 = vperm.xlu0 %3218, %v250_v46  }
 0x12c   :  { %v3851_v39 = vpop.permute.xlu2 %1181 }
 0x12d   :  { %6688 = vst [vmem:[#allocation32_spill] sm:$0xff] %v3851_v39  ;;  %v3853_v2 = vpop.permute.xlu1 %1131  ;;  %v3855_v47 = vpop.permute.xlu0 %1126 }
 0x12e   :  { %6689 = vst [vmem:[#allocation33_spill] sm:$0xff] %v3853_v2  ;;  %v258_v2 = vld [vmem:[%s6569_s1 + $0x3b8] sm:$0xff] }
 0x12f   :  { %6690 = vst [vmem:[#allocation34_spill] sm:$0xff] %v3855_v47  ;;  %v257_v47 = vld [vmem:[%s6569_s1 + $0x3b0] sm:$0xff] }
 0x132   :  { %1361 = vperm.xlu2 %3220, %v255_v7   ;;  %v256_v7 = vld [vmem:[%s6569_s1 + $0x3a8] sm:$0xff] }
 0x133   :  { %1356 = vperm.xlu1 %3219, %v254_v19   ;;  %1351 = vperm.xlu0 %3218, %v253_v30  }
 0x134   :  { %v3866_v31 = vpop.permute.xlu2 %1196 }
 0x135   :  { %6691 = vst [vmem:[#allocation35_spill] sm:$0xff] %v3866_v31  ;;  %v3868_v46 = vpop.permute.xlu1 %1146  ;;  %v3870_v39 = vpop.permute.xlu0 %1141 }
 0x136   :  { %6692 = vst [vmem:[#allocation36_spill] sm:$0xff] %v3868_v46  ;;  %v261_v46 = vld [vmem:[%s6569_s1 + $0x3d0] sm:$0xff] }
 0x137   :  { %6693 = vst [vmem:[#allocation37_spill] sm:$0xff] %v3870_v39  ;;  %v260_v39 = vld [vmem:[%s6569_s1 + $0x3c8] sm:$0xff] }
 0x13a   :  { %1376 = vperm.xlu2 %3220, %v258_v2   ;;  %v259_v2 = vld [vmem:[%s6569_s1 + $0x3c0] sm:$0xff] }
 0x13b   :  { %1371 = vperm.xlu1 %3219, %v257_v47   ;;  %1366 = vperm.xlu0 %3218, %v256_v7  }
 0x13c   :  { %v3881_v19 = vpop.permute.xlu2 %1211 }
 0x13d   :  { %6694 = vst [vmem:[#allocation38_spill] sm:$0xff] %v3881_v19  ;;  %v3883_v30 = vpop.permute.xlu1 %1161  ;;  %v3885_v31 = vpop.permute.xlu0 %1156 }
 0x13e   :  { %6695 = vst [vmem:[#allocation39_spill] sm:$0xff] %v3883_v30  ;;  %v264_v30 = vld [vmem:[%s6569_s1 + $0x3e8] sm:$0xff] }
 0x13f   :  { %6696 = vst [vmem:[#allocation40_spill] sm:$0xff] %v3885_v31  ;;  %v263_v31 = vld [vmem:[%s6569_s1 + $0x3e0] sm:$0xff] }
 0x142   :  { %1391 = vperm.xlu2 %3220, %v261_v46   ;;  %v262_v46 = vld [vmem:[%s6569_s1 + $0x3d8] sm:$0xff] }
 0x143   :  { %1386 = vperm.xlu1 %3219, %v260_v39   ;;  %1381 = vperm.xlu0 %3218, %v259_v2  }
 0x144   :  { %v3896_v47 = vpop.permute.xlu2 %1226 }
 0x145   :  { %6697 = vst [vmem:[#allocation41_spill] sm:$0xff] %v3896_v47  ;;  %v3898_v7 = vpop.permute.xlu1 %1176  ;;  %v3900_v19 = vpop.permute.xlu0 %1171 }
 0x146   :  { %6698 = vst [vmem:[#allocation42_spill] sm:$0xff] %v3898_v7  ;;  %v267_v7 = vld [vmem:[%s6569_s1 + $0x400] sm:$0xff] }
 0x147   :  { %6699 = vst [vmem:[#allocation43_spill] sm:$0xff] %v3900_v19  ;;  %v266_v19 = vld [vmem:[%s6569_s1 + $0x3f8] sm:$0xff] }
 0x14a   :  { %1406 = vperm.xlu2 %3220, %v264_v30   ;;  %v265_v30 = vld [vmem:[%s6569_s1 + $0x3f0] sm:$0xff] }
 0x14b   :  { %1401 = vperm.xlu1 %3219, %v263_v31   ;;  %1396 = vperm.xlu0 %3218, %v262_v46  }
 0x14c   :  { %v3911_v39 = vpop.permute.xlu2 %1241 }
 0x14d   :  { %6700 = vst [vmem:[#allocation44_spill] sm:$0xff] %v3911_v39  ;;  %v3913_v2 = vpop.permute.xlu1 %1191  ;;  %v3915_v47 = vpop.permute.xlu0 %1186 }
 0x14e   :  { %6701 = vst [vmem:[#allocation45_spill] sm:$0xff] %v3913_v2  ;;  %v270_v2 = vld [vmem:[%s6569_s1 + $0x418] sm:$0xff] }
 0x14f   :  { %6702 = vst [vmem:[#allocation46_spill] sm:$0xff] %v3915_v47  ;;  %v269_v47 = vld [vmem:[%s6569_s1 + $0x410] sm:$0xff] }
 0x152   :  { %1421 = vperm.xlu2 %3220, %v267_v7   ;;  %v268_v7 = vld [vmem:[%s6569_s1 + $0x408] sm:$0xff] }
 0x153   :  { %1416 = vperm.xlu1 %3219, %v266_v19   ;;  %1411 = vperm.xlu0 %3218, %v265_v30  }
 0x154   :  { %v3926_v31 = vpop.permute.xlu2 %1256 }
 0x155   :  { %6703 = vst [vmem:[#allocation47_spill] sm:$0xff] %v3926_v31  ;;  %v3928_v46 = vpop.permute.xlu1 %1206  ;;  %v3930_v39 = vpop.permute.xlu0 %1201 }
 0x156   :  { %6704 = vst [vmem:[#allocation48_spill] sm:$0xff] %v3928_v46  ;;  %v273_v46 = vld [vmem:[%s6569_s1 + $0x430] sm:$0xff] }
 0x157   :  { %6705 = vst [vmem:[#allocation49_spill] sm:$0xff] %v3930_v39  ;;  %v272_v39 = vld [vmem:[%s6569_s1 + $0x428] sm:$0xff] }
 0x15a   :  { %1436 = vperm.xlu2 %3220, %v270_v2   ;;  %v271_v2 = vld [vmem:[%s6569_s1 + $0x420] sm:$0xff] }
 0x15b   :  { %1431 = vperm.xlu1 %3219, %v269_v47   ;;  %1426 = vperm.xlu0 %3218, %v268_v7  }
 0x15c   :  { %v3941_v19 = vpop.permute.xlu2 %1271 }
 0x15d   :  { %6706 = vst [vmem:[#allocation50_spill] sm:$0xff] %v3941_v19  ;;  %v3943_v30 = vpop.permute.xlu1 %1221  ;;  %v3945_v31 = vpop.permute.xlu0 %1216 }
 0x15e   :  { %6707 = vst [vmem:[#allocation51_spill] sm:$0xff] %v3943_v30  ;;  %v276_v30 = vld [vmem:[%s6569_s1 + $0x448] sm:$0xff] }
 0x15f   :  { %6708 = vst [vmem:[#allocation52_spill] sm:$0xff] %v3945_v31  ;;  %v275_v31 = vld [vmem:[%s6569_s1 + $0x440] sm:$0xff] }
 0x162   :  { %1451 = vperm.xlu2 %3220, %v273_v46   ;;  %v274_v46 = vld [vmem:[%s6569_s1 + $0x438] sm:$0xff] }
 0x163   :  { %1446 = vperm.xlu1 %3219, %v272_v39   ;;  %1441 = vperm.xlu0 %3218, %v271_v2  }
 0x164   :  { %v3956_v47 = vpop.permute.xlu2 %1286 }
 0x165   :  { %6709 = vst [vmem:[#allocation53_spill] sm:$0xff] %v3956_v47  ;;  %v3958_v7 = vpop.permute.xlu1 %1236  ;;  %v3960_v19 = vpop.permute.xlu0 %1231 }
 0x166   :  { %6710 = vst [vmem:[#allocation54_spill] sm:$0xff] %v3958_v7  ;;  %v279_v7 = vld [vmem:[%s6569_s1 + $0x460] sm:$0xff] }
 0x167   :  { %6711 = vst [vmem:[#allocation55_spill] sm:$0xff] %v3960_v19  ;;  %v278_v19 = vld [vmem:[%s6569_s1 + $0x458] sm:$0xff] }
 0x16a   :  { %1466 = vperm.xlu2 %3220, %v276_v30   ;;  %v277_v30 = vld [vmem:[%s6569_s1 + $0x450] sm:$0xff] }
 0x16b   :  { %1461 = vperm.xlu1 %3219, %v275_v31   ;;  %1456 = vperm.xlu0 %3218, %v274_v46  }
 0x16c   :  { %v3971_v39 = vpop.permute.xlu2 %1301 }
 0x16d   :  { %6712 = vst [vmem:[#allocation56_spill] sm:$0xff] %v3971_v39  ;;  %v3973_v2 = vpop.permute.xlu1 %1251  ;;  %v3975_v47 = vpop.permute.xlu0 %1246 }
 0x16e   :  { %6713 = vst [vmem:[#allocation57_spill] sm:$0xff] %v3973_v2  ;;  %v282_v2 = vld [vmem:[%s6569_s1 + $0x478] sm:$0xff] }
 0x16f   :  { %6714 = vst [vmem:[#allocation58_spill] sm:$0xff] %v3975_v47  ;;  %v281_v47 = vld [vmem:[%s6569_s1 + $0x470] sm:$0xff] }
 0x172   :  { %1481 = vperm.xlu2 %3220, %v279_v7   ;;  %v280_v7 = vld [vmem:[%s6569_s1 + $0x468] sm:$0xff] }
 0x173   :  { %1476 = vperm.xlu1 %3219, %v278_v19   ;;  %1471 = vperm.xlu0 %3218, %v277_v30  }
 0x174   :  { %v3986_v31 = vpop.permute.xlu2 %1316 }
 0x175   :  { %6715 = vst [vmem:[#allocation59_spill] sm:$0xff] %v3986_v31  ;;  %v3988_v46 = vpop.permute.xlu1 %1266  ;;  %v3990_v39 = vpop.permute.xlu0 %1261 }
 0x176   :  { %6716 = vst [vmem:[#allocation60_spill] sm:$0xff] %v3988_v46  ;;  %v285_v46 = vld [vmem:[%s6569_s1 + $0x490] sm:$0xff] }
 0x177   :  { %6717 = vst [vmem:[#allocation61_spill] sm:$0xff] %v3990_v39  ;;  %v284_v39 = vld [vmem:[%s6569_s1 + $0x488] sm:$0xff] }
 0x17a   :  { %1496 = vperm.xlu2 %3220, %v282_v2   ;;  %v283_v2 = vld [vmem:[%s6569_s1 + $0x480] sm:$0xff] }
 0x17b   :  { %1491 = vperm.xlu1 %3219, %v281_v47   ;;  %1486 = vperm.xlu0 %3218, %v280_v7  }
 0x17c   :  { %v4001_v19 = vpop.permute.xlu2 %1331 }
 0x17d   :  { %6718 = vst [vmem:[#allocation62_spill] sm:$0xff] %v4001_v19  ;;  %v4003_v30 = vpop.permute.xlu1 %1281  ;;  %v4005_v31 = vpop.permute.xlu0 %1276 }
 0x17e   :  { %6719 = vst [vmem:[#allocation63_spill] sm:$0xff] %v4003_v30  ;;  %v288_v30 = vld [vmem:[%s6569_s1 + $0x4a8] sm:$0xff] }
 0x17f   :  { %6720 = vst [vmem:[#allocation64_spill] sm:$0xff] %v4005_v31  ;;  %v287_v31 = vld [vmem:[%s6569_s1 + $0x4a0] sm:$0xff] }
 0x182   :  { %1511 = vperm.xlu2 %3220, %v285_v46   ;;  %v286_v46 = vld [vmem:[%s6569_s1 + $0x498] sm:$0xff] }
 0x183   :  { %1506 = vperm.xlu1 %3219, %v284_v39   ;;  %1501 = vperm.xlu0 %3218, %v283_v2  }
 0x184   :  { %v4016_v47 = vpop.permute.xlu2 %1346 }
 0x185   :  { %6721 = vst [vmem:[#allocation65_spill] sm:$0xff] %v4016_v47  ;;  %v4018_v7 = vpop.permute.xlu1 %1296  ;;  %v4020_v19 = vpop.permute.xlu0 %1291 }
 0x186   :  { %6722 = vst [vmem:[#allocation66_spill] sm:$0xff] %v4018_v7  ;;  %v291_v7 = vld [vmem:[%s6569_s1 + $0x4c0] sm:$0xff] }
 0x187   :  { %6723 = vst [vmem:[#allocation67_spill] sm:$0xff] %v4020_v19  ;;  %v290_v19 = vld [vmem:[%s6569_s1 + $0x4b8] sm:$0xff] }
 0x18a   :  { %1526 = vperm.xlu2 %3220, %v288_v30   ;;  %v289_v30 = vld [vmem:[%s6569_s1 + $0x4b0] sm:$0xff] }
 0x18b   :  { %1521 = vperm.xlu1 %3219, %v287_v31   ;;  %1516 = vperm.xlu0 %3218, %v286_v46  }
 0x18c   :  { %v4031_v39 = vpop.permute.xlu2 %1361 }
 0x18d   :  { %6724 = vst [vmem:[#allocation68_spill] sm:$0xff] %v4031_v39  ;;  %v4033_v2 = vpop.permute.xlu1 %1311  ;;  %v4035_v47 = vpop.permute.xlu0 %1306 }
 0x18e   :  { %6725 = vst [vmem:[#allocation69_spill] sm:$0xff] %v4033_v2  ;;  %v294_v2 = vld [vmem:[%s6569_s1 + $0x4d8] sm:$0xff] }
 0x18f   :  { %6726 = vst [vmem:[#allocation70_spill] sm:$0xff] %v4035_v47  ;;  %v293_v47 = vld [vmem:[%s6569_s1 + $0x4d0] sm:$0xff] }
 0x192   :  { %1541 = vperm.xlu2 %3220, %v291_v7   ;;  %v292_v7 = vld [vmem:[%s6569_s1 + $0x4c8] sm:$0xff] }
 0x193   :  { %1536 = vperm.xlu1 %3219, %v290_v19   ;;  %1531 = vperm.xlu0 %3218, %v289_v30  }
 0x194   :  { %v4046_v31 = vpop.permute.xlu2 %1376 }
 0x195   :  { %6727 = vst [vmem:[#allocation71_spill] sm:$0xff] %v4046_v31  ;;  %v4048_v46 = vpop.permute.xlu1 %1326  ;;  %v4050_v39 = vpop.permute.xlu0 %1321 }
 0x196   :  { %6728 = vst [vmem:[#allocation72_spill] sm:$0xff] %v4048_v46  ;;  %v297_v46 = vld [vmem:[%s6569_s1 + $0x4f0] sm:$0xff] }
 0x197   :  { %6729 = vst [vmem:[#allocation73_spill] sm:$0xff] %v4050_v39  ;;  %v296_v39 = vld [vmem:[%s6569_s1 + $0x4e8] sm:$0xff] }
 0x19a   :  { %1556 = vperm.xlu2 %3220, %v294_v2   ;;  %v295_v2 = vld [vmem:[%s6569_s1 + $0x4e0] sm:$0xff] }
 0x19b   :  { %1551 = vperm.xlu1 %3219, %v293_v47   ;;  %1546 = vperm.xlu0 %3218, %v292_v7  }
 0x19c   :  { %v4061_v19 = vpop.permute.xlu2 %1391 }
 0x19d   :  { %6730 = vst [vmem:[#allocation74_spill] sm:$0xff] %v4061_v19  ;;  %v4063_v30 = vpop.permute.xlu1 %1341  ;;  %v4065_v31 = vpop.permute.xlu0 %1336 }
 0x19e   :  { %6731 = vst [vmem:[#allocation75_spill] sm:$0xff] %v4063_v30  ;;  %v300_v30 = vld [vmem:[%s6569_s1 + $0x508] sm:$0xff] }
 0x19f   :  { %6732 = vst [vmem:[#allocation76_spill] sm:$0xff] %v4065_v31  ;;  %v299_v31 = vld [vmem:[%s6569_s1 + $0x500] sm:$0xff] }
 0x1a2   :  { %1571 = vperm.xlu2 %3220, %v297_v46   ;;  %v298_v46 = vld [vmem:[%s6569_s1 + $0x4f8] sm:$0xff] }
 0x1a3   :  { %1566 = vperm.xlu1 %3219, %v296_v39   ;;  %1561 = vperm.xlu0 %3218, %v295_v2   ;;  %v4094_v39 = vld [vmem:[%s6570_s0] ss:$0 sm:$0xff] }
 0x1a4   :  { %v4076_v47 = vpop.permute.xlu2 %1406  ;;  %v4099_v2 = vld [vmem:[%s6570_s0 + $0x40] ss:$0 sm:$0xff] }
 0x1a5   :  { %6733 = vst [vmem:[#allocation77_spill] sm:$0xff] %v4076_v47  ;;  %v4078_v7 = vpop.permute.xlu1 %1356  ;;  %v4080_v19 = vpop.permute.xlu0 %1351 }
 0x1a6   :  { %6734 = vst [vmem:[#allocation78_spill] sm:$0xff] %v4078_v7  ;;  %v2187_v7 = vmul.f32 %v4099_v2, %v3510_v51 }
 0x1a7   :  { %6735 = vst [vmem:[#allocation79_spill] sm:$0xff] %v4080_v19  ;;  %v2700_v19 = vmul.f32 %v4094_v39, %v3510_v51  ;;  %v301_v51 = vld [vmem:[%s6569_s1 + $0x510] sm:$0xff] }
 0x1aa   :  { %1586 = vperm.xlu2 %3220, %v300_v30  }
 0x1ab   :  { %1581 = vperm.xlu1 %3219, %v299_v31   ;;  %1576 = vperm.xlu0 %3218, %v298_v46   ;;  %v303_v31 = vld [vmem:[%s6569_s1 + $0x520] sm:$0xff]  ;;  %v302_v46 = vld [vmem:[%s6569_s1 + $0x518] sm:$0xff] }
 0x1ac   :  { %v1422_v47 = vpop.permute.xlu2 %1421 }
 0x1ad   :  { %v2059_v32 = vmul.f32 %v4094_v39, %v1422_v47  ;;  %v2572_v14 = vmul.f32 %v4099_v2, %v1422_v47  ;;  %v4107_v59 = vpop.permute.xlu1 %1371  ;;  %v4109_v20 = vpop.permute.xlu0 %1366  ;;  %v4123_v47 = vld [vmem:[%s6570_s0 + $0x1] ss:$0 sm:$0xff] }
 0x1ae   :  { %6736 = vst [vmem:[#allocation80_spill] sm:$0xff] %v4107_v59 }
 0x1af   :  { %6737 = vst [vmem:[#allocation81_spill] sm:$0xff] %v4109_v20  ;;  %v2315_v54 = vadd.f32 %v2187_v7, %v2059_v32  ;;  %v2828_v30 = vsub.f32 %v2572_v14, %v2700_v19  ;;  %v4128_v32 = vld [vmem:[%s6570_s0 + $0x41] ss:$0 sm:$0xff]  ;;  %v2703_v7 = vmul.f32 %v4123_v47, %v3523_v56 }
 0x1b0   :  { %v2190_v19 = vmul.f32 %v4128_v32, %v3523_v56  ;;  %v304_v56 = vld [vmem:[%s6569_s1 + $0x528] sm:$0xff] }
 0x1b1   :  { %2444 = vst.msk [vmem:[%s6571_s2] sm:$0xff] %vm2443_vm0, %v2315_v54 }
 0x1b2   :  { %3089 = vst.msk [vmem:[%s6571_s2 + $0x400] sm:$0xff] %vm2443_vm0, %v2828_v30  ;;  %1601 = vperm.xlu2 %3220, %v303_v31   ;;  %v306_v31 = vld [vmem:[%s6569_s1 + $0x538] sm:$0xff] }
 0x1b3   :  { %1596 = vperm.xlu1 %3219, %v302_v46   ;;  %1591 = vperm.xlu0 %3218, %v301_v51   ;;  %v305_v46 = vld [vmem:[%s6569_s1 + $0x530] sm:$0xff]  ;;  %v4160_v51 = vld [vmem:[%s6570_s0 + $0x3] ss:$0 sm:$0xff] }
 0x1b4   :  { %v1437_v14 = vpop.permute.xlu2 %1436 }
 0x1b5   :  { %v2062_v59 = vmul.f32 %v4123_v47, %v1437_v14  ;;  %v2575_v20 = vmul.f32 %v4128_v32, %v1437_v14  ;;  %v4144_v54 = vpop.permute.xlu1 %1386  ;;  %v4146_v6 = vpop.permute.xlu0 %1381 }
 0x1b6   :  { %6738 = vst [vmem:[#allocation82_spill] sm:$0xff] %v4144_v54 }
 0x1b7   :  { %6739 = vst [vmem:[#allocation83_spill] sm:$0xff] %v4146_v6  ;;  %v2318_v8 = vadd.f32 %v2190_v19, %v2062_v59  ;;  %v2831_v30 = vsub.f32 %v2575_v20, %v2703_v7  ;;  %v4165_v20 = vld [vmem:[%s6570_s0 + $0x43] ss:$0 sm:$0xff]  ;;  %v2706_v19 = vmul.f32 %v4160_v51, %v3540_v63 }
 0x1b8   :  { %v2193_v14 = vmul.f32 %v4165_v20, %v3540_v63  ;;  %v307_v63 = vld [vmem:[%s6569_s1 + $0x540] sm:$0xff] }
 0x1b9   :  { %2447 = vst.msk [vmem:[%s6571_s2 + $0x18] sm:$0xff] %vm2443_vm0, %v2318_v8 }
 0x1ba   :  { %3092 = vst.msk [vmem:[%s6571_s2 + $0x418] sm:$0xff] %vm2443_vm0, %v2831_v30  ;;  %1616 = vperm.xlu2 %3220, %v306_v31   ;;  %v309_v31 = vld [vmem:[%s6569_s1 + $0x550] sm:$0xff] }
 0x1bb   :  { %1611 = vperm.xlu1 %3219, %v305_v46   ;;  %1606 = vperm.xlu0 %3218, %v304_v56   ;;  %v308_v46 = vld [vmem:[%s6569_s1 + $0x548] sm:$0xff]  ;;  %v4210_v56 = vld [vmem:[%s6570_s0 + $0x44] ss:$0 sm:$0xff] }
 0x1bc   :  { %v1452_v59 = vpop.permute.xlu2 %1451 }
 0x1bd   :  { %v2065_v7 = vmul.f32 %v4160_v51, %v1452_v59  ;;  %v2578_v54 = vmul.f32 %v4165_v20, %v1452_v59  ;;  %v4181_v8 = vpop.permute.xlu1 %1401  ;;  %v4183_v6 = vpop.permute.xlu0 %1396 }
 0x1be   :  { %6740 = vst [vmem:[#allocation84_spill] sm:$0xff] %v4181_v8 }
 0x1bf   :  { %6741 = vst [vmem:[#allocation85_spill] sm:$0xff] %v4183_v6  ;;  %v2321_v36 = vadd.f32 %v2193_v14, %v2065_v7  ;;  %v2834_v30 = vsub.f32 %v2578_v54, %v2706_v19  ;;  %v4205_v54 = vld [vmem:[%s6570_s0 + $0x4] ss:$0 sm:$0xff] }
 0x1c0   :  { %v2709_v14 = vmul.f32 %v4205_v54, %v3555_v5 }
 0x1c1   :  { %2450 = vst.msk [vmem:[%s6571_s2 + $0x30] sm:$0xff] %vm2443_vm0, %v2321_v36  ;;  %v2196_v36 = vmul.f32 %v4210_v56, %v3555_v5  ;;  %v310_v5 = vld [vmem:[%s6569_s1 + $0x558] sm:$0xff] }
 0x1c2   :  { %3095 = vst.msk [vmem:[%s6571_s2 + $0x430] sm:$0xff] %vm2443_vm0, %v2834_v30  ;;  %1631 = vperm.xlu2 %3220, %v309_v31  }
 0x1c3   :  { %1626 = vperm.xlu1 %3219, %v308_v46   ;;  %1621 = vperm.xlu0 %3218, %v307_v63   ;;  %v312_v46 = vld [vmem:[%s6569_s1 + $0x568] sm:$0xff]  ;;  %v311_v63 = vld [vmem:[%s6569_s1 + $0x560] sm:$0xff] }
 0x1c4   :  { %v1467_v59 = vpop.permute.xlu2 %1466 }
 0x1c5   :  { %v2068_v19 = vmul.f32 %v4205_v54, %v1467_v59  ;;  %v2581_v7 = vmul.f32 %v4210_v56, %v1467_v59  ;;  %v4218_v30 = vpop.permute.xlu1 %1416  ;;  %v4220_v31 = vpop.permute.xlu0 %1411  ;;  %v4234_v59 = vld [vmem:[%s6570_s0 + $0x6] ss:$0 sm:$0xff] }
 0x1c6   :  { %6742 = vst [vmem:[#allocation86_spill] sm:$0xff] %v4218_v30 }
 0x1c7   :  { %6743 = vst [vmem:[#allocation87_spill] sm:$0xff] %v4220_v31  ;;  %v2324_v8 = vadd.f32 %v2196_v36, %v2068_v19  ;;  %v2837_v6 = vsub.f32 %v2581_v7, %v2709_v14  ;;  %v4239_v36 = vld [vmem:[%s6570_s0 + $0x46] ss:$0 sm:$0xff]  ;;  %v2189_v14 = vmul.f32 %v4128_v32, %v3508_v50  ;;  %v2702_v19 = vmul.f32 %v4123_v47, %v3508_v50 }
 0x1c8   :  { %v2199_v30 = vmul.f32 %v4239_v36, %v3570_v11 }
 0x1c9   :  { %2453 = vst.msk [vmem:[%s6571_s2 + $0x48] sm:$0xff] %vm2443_vm0, %v2324_v8  ;;  %v2712_v8 = vmul.f32 %v4234_v59, %v3570_v11  ;;  %v2188_v11 = vmul.f32 %v4099_v2, %v3525_v57 }
 0x1ca   :  { %3098 = vst.msk [vmem:[%s6571_s2 + $0x448] sm:$0xff] %vm2443_vm0, %v2837_v6  ;;  %1646 = vperm.xlu2 %3220, %v312_v46  }
 0x1cb   :  { %1641 = vperm.xlu1 %3219, %v311_v63   ;;  %1636 = vperm.xlu0 %3218, %v310_v5  }
 0x1cc   :  { %v1482_v7 = vpop.permute.xlu2 %1481 }
 0x1cd   :  { %v2071_v31 = vmul.f32 %v4234_v59, %v1482_v7  ;;  %v2584_v6 = vmul.f32 %v4239_v36, %v1482_v7  ;;  %v1432_v46 = vpop.permute.xlu1 %1431  ;;  %v1427_v63 = vpop.permute.xlu0 %1426  ;;  %v315_v7 = vld [vmem:[%s6569_s1 + $0x580] sm:$0xff] }
 0x1ce   :  { %v2061_v5 = vmul.f32 %v4123_v47, %v1432_v46  ;;  %v2574_v26 = vmul.f32 %v4128_v32, %v1432_v46  ;;  %v2060_v60 = vmul.f32 %v4094_v39, %v1427_v63  ;;  %v2573_v50 = vmul.f32 %v4099_v2, %v1427_v63  ;;  %v3222_v47 = vld [vmem:[%s6570_s0 + $0x42] ss:$0 sm:$0xff]  ;;  %v313_v2 = vld [vmem:[%s6569_s1 + $0x570] sm:$0xff] }
 0x1cf   :  { %v2327_v44 = vadd.f32 %v2199_v30, %v2071_v31  ;;  %v2840_v48 = vsub.f32 %v2584_v6, %v2712_v8  ;;  %v2701_v32 = vmul.f32 %v4094_v39, %v3525_v57  ;;  %v4298_v39 = vld [vmem:[%s6570_s0 + $0x47] ss:$0 sm:$0xff] }
 0x1d0   :  { %v2317_v46 = vadd.f32 %v2189_v14, %v2061_v5  ;;  %v2830_v63 = vsub.f32 %v2574_v26, %v2702_v19  ;;  %v2316_v30 = vadd.f32 %v2188_v11, %v2060_v60  ;;  %v4293_v26 = vld [vmem:[%s6570_s0 + $0x7] ss:$0 sm:$0xff]  ;;  %v2705_v60 = vmul.f32 %v3221_v24, %v3484_v41 }
 0x1d1   :  { %2456 = vst.msk [vmem:[%s6571_s2 + $0x60] sm:$0xff] %vm2443_vm0, %v2327_v44  ;;  %v2829_v57 = vsub.f32 %v2573_v50, %v2701_v32  ;;  %v2202_v31 = vmul.f32 %v4298_v39, %v3585_v17  ;;  %v2715_v14 = vmul.f32 %v4293_v26, %v3585_v17  ;;  %v2191_v11 = vmul.f32 %v3222_v47, %v3473_v37 }
 0x1d2   :  { %3101 = vst.msk [vmem:[%s6571_s2 + $0x460] sm:$0xff] %vm2443_vm0, %v2840_v48  ;;  %1661 = vperm.xlu2 %3220, %v315_v7   ;;  %v2192_v48 = vmul.f32 %v3222_v47, %v3484_v41 }
 0x1d3   :  { %2446 = vst.msk [vmem:[%s6571_s2 + $0x10] sm:$0xff] %vm2443_vm0, %v2317_v46  ;;  %1656 = vperm.xlu1 %3219, %v314_v12   ;;  %1651 = vperm.xlu0 %3218, %v313_v2   ;;  %v318_v46 = vld [vmem:[%s6569_s1 + $0x598] sm:$0xff] }
 0x1d4   :  { %3091 = vst.msk [vmem:[%s6571_s2 + $0x410] sm:$0xff] %vm2443_vm0, %v2830_v63  ;;  %v1497_v44 = vpop.permute.xlu2 %1496  ;;  %v2704_v63 = vmul.f32 %v3221_v24, %v3473_v37 }
 0x1d5   :  { %2445 = vst.msk [vmem:[%s6571_s2 + $0x8] sm:$0xff] %vm2443_vm0, %v2316_v30  ;;  %v2074_v12 = vmul.f32 %v4293_v26, %v1497_v44  ;;  %v2587_v41 = vmul.f32 %v4298_v39, %v1497_v44  ;;  %v1447_v19 = vpop.permute.xlu1 %1446  ;;  %v1442_v8 = vpop.permute.xlu0 %1441  ;;  %v316_v44 = vld [vmem:[%s6569_s1 + $0x588] sm:$0xff] }
 0x1d6   :  { %3090 = vst.msk [vmem:[%s6571_s2 + $0x408] sm:$0xff] %vm2443_vm0, %v2829_v57  ;;  %v2064_v6 = vmul.f32 %v3221_v24, %v1447_v19  ;;  %v2577_v5 = vmul.f32 %v3222_v47, %v1447_v19  ;;  %v2063_v50 = vmul.f32 %v3221_v24, %v1442_v8  ;;  %v2576_v17 = vmul.f32 %v3222_v47, %v1442_v8  ;;  %v317_v57 = vld [vmem:[%s6569_s1 + $0x590] sm:$0xff]  ;;  %v4338_v47 = vld [vmem:[%s6570_s0 + $0x9] ss:$0 sm:$0xff] }
 0x1d7   :  { %v2330_v7 = vadd.f32 %v2202_v31, %v2074_v12  ;;  %v2843_v32 = vsub.f32 %v2587_v41, %v2715_v14  ;;  %v4343_v31 = vld [vmem:[%s6570_s0 + $0x49] ss:$0 sm:$0xff]  ;;  %v2718_v41 = vmul.f32 %v4338_v47, %v3600_v23 }
 0x1d8   :  { %v2320_v2 = vadd.f32 %v2192_v48, %v2064_v6  ;;  %v2833_v30 = vsub.f32 %v2577_v5, %v2705_v60  ;;  %v2319_v37 = vadd.f32 %v2191_v11, %v2063_v50  ;;  %v2832_v24 = vsub.f32 %v2576_v17, %v2704_v63  ;;  %v3225_v11 = vld [vmem:[%s6570_s0 + $0x5] ss:$0 sm:$0xff]  ;;  %v321_v63 = vld [vmem:[%s6569_s1 + $0x5b0] sm:$0xff] }
 0x1d9   :  { %2459 = vst.msk [vmem:[%s6571_s2 + $0x78] sm:$0xff] %vm2443_vm0, %v2330_v7  ;;  %v2195_v48 = vmul.f32 %v4210_v56, %v3495_v45  ;;  %v2708_v60 = vmul.f32 %v4205_v54, %v3495_v45  ;;  %v2205_v12 = vmul.f32 %v4343_v31, %v3600_v23  ;;  %v2194_v7 = vmul.f32 %v4165_v20, %v3538_v62 }
 0x1da   :  { %3104 = vst.msk [vmem:[%s6571_s2 + $0x478] sm:$0xff] %vm2443_vm0, %v2843_v32  ;;  %1676 = vperm.xlu2 %3220, %v318_v46  }
 0x1db   :  { %2449 = vst.msk [vmem:[%s6571_s2 + $0x28] sm:$0xff] %vm2443_vm0, %v2320_v2  ;;  %1671 = vperm.xlu1 %3219, %v317_v57   ;;  %1666 = vperm.xlu0 %3218, %v316_v44   ;;  %v320_v57 = vld [vmem:[%s6569_s1 + $0x5a8] sm:$0xff] }
 0x1dc   :  { %3094 = vst.msk [vmem:[%s6571_s2 + $0x428] sm:$0xff] %vm2443_vm0, %v2833_v30  ;;  %v1512_v14 = vpop.permute.xlu2 %1511 }
 0x1dd   :  { %2448 = vst.msk [vmem:[%s6571_s2 + $0x20] sm:$0xff] %vm2443_vm0, %v2319_v37  ;;  %v2077_v19 = vmul.f32 %v4338_v47, %v1512_v14  ;;  %v2590_v45 = vmul.f32 %v4343_v31, %v1512_v14  ;;  %v1462_v8 = vpop.permute.xlu1 %1461  ;;  %v1457_v6 = vpop.permute.xlu0 %1456  ;;  %v4418_v37 = vld [vmem:[%s6570_s0 + $0x4a] ss:$0 sm:$0xff] }
 0x1de   :  { %3093 = vst.msk [vmem:[%s6571_s2 + $0x420] sm:$0xff] %vm2443_vm0, %v2832_v24  ;;  %v2067_v5 = vmul.f32 %v4205_v54, %v1462_v8  ;;  %v2580_v23 = vmul.f32 %v4210_v56, %v1462_v8  ;;  %v2066_v50 = vmul.f32 %v4160_v51, %v1457_v6  ;;  %v2579_v17 = vmul.f32 %v4165_v20, %v1457_v6  ;;  %v3226_v54 = vld [vmem:[%s6570_s0 + $0x45] ss:$0 sm:$0xff] }
 0x1df   :  { %v2333_v32 = vadd.f32 %v2205_v12, %v2077_v19  ;;  %v2846_v46 = vsub.f32 %v2590_v45, %v2718_v41  ;;  %v2707_v56 = vmul.f32 %v4160_v51, %v3538_v62  ;;  %v319_v20 = vld [vmem:[%s6569_s1 + $0x5a0] sm:$0xff]  ;;  %v4413_v51 = vld [vmem:[%s6570_s0 + $0xa] ss:$0 sm:$0xff]  ;;  %v2198_v24 = vmul.f32 %v3226_v54, %v3506_v49 }
 0x1e0   :  { %v2323_v2 = vadd.f32 %v2195_v48, %v2067_v5  ;;  %v2836_v30 = vsub.f32 %v2580_v23, %v2708_v60  ;;  %v2322_v44 = vadd.f32 %v2194_v7, %v2066_v50  ;;  %v2711_v48 = vmul.f32 %v3225_v11, %v3506_v49  ;;  %v324_v7 = vld [vmem:[%s6569_s1 + $0x5c8] sm:$0xff] }
 0x1e1   :  { %2462 = vst.msk [vmem:[%s6571_s2 + $0x90] sm:$0xff] %vm2443_vm0, %v2333_v32  ;;  %v2835_v62 = vsub.f32 %v2579_v17, %v2707_v56  ;;  %v2208_v14 = vmul.f32 %v4418_v37, %v3615_v29  ;;  %v2721_v12 = vmul.f32 %v4413_v51, %v3615_v29  ;;  %v2197_v23 = vmul.f32 %v3226_v54, %v3553_v4  ;;  %v323_v56 = vld [vmem:[%s6569_s1 + $0x5c0] sm:$0xff] }
 0x1e2   :  { %3107 = vst.msk [vmem:[%s6571_s2 + $0x490] sm:$0xff] %vm2443_vm0, %v2846_v46  ;;  %1691 = vperm.xlu2 %3220, %v321_v63   ;;  %v2710_v32 = vmul.f32 %v3225_v11, %v3553_v4 }
 0x1e3   :  { %2452 = vst.msk [vmem:[%s6571_s2 + $0x40] sm:$0xff] %vm2443_vm0, %v2323_v2  ;;  %1686 = vperm.xlu1 %3219, %v320_v57   ;;  %1681 = vperm.xlu0 %3218, %v319_v20   ;;  %v322_v2 = vld [vmem:[%s6569_s1 + $0x5b8] sm:$0xff]  ;;  %v2201_v57 = vmul.f32 %v4298_v39, %v3521_v55  ;;  %v2714_v20 = vmul.f32 %v4293_v26, %v3521_v55 }
 0x1e4   :  { %3097 = vst.msk [vmem:[%s6571_s2 + $0x440] sm:$0xff] %vm2443_vm0, %v2836_v30  ;;  %v1527_v60 = vpop.permute.xlu2 %1526  ;;  %v4463_v30 = vld [vmem:[%s6570_s0 + $0x4c] ss:$0 sm:$0xff] }
 0x1e5   :  { %2451 = vst.msk [vmem:[%s6571_s2 + $0x38] sm:$0xff] %vm2443_vm0, %v2322_v44  ;;  %v2080_v41 = vmul.f32 %v4413_v51, %v1527_v60  ;;  %v2593_v49 = vmul.f32 %v4418_v37, %v1527_v60  ;;  %v1477_v19 = vpop.permute.xlu1 %1476  ;;  %v1472_v45 = vpop.permute.xlu0 %1471 }
 0x1e6   :  { %3096 = vst.msk [vmem:[%s6571_s2 + $0x438] sm:$0xff] %vm2443_vm0, %v2835_v62  ;;  %v2070_v8 = vmul.f32 %v3225_v11, %v1477_v19  ;;  %v2583_v6 = vmul.f32 %v3226_v54, %v1477_v19  ;;  %v2069_v5 = vmul.f32 %v3225_v11, %v1472_v45  ;;  %v2582_v29 = vmul.f32 %v3226_v54, %v1472_v45  ;;  %v4458_v54 = vld [vmem:[%s6570_s0 + $0xc] ss:$0 sm:$0xff]  ;;  %v3233_v19 = vld [vmem:[%s6570_s0 + $0x8] ss:$0 sm:$0xff] }
 0x1e7   :  { %v2336_v50 = vadd.f32 %v2208_v14, %v2080_v41  ;;  %v2849_v17 = vsub.f32 %v2593_v49, %v2721_v12  ;;  %v2211_v62 = vmul.f32 %v4463_v30, %v3630_v35  ;;  %v2200_v45 = vmul.f32 %v4239_v36, %v3568_v10 }
 0x1e8   :  { %v2326_v46 = vadd.f32 %v2198_v24, %v2070_v8  ;;  %v2839_v63 = vsub.f32 %v2583_v6, %v2711_v48  ;;  %v2325_v4 = vadd.f32 %v2197_v23, %v2069_v5  ;;  %v2838_v11 = vsub.f32 %v2582_v29, %v2710_v32  ;;  %v327_v5 = vld [vmem:[%s6569_s1 + $0x5e0] sm:$0xff] }
 0x1e9   :  { %2465 = vst.msk [vmem:[%s6571_s2 + $0xa8] sm:$0xff] %vm2443_vm0, %v2336_v50  ;;  %v2724_v24 = vmul.f32 %v4458_v54, %v3630_v35  ;;  %v326_v50 = vld [vmem:[%s6569_s1 + $0x5d8] sm:$0xff] }
 0x1ea   :  { %3110 = vst.msk [vmem:[%s6571_s2 + $0x4a8] sm:$0xff] %vm2443_vm0, %v2849_v17  ;;  %1706 = vperm.xlu2 %3220, %v324_v7   ;;  %v4538_v7 = vld [vmem:[%s6570_s0 + $0x4d] ss:$0 sm:$0xff] }
 0x1eb   :  { %2455 = vst.msk [vmem:[%s6571_s2 + $0x58] sm:$0xff] %vm2443_vm0, %v2326_v46  ;;  %1701 = vperm.xlu1 %3219, %v323_v56   ;;  %1696 = vperm.xlu0 %3218, %v322_v2   ;;  %v2717_v46 = vmul.f32 %v3233_v19, %v3536_v61  ;;  %v2214_v56 = vmul.f32 %v4538_v7, %v3645_v43 }
 0x1ec   :  { %3100 = vst.msk [vmem:[%s6571_s2 + $0x458] sm:$0xff] %vm2443_vm0, %v2839_v63  ;;  %v1542_v44 = vpop.permute.xlu2 %1541 }
 0x1ed   :  { %2454 = vst.msk [vmem:[%s6571_s2 + $0x50] sm:$0xff] %vm2443_vm0, %v2325_v4  ;;  %v2083_v48 = vmul.f32 %v4458_v54, %v1542_v44  ;;  %v2596_v55 = vmul.f32 %v4463_v30, %v1542_v44  ;;  %v1492_v60 = vpop.permute.xlu1 %1491  ;;  %v1487_v14 = vpop.permute.xlu0 %1486 }
 0x1ee   :  { %3099 = vst.msk [vmem:[%s6571_s2 + $0x450] sm:$0xff] %vm2443_vm0, %v2838_v11  ;;  %v2073_v12 = vmul.f32 %v4293_v26, %v1492_v60  ;;  %v2586_v35 = vmul.f32 %v4298_v39, %v1492_v60  ;;  %v2072_v41 = vmul.f32 %v4234_v59, %v1487_v14  ;;  %v2585_v49 = vmul.f32 %v4239_v36, %v1487_v14  ;;  %v3234_v26 = vld [vmem:[%s6570_s0 + $0x48] ss:$0 sm:$0xff]  ;;  %v325_v36 = vld [vmem:[%s6569_s1 + $0x5d0] sm:$0xff]  ;;  %v330_v60 = vld [vmem:[%s6569_s1 + $0x5f8] sm:$0xff] }
 0x1ef   :  { %v2339_v8 = vadd.f32 %v2211_v62, %v2083_v48  ;;  %v2852_v6 = vsub.f32 %v2596_v55, %v2724_v24  ;;  %v2713_v39 = vmul.f32 %v4234_v59, %v3568_v10  ;;  %v4533_v59 = vld [vmem:[%s6570_s0 + $0xd] ss:$0 sm:$0xff]  ;;  %v2204_v32 = vmul.f32 %v3234_v26, %v3536_v61 }
 0x1f0   :  { %v2329_v29 = vadd.f32 %v2201_v57, %v2073_v12  ;;  %v2842_v23 = vsub.f32 %v2586_v35, %v2714_v20  ;;  %v2328_v17 = vadd.f32 %v2200_v45, %v2072_v41  ;;  %v2727_v2 = vmul.f32 %v4533_v59, %v3645_v43  ;;  %v329_v41 = vld [vmem:[%s6569_s1 + $0x5f0] sm:$0xff]  ;;  %v4578_v45 = vld [vmem:[%s6570_s0 + $0xf] ss:$0 sm:$0xff] }
 0x1f1   :  { %2468 = vst.msk [vmem:[%s6571_s2 + $0xc0] sm:$0xff] %vm2443_vm0, %v2339_v8  ;;  %v2841_v10 = vsub.f32 %v2585_v49, %v2713_v39  ;;  %v2203_v24 = vmul.f32 %v3234_v26, %v3583_v16  ;;  %v2716_v14 = vmul.f32 %v3233_v19, %v3583_v16  ;;  %v328_v49 = vld [vmem:[%s6569_s1 + $0x5e8] sm:$0xff] }
 0x1f2   :  { %3113 = vst.msk [vmem:[%s6571_s2 + $0x4c0] sm:$0xff] %vm2443_vm0, %v2852_v6  ;;  %1721 = vperm.xlu2 %3220, %v327_v5   ;;  %v4583_v8 = vld [vmem:[%s6570_s0 + $0x4f] ss:$0 sm:$0xff]  ;;  %v2207_v6 = vmul.f32 %v4418_v37, %v3551_v3  ;;  %v2720_v5 = vmul.f32 %v4413_v51, %v3551_v3 }
 0x1f3   :  { %2458 = vst.msk [vmem:[%s6571_s2 + $0x70] sm:$0xff] %vm2443_vm0, %v2329_v29  ;;  %1716 = vperm.xlu1 %3219, %v326_v50   ;;  %1711 = vperm.xlu0 %3218, %v325_v36   ;;  %v2217_v39 = vmul.f32 %v4583_v8, %v3660_v53  ;;  %v2730_v29 = vmul.f32 %v4578_v45, %v3660_v53 }
 0x1f4   :  { %3103 = vst.msk [vmem:[%s6571_s2 + $0x470] sm:$0xff] %vm2443_vm0, %v2842_v23  ;;  %v1557_v63 = vpop.permute.xlu2 %1556 }
 0x1f5   :  { %2457 = vst.msk [vmem:[%s6571_s2 + $0x68] sm:$0xff] %vm2443_vm0, %v2328_v17  ;;  %v2086_v4 = vmul.f32 %v4533_v59, %v1557_v63  ;;  %v2599_v61 = vmul.f32 %v4538_v7, %v1557_v63  ;;  %v1507_v11 = vpop.permute.xlu1 %1506  ;;  %v1502_v57 = vpop.permute.xlu0 %1501  ;;  %v2206_v63 = vmul.f32 %v4343_v31, %v3598_v22 }
 0x1f6   :  { %3102 = vst.msk [vmem:[%s6571_s2 + $0x468] sm:$0xff] %vm2443_vm0, %v2841_v10  ;;  %v2076_v20 = vmul.f32 %v3233_v19, %v1507_v11  ;;  %v2589_v44 = vmul.f32 %v3234_v26, %v1507_v11  ;;  %v2075_v62 = vmul.f32 %v3233_v19, %v1502_v57  ;;  %v2588_v43 = vmul.f32 %v3234_v26, %v1502_v57  ;;  %v332_v57 = vld [vmem:[%s6569_s1 + $0x608] sm:$0xff] }
 0x1f7   :  { %v2342_v48 = vadd.f32 %v2214_v56, %v2086_v4  ;;  %v2855_v55 = vsub.f32 %v2599_v61, %v2727_v2  ;;  %v333_v4 = vld [vmem:[%s6569_s1 + $0x610] sm:$0xff] }
 0x1f8   :  { %v2332_v12 = vadd.f32 %v2204_v32, %v2076_v20  ;;  %v2845_v35 = vsub.f32 %v2589_v44, %v2717_v46  ;;  %v2331_v16 = vadd.f32 %v2203_v24, %v2075_v62  ;;  %v2844_v19 = vsub.f32 %v2588_v43, %v2716_v14  ;;  %v3239_v46 = vld [vmem:[%s6570_s0 + $0xb] ss:$0 sm:$0xff]  ;;  %v4658_v44 = vld [vmem:[%s6570_s0 + $0x50] ss:$0 sm:$0xff] }
 0x1f9   :  { %2471 = vst.msk [vmem:[%s6571_s2 + $0xd8] sm:$0xff] %vm2443_vm0, %v2342_v48  ;;  %v2723_v43 = vmul.f32 %v3239_v46, %v3566_v9  ;;  %v2220_v48 = vmul.f32 %v4658_v44, %v3675_v1 }
 0x1fa   :  { %3116 = vst.msk [vmem:[%s6571_s2 + $0x4d8] sm:$0xff] %vm2443_vm0, %v2855_v55  ;;  %1736 = vperm.xlu2 %3220, %v330_v60  }
 0x1fb   :  { %2461 = vst.msk [vmem:[%s6571_s2 + $0x88] sm:$0xff] %vm2443_vm0, %v2332_v12  ;;  %1731 = vperm.xlu1 %3219, %v329_v41   ;;  %1726 = vperm.xlu0 %3218, %v328_v49  }
 0x1fc   :  { %3106 = vst.msk [vmem:[%s6571_s2 + $0x488] sm:$0xff] %vm2443_vm0, %v2845_v35  ;;  %v1572_v26 = vpop.permute.xlu2 %1571 }
 0x1fd   :  { %2460 = vst.msk [vmem:[%s6571_s2 + $0x80] sm:$0xff] %vm2443_vm0, %v2331_v16  ;;  %v2089_v23 = vmul.f32 %v4578_v45, %v1572_v26  ;;  %v2602_v3 = vmul.f32 %v4583_v8, %v1572_v26  ;;  %v1522_v50 = vpop.permute.xlu1 %1521  ;;  %v1517_v36 = vpop.permute.xlu0 %1516  ;;  %v2722_v26 = vmul.f32 %v3239_v46, %v3613_v28 }
 0x1fe   :  { %3105 = vst.msk [vmem:[%s6571_s2 + $0x480] sm:$0xff] %vm2443_vm0, %v2844_v19  ;;  %v2079_v17 = vmul.f32 %v4413_v51, %v1522_v50  ;;  %v2592_v53 = vmul.f32 %v4418_v37, %v1522_v50  ;;  %v2078_v10 = vmul.f32 %v4338_v47, %v1517_v36  ;;  %v2591_v32 = vmul.f32 %v4343_v31, %v1517_v36  ;;  %v3240_v51 = vld [vmem:[%s6570_s0 + $0x4b] ss:$0 sm:$0xff]  ;;  %v331_v31 = vld [vmem:[%s6569_s1 + $0x600] sm:$0xff]  ;;  %v4698_v50 = vld [vmem:[%s6570_s0 + $0x12] ss:$0 sm:$0xff] }
 0x1ff   :  { %v2345_v56 = vadd.f32 %v2217_v39, %v2089_v23  ;;  %v2858_v2 = vsub.f32 %v2602_v3, %v2730_v29  ;;  %v2719_v37 = vmul.f32 %v4338_v47, %v3598_v22  ;;  %v4653_v47 = vld [vmem:[%s6570_s0 + $0x10] ss:$0 sm:$0xff]  ;;  %v2210_v62 = vmul.f32 %v3240_v51, %v3566_v9  ;;  %v335_v23 = vld [vmem:[%s6569_s1 + $0x620] sm:$0xff]  ;;  %v334_v3 = vld [vmem:[%s6569_s1 + $0x618] sm:$0xff] }
 0x200   :  { %v2335_v61 = vadd.f32 %v2207_v6, %v2079_v17  ;;  %v2848_v11 = vsub.f32 %v2592_v53, %v2720_v5  ;;  %v2334_v20 = vadd.f32 %v2206_v63, %v2078_v10  ;;  %v2733_v55 = vmul.f32 %v4653_v47, %v3675_v1  ;;  %v336_v5 = vld [vmem:[%s6569_s1 + $0x628] sm:$0xff]  ;;  %v4703_v36 = vld [vmem:[%s6570_s0 + $0x52] ss:$0 sm:$0xff] }
 0x201   :  { %2474 = vst.msk [vmem:[%s6571_s2 + $0xf0] sm:$0xff] %vm2443_vm0, %v2345_v56  ;;  %v2847_v22 = vsub.f32 %v2591_v32, %v2719_v37  ;;  %v2209_v16 = vmul.f32 %v3240_v51, %v3613_v28  ;;  %v2213_v53 = vmul.f32 %v4538_v7, %v3581_v15  ;;  %v2726_v10 = vmul.f32 %v4533_v59, %v3581_v15 }
 0x202   :  { %3119 = vst.msk [vmem:[%s6571_s2 + $0x4f0] sm:$0xff] %vm2443_vm0, %v2858_v2  ;;  %1751 = vperm.xlu2 %3220, %v333_v4   ;;  %v2736_v63 = vmul.f32 %v4698_v50, %v3690_v13 }
 0x203   :  { %2464 = vst.msk [vmem:[%s6571_s2 + $0xa0] sm:$0xff] %vm2443_vm0, %v2335_v61  ;;  %1746 = vperm.xlu1 %3219, %v332_v57   ;;  %1741 = vperm.xlu0 %3218, %v331_v31   ;;  %v2212_v57 = vmul.f32 %v4463_v30, %v3628_v34 }
 0x204   :  { %3109 = vst.msk [vmem:[%s6571_s2 + $0x4a0] sm:$0xff] %vm2443_vm0, %v2848_v11  ;;  %v1587_v24 = vpop.permute.xlu2 %1586  ;;  %v3245_v11 = vld [vmem:[%s6570_s0 + $0xe] ss:$0 sm:$0xff] }
 0x205   :  { %2463 = vst.msk [vmem:[%s6571_s2 + $0x98] sm:$0xff] %vm2443_vm0, %v2334_v20  ;;  %v2092_v60 = vmul.f32 %v4653_v47, %v1587_v24  ;;  %v2605_v9 = vmul.f32 %v4658_v44, %v1587_v24  ;;  %v1537_v14 = vpop.permute.xlu1 %1536  ;;  %v1532_v12 = vpop.permute.xlu0 %1531  ;;  %v338_v24 = vld [vmem:[%s6569_s1 + $0x638] sm:$0xff] }
 0x206   :  { %3108 = vst.msk [vmem:[%s6571_s2 + $0x498] sm:$0xff] %vm2443_vm0, %v2847_v22  ;;  %v2082_v35 = vmul.f32 %v3239_v46, %v1537_v14  ;;  %v2595_v41 = vmul.f32 %v3240_v51, %v1537_v14  ;;  %v2081_v49 = vmul.f32 %v3239_v46, %v1532_v12  ;;  %v2594_v1 = vmul.f32 %v3240_v51, %v1532_v12  ;;  %v339_v22 = vld [vmem:[%s6569_s1 + $0x640] sm:$0xff] }
 0x207   :  { %v2348_v19 = vadd.f32 %v2220_v48, %v2092_v60  ;;  %v2861_v6 = vsub.f32 %v2605_v9, %v2733_v55  ;;  %v2223_v46 = vmul.f32 %v4703_v36, %v3690_v13  ;;  %v4778_v55 = vld [vmem:[%s6570_s0 + $0x53] ss:$0 sm:$0xff]  ;;  %v2729_v9 = vmul.f32 %v3245_v11, %v3596_v21 }
 0x208   :  { %v2338_v39 = vadd.f32 %v2210_v62, %v2082_v35  ;;  %v2851_v29 = vsub.f32 %v2595_v41, %v2723_v43  ;;  %v2337_v28 = vadd.f32 %v2209_v16, %v2081_v49  ;;  %v2850_v17 = vsub.f32 %v2594_v1, %v2722_v26 }
 0x209   :  { %2477 = vst.msk [vmem:[%s6571_s2 + $0x108] sm:$0xff] %vm2443_vm0, %v2348_v19  ;;  %v2226_v12 = vmul.f32 %v4778_v55, %v3705_v25 }
 0x20a   :  { %3122 = vst.msk [vmem:[%s6571_s2 + $0x508] sm:$0xff] %vm2443_vm0, %v2861_v6  ;;  %1766 = vperm.xlu2 %3220, %v336_v5  }
 0x20b   :  { %2467 = vst.msk [vmem:[%s6571_s2 + $0xb8] sm:$0xff] %vm2443_vm0, %v2338_v39  ;;  %1761 = vperm.xlu1 %3219, %v335_v23   ;;  %1756 = vperm.xlu0 %3218, %v334_v3   ;;  %v2728_v23 = vmul.f32 %v3245_v11, %v3643_v42 }
 0x20c   :  { %3112 = vst.msk [vmem:[%s6571_s2 + $0x4b8] sm:$0xff] %vm2443_vm0, %v2851_v29  ;;  %v1602_v32 = vpop.permute.xlu2 %1601  ;;  %v342_v29 = vld [vmem:[%s6569_s1 + $0x658] sm:$0xff] }
 0x20d   :  { %2466 = vst.msk [vmem:[%s6571_s2 + $0xb0] sm:$0xff] %vm2443_vm0, %v2337_v28  ;;  %v2095_v56 = vmul.f32 %v4698_v50, %v1602_v32  ;;  %v2608_v15 = vmul.f32 %v4703_v36, %v1602_v32  ;;  %v1552_v2 = vpop.permute.xlu1 %1551  ;;  %v1547_v4 = vpop.permute.xlu0 %1546  ;;  %v4823_v32 = vld [vmem:[%s6570_s0 + $0x55] ss:$0 sm:$0xff] }
 0x20e   :  { %3111 = vst.msk [vmem:[%s6571_s2 + $0x4b0] sm:$0xff] %vm2443_vm0, %v2850_v17  ;;  %v2085_v51 = vmul.f32 %v4533_v59, %v1552_v2  ;;  %v2598_v13 = vmul.f32 %v4538_v7, %v1552_v2  ;;  %v2084_v37 = vmul.f32 %v4458_v54, %v1547_v4  ;;  %v2597_v61 = vmul.f32 %v4463_v30, %v1547_v4  ;;  %v3246_v59 = vld [vmem:[%s6570_s0 + $0x4e] ss:$0 sm:$0xff]  ;;  %v337_v30 = vld [vmem:[%s6569_s1 + $0x630] sm:$0xff] }
 0x20f   :  { %v2351_v31 = vadd.f32 %v2223_v46, %v2095_v56  ;;  %v2864_v20 = vsub.f32 %v2608_v15, %v2736_v63  ;;  %v2725_v7 = vmul.f32 %v4458_v54, %v3628_v34  ;;  %v4773_v54 = vld [vmem:[%s6570_s0 + $0x13] ss:$0 sm:$0xff]  ;;  %v2216_v60 = vmul.f32 %v3246_v59, %v3596_v21 }
 0x210   :  { %v2341_v62 = vadd.f32 %v2213_v53, %v2085_v51  ;;  %v2854_v43 = vsub.f32 %v2598_v13, %v2726_v10  ;;  %v2340_v48 = vadd.f32 %v2212_v57, %v2084_v37  ;;  %v2739_v35 = vmul.f32 %v4773_v54, %v3705_v25  ;;  %v341_v17 = vld [vmem:[%s6569_s1 + $0x650] sm:$0xff]  ;;  %v340_v53 = vld [vmem:[%s6569_s1 + $0x648] sm:$0xff] }
 0x211   :  { %2480 = vst.msk [vmem:[%s6571_s2 + $0x120] sm:$0xff] %vm2443_vm0, %v2351_v31  ;;  %v2853_v34 = vsub.f32 %v2597_v61, %v2725_v7  ;;  %v2215_v5 = vmul.f32 %v3246_v59, %v3643_v42  ;;  %v4818_v10 = vld [vmem:[%s6570_s0 + $0x15] ss:$0 sm:$0xff]  ;;  %v2219_v63 = vmul.f32 %v4658_v44, %v3611_v27  ;;  %v2732_v56 = vmul.f32 %v4653_v47, %v3611_v27  ;;  %v3251_v31 = vld [vmem:[%s6570_s0 + $0x11] ss:$0 sm:$0xff] }
 0x212   :  { %3125 = vst.msk [vmem:[%s6571_s2 + $0x520] sm:$0xff] %vm2443_vm0, %v2864_v20  ;;  %1781 = vperm.xlu2 %3220, %v339_v22   ;;  %v2229_v2 = vmul.f32 %v4823_v32, %v3720_v38  ;;  %v2742_v4 = vmul.f32 %v4818_v10, %v3720_v38  ;;  %v2218_v20 = vmul.f32 %v4583_v8, %v3658_v52  ;;  %v345_v7 = vld [vmem:[%s6569_s1 + $0x670] sm:$0xff] }
 0x213   :  { %2470 = vst.msk [vmem:[%s6571_s2 + $0xd0] sm:$0xff] %vm2443_vm0, %v2341_v62  ;;  %1776 = vperm.xlu1 %3219, %v338_v24   ;;  %1771 = vperm.xlu0 %3218, %v337_v30   ;;  %v344_v24 = vld [vmem:[%s6569_s1 + $0x668] sm:$0xff] }
 0x214   :  { %3115 = vst.msk [vmem:[%s6571_s2 + $0x4d0] sm:$0xff] %vm2443_vm0, %v2854_v43  ;;  %v1617_v14 = vpop.permute.xlu2 %1616 }
 0x215   :  { %2469 = vst.msk [vmem:[%s6571_s2 + $0xc8] sm:$0xff] %vm2443_vm0, %v2340_v48  ;;  %v2098_v41 = vmul.f32 %v4773_v54, %v1617_v14  ;;  %v2611_v21 = vmul.f32 %v4778_v55, %v1617_v14  ;;  %v1567_v49 = vpop.permute.xlu1 %1566  ;;  %v1562_v1 = vpop.permute.xlu0 %1561  ;;  %v4898_v48 = vld [vmem:[%s6570_s0 + $0x56] ss:$0 sm:$0xff] }
 0x216   :  { %3114 = vst.msk [vmem:[%s6571_s2 + $0x4c8] sm:$0xff] %vm2443_vm0, %v2853_v34  ;;  %v2088_v16 = vmul.f32 %v3245_v11, %v1567_v49  ;;  %v2601_v19 = vmul.f32 %v3246_v59, %v1567_v49  ;;  %v2087_v6 = vmul.f32 %v3245_v11, %v1562_v1  ;;  %v2600_v25 = vmul.f32 %v3246_v59, %v1562_v1 }
 0x217   :  { %v2354_v26 = vadd.f32 %v2226_v12, %v2098_v41  ;;  %v2867_v39 = vsub.f32 %v2611_v21, %v2739_v35  ;;  %v2232_v14 = vmul.f32 %v4898_v48, %v3735_v58 }
 0x218   :  { %v2344_v3 = vadd.f32 %v2216_v60, %v2088_v16  ;;  %v2857_v28 = vsub.f32 %v2601_v19, %v2729_v9  ;;  %v2343_v42 = vadd.f32 %v2215_v5, %v2087_v6  ;;  %v2856_v46 = vsub.f32 %v2600_v25, %v2728_v23  ;;  %v348_v5 = vld [vmem:[%s6569_s1 + $0x688] sm:$0xff]  ;;  %v347_v23 = vld [vmem:[%s6569_s1 + $0x680] sm:$0xff] }
 0x219   :  { %2483 = vst.msk [vmem:[%s6571_s2 + $0x138] sm:$0xff] %vm2443_vm0, %v2354_v26  ;;  %v2735_v60 = vmul.f32 %v3251_v31, %v3626_v33  ;;  %v2734_v26 = vmul.f32 %v3251_v31, %v3673_v0 }
 0x21a   :  { %3128 = vst.msk [vmem:[%s6571_s2 + $0x538] sm:$0xff] %vm2443_vm0, %v2867_v39  ;;  %1796 = vperm.xlu2 %3220, %v342_v29  }
 0x21b   :  { %2473 = vst.msk [vmem:[%s6571_s2 + $0xe8] sm:$0xff] %vm2443_vm0, %v2344_v3  ;;  %1791 = vperm.xlu1 %3219, %v341_v17   ;;  %1786 = vperm.xlu0 %3218, %v340_v53   ;;  %v346_v3 = vld [vmem:[%s6569_s1 + $0x678] sm:$0xff] }
 0x21c   :  { %3118 = vst.msk [vmem:[%s6571_s2 + $0x4e8] sm:$0xff] %vm2443_vm0, %v2857_v28  ;;  %v1632_v15 = vpop.permute.xlu2 %1631  ;;  %v4938_v28 = vld [vmem:[%s6570_s0 + $0x18] ss:$0 sm:$0xff] }
 0x21d   :  { %2472 = vst.msk [vmem:[%s6571_s2 + $0xe0] sm:$0xff] %vm2443_vm0, %v2343_v42  ;;  %v2101_v51 = vmul.f32 %v4818_v10, %v1632_v15  ;;  %v2614_v27 = vmul.f32 %v4823_v32, %v1632_v15  ;;  %v1582_v13 = vpop.permute.xlu1 %1581  ;;  %v1577_v37 = vpop.permute.xlu0 %1576  ;;  %v4943_v17 = vld [vmem:[%s6570_s0 + $0x58] ss:$0 sm:$0xff]  ;;  %v2225_v42 = vmul.f32 %v4778_v55, %v3641_v40  ;;  %v2748_v15 = vmul.f32 %v4938_v28, %v3750_v18 }
 0x21e   :  { %3117 = vst.msk [vmem:[%s6571_s2 + $0x4e0] sm:$0xff] %vm2443_vm0, %v2856_v46  ;;  %v2091_v61 = vmul.f32 %v4653_v47, %v1582_v13  ;;  %v2604_v38 = vmul.f32 %v4658_v44, %v1582_v13  ;;  %v2090_v11 = vmul.f32 %v4578_v45, %v1577_v37  ;;  %v2603_v57 = vmul.f32 %v4583_v8, %v1577_v37  ;;  %v3252_v47 = vld [vmem:[%s6570_s0 + $0x51] ss:$0 sm:$0xff]  ;;  %v343_v8 = vld [vmem:[%s6569_s1 + $0x660] sm:$0xff] }
 0x21f   :  { %v2357_v22 = vadd.f32 %v2229_v2, %v2101_v51  ;;  %v2870_v59 = vsub.f32 %v2614_v27, %v2742_v4  ;;  %v2731_v44 = vmul.f32 %v4578_v45, %v3658_v52  ;;  %v4893_v45 = vld [vmem:[%s6570_s0 + $0x16] ss:$0 sm:$0xff]  ;;  %v2222_v34 = vmul.f32 %v3252_v47, %v3626_v33 }
 0x220   :  { %v2347_v62 = vadd.f32 %v2219_v63, %v2091_v61  ;;  %v2860_v43 = vsub.f32 %v2604_v38, %v2732_v56  ;;  %v2346_v30 = vadd.f32 %v2218_v20, %v2090_v11  ;;  %v2745_v12 = vmul.f32 %v4893_v45, %v3735_v58  ;;  %v3257_v61 = vld [vmem:[%s6570_s0 + $0x14] ss:$0 sm:$0xff]  ;;  %v6744_v38 = vld [vmem:[#allocation5_spill] sm:$0xff]  ;;  %v351_v20 = vld [vmem:[%s6569_s1 + $0x6a0] sm:$0xff] }
 0x221   :  { %2486 = vst.msk [vmem:[%s6571_s2 + $0x150] sm:$0xff] %vm2443_vm0, %v2357_v22  ;;  %v2859_v52 = vsub.f32 %v2603_v57, %v2731_v44  ;;  %v2221_v19 = vmul.f32 %v3252_v47, %v3673_v0  ;;  %v2738_v46 = vmul.f32 %v4773_v54, %v3641_v40  ;;  %v2235_v56 = vmul.f32 %v4943_v17, %v3750_v18  ;;  %v5013_v44 = vld [vmem:[%s6570_s0 + $0x19] ss:$0 sm:$0xff] }
 0x222   :  { %3131 = vst.msk [vmem:[%s6571_s2 + $0x550] sm:$0xff] %vm2443_vm0, %v2870_v59  ;;  %1811 = vperm.xlu2 %3220, %v345_v7   ;;  %v2224_v11 = vmul.f32 %v4703_v36, %v6744_v38  ;;  %v350_v7 = vld [vmem:[%s6569_s1 + $0x698] sm:$0xff] }
 0x223   :  { %2476 = vst.msk [vmem:[%s6571_s2 + $0x100] sm:$0xff] %vm2443_vm0, %v2347_v62  ;;  %1806 = vperm.xlu1 %3219, %v344_v24   ;;  %1801 = vperm.xlu0 %3218, %v343_v8   ;;  %v5018_v62 = vld [vmem:[%s6570_s0 + $0x59] ss:$0 sm:$0xff] }
 0x224   :  { %3121 = vst.msk [vmem:[%s6571_s2 + $0x500] sm:$0xff] %vm2443_vm0, %v2860_v43  ;;  %v1647_v9 = vpop.permute.xlu2 %1646  ;;  %v6745_v43 = vld [vmem:[#allocation2_spill] sm:$0xff] }
 0x225   :  { %2475 = vst.msk [vmem:[%s6571_s2 + $0xf8] sm:$0xff] %vm2443_vm0, %v2346_v30  ;;  %v2104_v35 = vmul.f32 %v4893_v45, %v1647_v9  ;;  %v2617_v33 = vmul.f32 %v4898_v48, %v1647_v9  ;;  %v1597_v41 = vpop.permute.xlu1 %1596  ;;  %v1592_v21 = vpop.permute.xlu0 %1591  ;;  %v2741_v8 = vmul.f32 %v3257_v61, %v6745_v43 }
 0x226   :  { %3120 = vst.msk [vmem:[%s6571_s2 + $0x4f8] sm:$0xff] %vm2443_vm0, %v2859_v52  ;;  %v2094_v49 = vmul.f32 %v3251_v31, %v1597_v41  ;;  %v2607_v1 = vmul.f32 %v3252_v47, %v1597_v41  ;;  %v2093_v16 = vmul.f32 %v3251_v31, %v1592_v21  ;;  %v2606_v58 = vmul.f32 %v3252_v47, %v1592_v21  ;;  %v6746_v52 = vld [vmem:[#allocation16_spill] sm:$0xff] }
 0x227   :  { %v2360_v6 = vadd.f32 %v2232_v14, %v2104_v35  ;;  %v2873_v25 = vsub.f32 %v2617_v33, %v2745_v12 }
 0x228   :  { %v2350_v39 = vadd.f32 %v2222_v34, %v2094_v49  ;;  %v2863_v29 = vsub.f32 %v2607_v1, %v2735_v60  ;;  %v2349_v0 = vadd.f32 %v2221_v19, %v2093_v16  ;;  %v2862_v53 = vsub.f32 %v2606_v58, %v2734_v26  ;;  %v6747_v1 = vld [vmem:[#allocation7_spill] sm:$0xff] }
 0x229   :  { %2489 = vst.msk [vmem:[%s6571_s2 + $0x168] sm:$0xff] %vm2443_vm0, %v2360_v6  ;;  %v2238_v34 = vmul.f32 %v5018_v62, %v6746_v52  ;;  %v2751_v60 = vmul.f32 %v5013_v44, %v6746_v52  ;;  %v354_v6 = vld [vmem:[%s6569_s1 + $0x6b8] sm:$0xff]  ;;  %v6752_v52 = vld [vmem:[#allocation22_spill] sm:$0xff] }
 0x22a   :  { %3134 = vst.msk [vmem:[%s6571_s2 + $0x568] sm:$0xff] %vm2443_vm0, %v2873_v25  ;;  %1826 = vperm.xlu2 %3220, %v348_v5   ;;  %v2740_v25 = vmul.f32 %v3257_v61, %v6747_v1 }
 0x22b   :  { %2479 = vst.msk [vmem:[%s6571_s2 + $0x118] sm:$0xff] %vm2443_vm0, %v2350_v39  ;;  %1821 = vperm.xlu1 %3219, %v347_v23   ;;  %1816 = vperm.xlu0 %3218, %v346_v3   ;;  %v353_v39 = vld [vmem:[%s6569_s1 + $0x6b0] sm:$0xff]  ;;  %v5058_v23 = vld [vmem:[%s6570_s0 + $0x1b] ss:$0 sm:$0xff] }
 0x22c   :  { %3124 = vst.msk [vmem:[%s6571_s2 + $0x518] sm:$0xff] %vm2443_vm0, %v2863_v29  ;;  %v1662_v63 = vpop.permute.xlu2 %1661  ;;  %v352_v29 = vld [vmem:[%s6569_s1 + $0x6a8] sm:$0xff]  ;;  %v5063_v3 = vld [vmem:[%s6570_s0 + $0x5b] ss:$0 sm:$0xff] }
 0x22d   :  { %2478 = vst.msk [vmem:[%s6571_s2 + $0x110] sm:$0xff] %vm2443_vm0, %v2349_v0  ;;  %v2107_v2 = vmul.f32 %v4938_v28, %v1662_v63  ;;  %v2620_v40 = vmul.f32 %v4943_v17, %v1662_v63  ;;  %v1612_v4 = vpop.permute.xlu1 %1611  ;;  %v1607_v51 = vpop.permute.xlu0 %1606 }
 0x22e   :  { %3123 = vst.msk [vmem:[%s6571_s2 + $0x510] sm:$0xff] %vm2443_vm0, %v2862_v53  ;;  %v2097_v27 = vmul.f32 %v4773_v54, %v1612_v4  ;;  %v2610_v18 = vmul.f32 %v4778_v55, %v1612_v4  ;;  %v2096_v13 = vmul.f32 %v4698_v50, %v1607_v51  ;;  %v2609_v37 = vmul.f32 %v4703_v36, %v1607_v51  ;;  %v3258_v54 = vld [vmem:[%s6570_s0 + $0x54] ss:$0 sm:$0xff] }
 0x22f   :  { %v2363_v57 = vadd.f32 %v2235_v56, %v2107_v2  ;;  %v2876_v31 = vsub.f32 %v2620_v40, %v2748_v15  ;;  %v2737_v55 = vmul.f32 %v4698_v50, %v6744_v38  ;;  %v349_v36 = vld [vmem:[%s6569_s1 + $0x690] sm:$0xff]  ;;  %v2228_v24 = vmul.f32 %v3258_v54, %v6745_v43  ;;  %v6749_v15 = vld [vmem:[#allocation19_spill] sm:$0xff] }
 0x230   :  { %v2353_v22 = vadd.f32 %v2225_v42, %v2097_v27  ;;  %v2866_v59 = vsub.f32 %v2610_v18, %v2738_v46  ;;  %v2352_v47 = vadd.f32 %v2224_v11, %v2096_v13  ;;  %v2227_v16 = vmul.f32 %v3258_v54, %v6747_v1  ;;  %v6748_v42 = vld [vmem:[#allocation3_spill] sm:$0xff]  ;;  %v3263_v11 = vld [vmem:[%s6570_s0 + $0x17] ss:$0 sm:$0xff] }
 0x231   :  { %2492 = vst.msk [vmem:[%s6571_s2 + $0x180] sm:$0xff] %vm2443_vm0, %v2363_v57  ;;  %v2865_v50 = vsub.f32 %v2609_v37, %v2737_v55  ;;  %v2231_v46 = vmul.f32 %v4898_v48, %v6748_v42  ;;  %v2744_v63 = vmul.f32 %v4893_v45, %v6748_v42  ;;  %v2241_v2 = vmul.f32 %v5063_v3, %v6749_v15  ;;  %v6750_v57 = vld [vmem:[#allocation9_spill] sm:$0xff]  ;;  %v357_v55 = vld [vmem:[%s6569_s1 + $0x6d0] sm:$0xff]  ;;  %v6753_v1 = vld [vmem:[#allocation11_spill] sm:$0xff] }
 0x232   :  { %3137 = vst.msk [vmem:[%s6571_s2 + $0x580] sm:$0xff] %vm2443_vm0, %v2876_v31  ;;  %1841 = vperm.xlu2 %3220, %v351_v20   ;;  %v2754_v40 = vmul.f32 %v5058_v23, %v6749_v15  ;;  %v2230_v31 = vmul.f32 %v4823_v32, %v6750_v57  ;;  %v6751_v43 = vld [vmem:[#allocation4_spill] sm:$0xff] }
 0x233   :  { %2482 = vst.msk [vmem:[%s6571_s2 + $0x130] sm:$0xff] %vm2443_vm0, %v2353_v22  ;;  %1836 = vperm.xlu1 %3219, %v350_v7   ;;  %1831 = vperm.xlu0 %3218, %v349_v36   ;;  %v356_v7 = vld [vmem:[%s6569_s1 + $0x6c8] sm:$0xff] }
 0x234   :  { %3127 = vst.msk [vmem:[%s6571_s2 + $0x530] sm:$0xff] %vm2443_vm0, %v2866_v59  ;;  %v1677_v30 = vpop.permute.xlu2 %1676 }
 0x235   :  { %2481 = vst.msk [vmem:[%s6571_s2 + $0x128] sm:$0xff] %vm2443_vm0, %v2352_v47  ;;  %v2110_v9 = vmul.f32 %v5013_v44, %v1677_v30  ;;  %v2623_v14 = vmul.f32 %v5018_v62, %v1677_v30  ;;  %v1627_v12 = vpop.permute.xlu1 %1626  ;;  %v1622_v35 = vpop.permute.xlu0 %1621  ;;  %v5133_v47 = vld [vmem:[%s6570_s0 + $0x1c] ss:$0 sm:$0xff] }
 0x236   :  { %3126 = vst.msk [vmem:[%s6571_s2 + $0x528] sm:$0xff] %vm2443_vm0, %v2865_v50  ;;  %v2100_v33 = vmul.f32 %v3257_v61, %v1627_v12  ;;  %v2613_v41 = vmul.f32 %v3258_v54, %v1627_v12  ;;  %v2099_v21 = vmul.f32 %v3257_v61, %v1622_v35  ;;  %v2612_v49 = vmul.f32 %v3258_v54, %v1622_v35  ;;  %v5138_v50 = vld [vmem:[%s6570_s0 + $0x5c] ss:$0 sm:$0xff] }
 0x237   :  { %v2366_v58 = vadd.f32 %v2238_v34, %v2110_v9  ;;  %v2879_v19 = vsub.f32 %v2623_v14, %v2751_v60  ;;  %v2244_v34 = vmul.f32 %v5138_v50, %v6752_v52  ;;  %v2757_v60 = vmul.f32 %v5133_v47, %v6752_v52  ;;  %v6758_v52 = vld [vmem:[#allocation28_spill] sm:$0xff] }
 0x238   :  { %v2356_v5 = vadd.f32 %v2228_v24, %v2100_v33  ;;  %v2869_v26 = vsub.f32 %v2613_v41, %v2741_v8  ;;  %v2355_v0 = vadd.f32 %v2227_v16, %v2099_v21  ;;  %v2868_v53 = vsub.f32 %v2612_v49, %v2740_v25 }
 0x239   :  { %2495 = vst.msk [vmem:[%s6571_s2 + $0x198] sm:$0xff] %vm2443_vm0, %v2366_v58  ;;  %v2747_v8 = vmul.f32 %v3263_v11, %v6751_v43  ;;  %v2746_v25 = vmul.f32 %v3263_v11, %v6753_v1 }
 0x23a   :  { %3140 = vst.msk [vmem:[%s6571_s2 + $0x598] sm:$0xff] %vm2443_vm0, %v2879_v19  ;;  %1856 = vperm.xlu2 %3220, %v354_v6   ;;  %v360_v6 = vld [vmem:[%s6569_s1 + $0x6e8] sm:$0xff] }
 0x23b   :  { %2485 = vst.msk [vmem:[%s6571_s2 + $0x148] sm:$0xff] %vm2443_vm0, %v2356_v5  ;;  %1851 = vperm.xlu1 %3219, %v353_v39   ;;  %1846 = vperm.xlu0 %3218, %v352_v29   ;;  %v359_v39 = vld [vmem:[%s6569_s1 + $0x6e0] sm:$0xff]  ;;  %v358_v29 = vld [vmem:[%s6569_s1 + $0x6d8] sm:$0xff] }
 0x23c   :  { %3130 = vst.msk [vmem:[%s6571_s2 + $0x548] sm:$0xff] %vm2443_vm0, %v2869_v26  ;;  %v1692_v56 = vpop.permute.xlu2 %1691 }
 0x23d   :  { %2484 = vst.msk [vmem:[%s6571_s2 + $0x140] sm:$0xff] %vm2443_vm0, %v2355_v0  ;;  %v2113_v4 = vmul.f32 %v5058_v23, %v1692_v56  ;;  %v2626_v51 = vmul.f32 %v5063_v3, %v1692_v56  ;;  %v1642_v27 = vpop.permute.xlu1 %1641  ;;  %v1637_v18 = vpop.permute.xlu0 %1636  ;;  %v5178_v0 = vld [vmem:[%s6570_s0 + $0x1e] ss:$0 sm:$0xff] }
 0x23e   :  { %3129 = vst.msk [vmem:[%s6571_s2 + $0x540] sm:$0xff] %vm2443_vm0, %v2868_v53  ;;  %v2103_v13 = vmul.f32 %v4893_v45, %v1642_v27  ;;  %v2616_v37 = vmul.f32 %v4898_v48, %v1642_v27  ;;  %v2102_v61 = vmul.f32 %v4818_v10, %v1637_v18  ;;  %v2615_v38 = vmul.f32 %v4823_v32, %v1637_v18  ;;  %v3264_v45 = vld [vmem:[%s6570_s0 + $0x57] ss:$0 sm:$0xff]  ;;  %v355_v32 = vld [vmem:[%s6569_s1 + $0x6c0] sm:$0xff]  ;;  %v5183_v53 = vld [vmem:[%s6570_s0 + $0x5e] ss:$0 sm:$0xff] }
 0x23f   :  { %v2369_v20 = vadd.f32 %v2241_v2, %v2113_v4  ;;  %v2882_v54 = vsub.f32 %v2626_v51, %v2754_v40  ;;  %v2743_v48 = vmul.f32 %v4818_v10, %v6750_v57  ;;  %v2234_v24 = vmul.f32 %v3264_v45, %v6751_v43  ;;  %v6755_v40 = vld [vmem:[#allocation25_spill] sm:$0xff]  ;;  %v6757_v43 = vld [vmem:[#allocation8_spill] sm:$0xff] }
 0x240   :  { %v2359_v22 = vadd.f32 %v2231_v46, %v2103_v13  ;;  %v2872_v59 = vsub.f32 %v2616_v37, %v2744_v63  ;;  %v2358_v36 = vadd.f32 %v2230_v31, %v2102_v61  ;;  %v2233_v16 = vmul.f32 %v3264_v45, %v6753_v1  ;;  %v6754_v63 = vld [vmem:[#allocation6_spill] sm:$0xff]  ;;  %v3269_v31 = vld [vmem:[%s6570_s0 + $0x1a] ss:$0 sm:$0xff]  ;;  %v6759_v1 = vld [vmem:[#allocation15_spill] sm:$0xff] }
 0x241   :  { %2498 = vst.msk [vmem:[%s6571_s2 + $0x1b0] sm:$0xff] %vm2443_vm0, %v2369_v20  ;;  %v2871_v10 = vsub.f32 %v2615_v38, %v2743_v48  ;;  %v2237_v56 = vmul.f32 %v5018_v62, %v6754_v63  ;;  %v2750_v15 = vmul.f32 %v5013_v44, %v6754_v63  ;;  %v2247_v4 = vmul.f32 %v5183_v53, %v6755_v40  ;;  %v6756_v20 = vld [vmem:[#allocation13_spill] sm:$0xff]  ;;  %v363_v48 = vld [vmem:[%s6569_s1 + $0x700] sm:$0xff] }
 0x242   :  { %3143 = vst.msk [vmem:[%s6571_s2 + $0x5b0] sm:$0xff] %vm2443_vm0, %v2882_v54  ;;  %1871 = vperm.xlu2 %3220, %v357_v55   ;;  %v2760_v51 = vmul.f32 %v5178_v0, %v6755_v40  ;;  %v2236_v54 = vmul.f32 %v4943_v17, %v6756_v20 }
 0x243   :  { %2488 = vst.msk [vmem:[%s6571_s2 + $0x160] sm:$0xff] %vm2443_vm0, %v2359_v22  ;;  %1866 = vperm.xlu1 %3219, %v356_v7   ;;  %1861 = vperm.xlu0 %3218, %v355_v32   ;;  %v362_v7 = vld [vmem:[%s6569_s1 + $0x6f8] sm:$0xff] }
 0x244   :  { %3133 = vst.msk [vmem:[%s6571_s2 + $0x560] sm:$0xff] %vm2443_vm0, %v2872_v59  ;;  %v1707_v30 = vpop.permute.xlu2 %1706 }
 0x245   :  { %2487 = vst.msk [vmem:[%s6571_s2 + $0x158] sm:$0xff] %vm2443_vm0, %v2358_v36  ;;  %v2116_v9 = vmul.f32 %v5133_v47, %v1707_v30  ;;  %v2629_v14 = vmul.f32 %v5138_v50, %v1707_v30  ;;  %v1657_v12 = vpop.permute.xlu1 %1656  ;;  %v1652_v35 = vpop.permute.xlu0 %1651  ;;  %v5253_v36 = vld [vmem:[%s6570_s0 + $0x1f] ss:$0 sm:$0xff] }
 0x246   :  { %3132 = vst.msk [vmem:[%s6571_s2 + $0x558] sm:$0xff] %vm2443_vm0, %v2871_v10  ;;  %v2106_v33 = vmul.f32 %v3263_v11, %v1657_v12  ;;  %v2619_v41 = vmul.f32 %v3264_v45, %v1657_v12  ;;  %v2105_v21 = vmul.f32 %v3263_v11, %v1652_v35  ;;  %v2618_v49 = vmul.f32 %v3264_v45, %v1652_v35  ;;  %v5258_v10 = vld [vmem:[%s6570_s0 + $0x5f] ss:$0 sm:$0xff] }
 0x247   :  { %v2372_v58 = vadd.f32 %v2244_v34, %v2116_v9  ;;  %v2885_v19 = vsub.f32 %v2629_v14, %v2757_v60  ;;  %v2250_v34 = vmul.f32 %v5258_v10, %v6758_v52  ;;  %v2763_v60 = vmul.f32 %v5253_v36, %v6758_v52  ;;  %v6764_v52 = vld [vmem:[#allocation34_spill] sm:$0xff] }
 0x248   :  { %v2362_v5 = vadd.f32 %v2234_v24, %v2106_v33  ;;  %v2875_v26 = vsub.f32 %v2619_v41, %v2747_v8  ;;  %v2361_v42 = vadd.f32 %v2233_v16, %v2105_v21  ;;  %v2874_v46 = vsub.f32 %v2618_v49, %v2746_v25 }
 0x249   :  { %2501 = vst.msk [vmem:[%s6571_s2 + $0x1c8] sm:$0xff] %vm2443_vm0, %v2372_v58  ;;  %v2753_v8 = vmul.f32 %v3269_v31, %v6757_v43  ;;  %v2752_v25 = vmul.f32 %v3269_v31, %v6759_v1 }
 0x24a   :  { %3146 = vst.msk [vmem:[%s6571_s2 + $0x5c8] sm:$0xff] %vm2443_vm0, %v2885_v19  ;;  %1886 = vperm.xlu2 %3220, %v360_v6   ;;  %v366_v6 = vld [vmem:[%s6569_s1 + $0x718] sm:$0xff] }
 0x24b   :  { %2491 = vst.msk [vmem:[%s6571_s2 + $0x178] sm:$0xff] %vm2443_vm0, %v2362_v5  ;;  %1881 = vperm.xlu1 %3219, %v359_v39   ;;  %1876 = vperm.xlu0 %3218, %v358_v29   ;;  %v365_v39 = vld [vmem:[%s6569_s1 + $0x710] sm:$0xff]  ;;  %v364_v29 = vld [vmem:[%s6569_s1 + $0x708] sm:$0xff] }
 0x24c   :  { %3136 = vst.msk [vmem:[%s6571_s2 + $0x578] sm:$0xff] %vm2443_vm0, %v2875_v26  ;;  %v1722_v2 = vpop.permute.xlu2 %1721 }
 0x24d   :  { %2490 = vst.msk [vmem:[%s6571_s2 + $0x170] sm:$0xff] %vm2443_vm0, %v2361_v42  ;;  %v2119_v27 = vmul.f32 %v5178_v0, %v1722_v2  ;;  %v2632_v18 = vmul.f32 %v5183_v53, %v1722_v2  ;;  %v1672_v13 = vpop.permute.xlu1 %1671  ;;  %v1667_v37 = vpop.permute.xlu0 %1666  ;;  %v5298_v42 = vld [vmem:[%s6570_s0 + $0x21] ss:$0 sm:$0xff] }
 0x24e   :  { %3135 = vst.msk [vmem:[%s6571_s2 + $0x570] sm:$0xff] %vm2443_vm0, %v2874_v46  ;;  %v2109_v61 = vmul.f32 %v5013_v44, %v1672_v13  ;;  %v2622_v38 = vmul.f32 %v5018_v62, %v1672_v13  ;;  %v2108_v11 = vmul.f32 %v4938_v28, %v1667_v37  ;;  %v2621_v57 = vmul.f32 %v4943_v17, %v1667_v37  ;;  %v3270_v44 = vld [vmem:[%s6570_s0 + $0x5a] ss:$0 sm:$0xff]  ;;  %v361_v17 = vld [vmem:[%s6569_s1 + $0x6f0] sm:$0xff]  ;;  %v5303_v46 = vld [vmem:[%s6570_s0 + $0x61] ss:$0 sm:$0xff] }
 0x24f   :  { %v2375_v55 = vadd.f32 %v2247_v4, %v2119_v27  ;;  %v2888_v45 = vsub.f32 %v2632_v18, %v2760_v51  ;;  %v2749_v62 = vmul.f32 %v4938_v28, %v6756_v20  ;;  %v2240_v24 = vmul.f32 %v3270_v44, %v6757_v43  ;;  %v6761_v51 = vld [vmem:[#allocation31_spill] sm:$0xff]  ;;  %v6763_v43 = vld [vmem:[#allocation12_spill] sm:$0xff] }
 0x250   :  { %v2365_v22 = vadd.f32 %v2237_v56, %v2109_v61  ;;  %v2878_v59 = vsub.f32 %v2622_v38, %v2750_v15  ;;  %v2364_v32 = vadd.f32 %v2236_v54, %v2108_v11  ;;  %v2239_v16 = vmul.f32 %v3270_v44, %v6759_v1  ;;  %v6760_v15 = vld [vmem:[#allocation10_spill] sm:$0xff]  ;;  %v3275_v54 = vld [vmem:[%s6570_s0 + $0x1d] ss:$0 sm:$0xff] }
 0x251   :  { %2504 = vst.msk [vmem:[%s6571_s2 + $0x1e0] sm:$0xff] %vm2443_vm0, %v2375_v55  ;;  %v2877_v28 = vsub.f32 %v2621_v57, %v2749_v62  ;;  %v2243_v2 = vmul.f32 %v5138_v50, %v6760_v15  ;;  %v2756_v40 = vmul.f32 %v5133_v47, %v6760_v15  ;;  %v2253_v27 = vmul.f32 %v5303_v46, %v6761_v51  ;;  %v6762_v55 = vld [vmem:[#allocation18_spill] sm:$0xff]  ;;  %v369_v62 = vld [vmem:[%s6569_s1 + $0x730] sm:$0xff]  ;;  %v6765_v1 = vld [vmem:[#allocation21_spill] sm:$0xff] }
 0x252   :  { %3149 = vst.msk [vmem:[%s6571_s2 + $0x5e0] sm:$0xff] %vm2443_vm0, %v2888_v45  ;;  %1901 = vperm.xlu2 %3220, %v363_v48   ;;  %v2766_v18 = vmul.f32 %v5298_v42, %v6761_v51  ;;  %v2242_v45 = vmul.f32 %v5063_v3, %v6762_v55 }
 0x253   :  { %2494 = vst.msk [vmem:[%s6571_s2 + $0x190] sm:$0xff] %vm2443_vm0, %v2365_v22  ;;  %1896 = vperm.xlu1 %3219, %v362_v7   ;;  %1891 = vperm.xlu0 %3218, %v361_v17   ;;  %v368_v7 = vld [vmem:[%s6569_s1 + $0x728] sm:$0xff] }
 0x254   :  { %3139 = vst.msk [vmem:[%s6571_s2 + $0x590] sm:$0xff] %vm2443_vm0, %v2878_v59  ;;  %v1737_v30 = vpop.permute.xlu2 %1736 }
 0x255   :  { %2493 = vst.msk [vmem:[%s6571_s2 + $0x188] sm:$0xff] %vm2443_vm0, %v2364_v32  ;;  %v2122_v9 = vmul.f32 %v5253_v36, %v1737_v30  ;;  %v2635_v14 = vmul.f32 %v5258_v10, %v1737_v30  ;;  %v1687_v12 = vpop.permute.xlu1 %1686  ;;  %v1682_v35 = vpop.permute.xlu0 %1681  ;;  %v5373_v32 = vld [vmem:[%s6570_s0 + $0x22] ss:$0 sm:$0xff] }
 0x256   :  { %3138 = vst.msk [vmem:[%s6571_s2 + $0x588] sm:$0xff] %vm2443_vm0, %v2877_v28  ;;  %v2112_v33 = vmul.f32 %v3269_v31, %v1687_v12  ;;  %v2625_v41 = vmul.f32 %v3270_v44, %v1687_v12  ;;  %v2111_v21 = vmul.f32 %v3269_v31, %v1682_v35  ;;  %v2624_v49 = vmul.f32 %v3270_v44, %v1682_v35  ;;  %v5378_v28 = vld [vmem:[%s6570_s0 + $0x62] ss:$0 sm:$0xff] }
 0x257   :  { %v2378_v58 = vadd.f32 %v2250_v34, %v2122_v9  ;;  %v2891_v19 = vsub.f32 %v2635_v14, %v2763_v60  ;;  %v2256_v34 = vmul.f32 %v5378_v28, %v6764_v52  ;;  %v2769_v60 = vmul.f32 %v5373_v32, %v6764_v52  ;;  %v6770_v52 = vld [vmem:[#allocation40_spill] sm:$0xff] }
 0x258   :  { %v2368_v5 = vadd.f32 %v2240_v24, %v2112_v33  ;;  %v2881_v26 = vsub.f32 %v2625_v41, %v2753_v8  ;;  %v2367_v63 = vadd.f32 %v2239_v16, %v2111_v21  ;;  %v2880_v56 = vsub.f32 %v2624_v49, %v2752_v25 }
 0x259   :  { %2507 = vst.msk [vmem:[%s6571_s2 + $0x1f8] sm:$0xff] %vm2443_vm0, %v2378_v58  ;;  %v2759_v8 = vmul.f32 %v3275_v54, %v6763_v43  ;;  %v2758_v25 = vmul.f32 %v3275_v54, %v6765_v1 }
 0x25a   :  { %3152 = vst.msk [vmem:[%s6571_s2 + $0x5f8] sm:$0xff] %vm2443_vm0, %v2891_v19  ;;  %1916 = vperm.xlu2 %3220, %v366_v6   ;;  %v372_v6 = vld [vmem:[%s6569_s1 + $0x748] sm:$0xff] }
 0x25b   :  { %2497 = vst.msk [vmem:[%s6571_s2 + $0x1a8] sm:$0xff] %vm2443_vm0, %v2368_v5  ;;  %1911 = vperm.xlu1 %3219, %v365_v39   ;;  %1906 = vperm.xlu0 %3218, %v364_v29   ;;  %v371_v39 = vld [vmem:[%s6569_s1 + $0x740] sm:$0xff]  ;;  %v370_v29 = vld [vmem:[%s6569_s1 + $0x738] sm:$0xff] }
 0x25c   :  { %3142 = vst.msk [vmem:[%s6571_s2 + $0x5a8] sm:$0xff] %vm2443_vm0, %v2881_v26  ;;  %v1752_v4 = vpop.permute.xlu2 %1751 }
 0x25d   :  { %2496 = vst.msk [vmem:[%s6571_s2 + $0x1a0] sm:$0xff] %vm2443_vm0, %v2367_v63  ;;  %v2125_v13 = vmul.f32 %v5298_v42, %v1752_v4  ;;  %v2638_v37 = vmul.f32 %v5303_v46, %v1752_v4  ;;  %v1702_v61 = vpop.permute.xlu1 %1701  ;;  %v1697_v38 = vpop.permute.xlu0 %1696  ;;  %v5418_v63 = vld [vmem:[%s6570_s0 + $0x24] ss:$0 sm:$0xff] }
 0x25e   :  { %3141 = vst.msk [vmem:[%s6571_s2 + $0x5a0] sm:$0xff] %vm2443_vm0, %v2880_v56  ;;  %v2115_v11 = vmul.f32 %v5133_v47, %v1702_v61  ;;  %v2628_v57 = vmul.f32 %v5138_v50, %v1702_v61  ;;  %v2114_v31 = vmul.f32 %v5058_v23, %v1697_v38  ;;  %v2627_v20 = vmul.f32 %v5063_v3, %v1697_v38  ;;  %v3276_v47 = vld [vmem:[%s6570_s0 + $0x5d] ss:$0 sm:$0xff]  ;;  %v367_v3 = vld [vmem:[%s6569_s1 + $0x720] sm:$0xff] }
 0x25f   :  { %v2381_v48 = vadd.f32 %v2253_v27, %v2125_v13  ;;  %v2894_v44 = vsub.f32 %v2638_v37, %v2766_v18  ;;  %v2755_v50 = vmul.f32 %v5058_v23, %v6762_v55  ;;  %v2246_v24 = vmul.f32 %v3276_v47, %v6763_v43  ;;  %v5423_v56 = vld [vmem:[%s6570_s0 + $0x64] ss:$0 sm:$0xff]  ;;  %v6767_v18 = vld [vmem:[#allocation37_spill] sm:$0xff] }
 0x260   :  { %v2371_v22 = vadd.f32 %v2243_v2, %v2115_v11  ;;  %v2884_v59 = vsub.f32 %v2628_v57, %v2756_v40  ;;  %v2370_v17 = vadd.f32 %v2242_v45, %v2114_v31  ;;  %v2245_v16 = vmul.f32 %v3276_v47, %v6765_v1  ;;  %v6766_v40 = vld [vmem:[#allocation14_spill] sm:$0xff]  ;;  %v6769_v43 = vld [vmem:[#allocation17_spill] sm:$0xff]  ;;  %v6771_v1 = vld [vmem:[#allocation27_spill] sm:$0xff] }
 0x261   :  { %2510 = vst.msk [vmem:[%s6571_s2 + $0x210] sm:$0xff] %vm2443_vm0, %v2381_v48  ;;  %v2883_v23 = vsub.f32 %v2627_v20, %v2755_v50  ;;  %v2249_v4 = vmul.f32 %v5258_v10, %v6766_v40  ;;  %v2762_v51 = vmul.f32 %v5253_v36, %v6766_v40  ;;  %v2259_v13 = vmul.f32 %v5423_v56, %v6767_v18  ;;  %v3281_v45 = vld [vmem:[%s6570_s0 + $0x20] ss:$0 sm:$0xff]  ;;  %v6768_v48 = vld [vmem:[#allocation24_spill] sm:$0xff] }
 0x262   :  { %3155 = vst.msk [vmem:[%s6571_s2 + $0x610] sm:$0xff] %vm2443_vm0, %v2894_v44  ;;  %1931 = vperm.xlu2 %3220, %v369_v62   ;;  %v2772_v37 = vmul.f32 %v5418_v63, %v6767_v18  ;;  %v2248_v44 = vmul.f32 %v5183_v53, %v6768_v48  ;;  %v375_v50 = vld [vmem:[%s6569_s1 + $0x760] sm:$0xff] }
 0x263   :  { %2500 = vst.msk [vmem:[%s6571_s2 + $0x1c0] sm:$0xff] %vm2443_vm0, %v2371_v22  ;;  %1926 = vperm.xlu1 %3219, %v368_v7   ;;  %1921 = vperm.xlu0 %3218, %v367_v3   ;;  %v374_v7 = vld [vmem:[%s6569_s1 + $0x758] sm:$0xff] }
 0x264   :  { %3145 = vst.msk [vmem:[%s6571_s2 + $0x5c0] sm:$0xff] %vm2443_vm0, %v2884_v59  ;;  %v1767_v30 = vpop.permute.xlu2 %1766 }
 0x265   :  { %2499 = vst.msk [vmem:[%s6571_s2 + $0x1b8] sm:$0xff] %vm2443_vm0, %v2370_v17  ;;  %v2128_v9 = vmul.f32 %v5373_v32, %v1767_v30  ;;  %v2641_v14 = vmul.f32 %v5378_v28, %v1767_v30  ;;  %v1717_v12 = vpop.permute.xlu1 %1716  ;;  %v1712_v35 = vpop.permute.xlu0 %1711  ;;  %v5493_v17 = vld [vmem:[%s6570_s0 + $0x25] ss:$0 sm:$0xff] }
 0x266   :  { %3144 = vst.msk [vmem:[%s6571_s2 + $0x5b8] sm:$0xff] %vm2443_vm0, %v2883_v23  ;;  %v2118_v33 = vmul.f32 %v3275_v54, %v1717_v12  ;;  %v2631_v41 = vmul.f32 %v3276_v47, %v1717_v12  ;;  %v2117_v21 = vmul.f32 %v3275_v54, %v1712_v35  ;;  %v2630_v49 = vmul.f32 %v3276_v47, %v1712_v35  ;;  %v5498_v23 = vld [vmem:[%s6570_s0 + $0x65] ss:$0 sm:$0xff] }
 0x267   :  { %v2384_v58 = vadd.f32 %v2256_v34, %v2128_v9  ;;  %v2897_v19 = vsub.f32 %v2641_v14, %v2769_v60  ;;  %v2262_v34 = vmul.f32 %v5498_v23, %v6770_v52  ;;  %v2775_v60 = vmul.f32 %v5493_v17, %v6770_v52  ;;  %v6776_v52 = vld [vmem:[#allocation46_spill] sm:$0xff] }
 0x268   :  { %v2374_v5 = vadd.f32 %v2246_v24, %v2118_v33  ;;  %v2887_v26 = vsub.f32 %v2631_v41, %v2759_v8  ;;  %v2373_v15 = vadd.f32 %v2245_v16, %v2117_v21  ;;  %v2886_v2 = vsub.f32 %v2630_v49, %v2758_v25 }
 0x269   :  { %2513 = vst.msk [vmem:[%s6571_s2 + $0x228] sm:$0xff] %vm2443_vm0, %v2384_v58  ;;  %v2765_v8 = vmul.f32 %v3281_v45, %v6769_v43  ;;  %v2764_v25 = vmul.f32 %v3281_v45, %v6771_v1 }
 0x26a   :  { %3158 = vst.msk [vmem:[%s6571_s2 + $0x628] sm:$0xff] %vm2443_vm0, %v2897_v19  ;;  %1946 = vperm.xlu2 %3220, %v372_v6   ;;  %v378_v6 = vld [vmem:[%s6569_s1 + $0x778] sm:$0xff] }
 0x26b   :  { %2503 = vst.msk [vmem:[%s6571_s2 + $0x1d8] sm:$0xff] %vm2443_vm0, %v2374_v5  ;;  %1941 = vperm.xlu1 %3219, %v371_v39   ;;  %1936 = vperm.xlu0 %3218, %v370_v29   ;;  %v377_v39 = vld [vmem:[%s6569_s1 + $0x770] sm:$0xff]  ;;  %v376_v29 = vld [vmem:[%s6569_s1 + $0x768] sm:$0xff] }
 0x26c   :  { %3148 = vst.msk [vmem:[%s6571_s2 + $0x5d8] sm:$0xff] %vm2443_vm0, %v2887_v26  ;;  %v1782_v27 = vpop.permute.xlu2 %1781 }
 0x26d   :  { %2502 = vst.msk [vmem:[%s6571_s2 + $0x1d0] sm:$0xff] %vm2443_vm0, %v2373_v15  ;;  %v2131_v61 = vmul.f32 %v5418_v63, %v1782_v27  ;;  %v2644_v38 = vmul.f32 %v5423_v56, %v1782_v27  ;;  %v1732_v11 = vpop.permute.xlu1 %1731  ;;  %v1727_v57 = vpop.permute.xlu0 %1726  ;;  %v5538_v15 = vld [vmem:[%s6570_s0 + $0x27] ss:$0 sm:$0xff] }
 0x26e   :  { %3147 = vst.msk [vmem:[%s6571_s2 + $0x5d0] sm:$0xff] %vm2443_vm0, %v2886_v2  ;;  %v2121_v31 = vmul.f32 %v5253_v36, %v1732_v11  ;;  %v2634_v20 = vmul.f32 %v5258_v10, %v1732_v11  ;;  %v2120_v54 = vmul.f32 %v5178_v0, %v1727_v57  ;;  %v2633_v55 = vmul.f32 %v5183_v53, %v1727_v57  ;;  %v3282_v36 = vld [vmem:[%s6570_s0 + $0x60] ss:$0 sm:$0xff]  ;;  %v373_v53 = vld [vmem:[%s6569_s1 + $0x750] sm:$0xff]  ;;  %v5543_v2 = vld [vmem:[%s6570_s0 + $0x67] ss:$0 sm:$0xff] }
 0x26f   :  { %v2387_v62 = vadd.f32 %v2259_v13, %v2131_v61  ;;  %v2900_v47 = vsub.f32 %v2644_v38, %v2772_v37  ;;  %v2761_v10 = vmul.f32 %v5178_v0, %v6768_v48  ;;  %v2252_v24 = vmul.f32 %v3282_v36, %v6769_v43  ;;  %v6773_v37 = vld [vmem:[#allocation43_spill] sm:$0xff] }
 0x270   :  { %v2377_v22 = vadd.f32 %v2249_v4, %v2121_v31  ;;  %v2890_v59 = vsub.f32 %v2634_v20, %v2762_v51  ;;  %v2376_v3 = vadd.f32 %v2248_v44, %v2120_v54  ;;  %v2251_v16 = vmul.f32 %v3282_v36, %v6771_v1  ;;  %v6772_v51 = vld [vmem:[#allocation20_spill] sm:$0xff]  ;;  %v3287_v44 = vld [vmem:[%s6570_s0 + $0x23] ss:$0 sm:$0xff]  ;;  %v6775_v43 = vld [vmem:[#allocation23_spill] sm:$0xff] }
 0x271   :  { %2516 = vst.msk [vmem:[%s6571_s2 + $0x240] sm:$0xff] %vm2443_vm0, %v2387_v62  ;;  %v2889_v0 = vsub.f32 %v2633_v55, %v2761_v10  ;;  %v2255_v27 = vmul.f32 %v5378_v28, %v6772_v51  ;;  %v2768_v18 = vmul.f32 %v5373_v32, %v6772_v51  ;;  %v2265_v61 = vmul.f32 %v5543_v2, %v6773_v37  ;;  %v6774_v62 = vld [vmem:[#allocation30_spill] sm:$0xff]  ;;  %v381_v10 = vld [vmem:[%s6569_s1 + $0x790] sm:$0xff]  ;;  %v6777_v1 = vld [vmem:[#allocation33_spill] sm:$0xff] }
 0x272   :  { %3161 = vst.msk [vmem:[%s6571_s2 + $0x640] sm:$0xff] %vm2443_vm0, %v2900_v47  ;;  %1961 = vperm.xlu2 %3220, %v375_v50   ;;  %v2778_v38 = vmul.f32 %v5538_v15, %v6773_v37  ;;  %v2254_v47 = vmul.f32 %v5303_v46, %v6774_v62 }
 0x273   :  { %2506 = vst.msk [vmem:[%s6571_s2 + $0x1f0] sm:$0xff] %vm2443_vm0, %v2377_v22  ;;  %1956 = vperm.xlu1 %3219, %v374_v7   ;;  %1951 = vperm.xlu0 %3218, %v373_v53   ;;  %v380_v7 = vld [vmem:[%s6569_s1 + $0x788] sm:$0xff] }
 0x274   :  { %3151 = vst.msk [vmem:[%s6571_s2 + $0x5f0] sm:$0xff] %vm2443_vm0, %v2890_v59  ;;  %v1797_v30 = vpop.permute.xlu2 %1796 }
 0x275   :  { %2505 = vst.msk [vmem:[%s6571_s2 + $0x1e8] sm:$0xff] %vm2443_vm0, %v2376_v3  ;;  %v2134_v9 = vmul.f32 %v5493_v17, %v1797_v30  ;;  %v2647_v14 = vmul.f32 %v5498_v23, %v1797_v30  ;;  %v1747_v12 = vpop.permute.xlu1 %1746  ;;  %v1742_v35 = vpop.permute.xlu0 %1741  ;;  %v5613_v3 = vld [vmem:[%s6570_s0 + $0x28] ss:$0 sm:$0xff] }
 0x276   :  { %3150 = vst.msk [vmem:[%s6571_s2 + $0x5e8] sm:$0xff] %vm2443_vm0, %v2889_v0  ;;  %v2124_v33 = vmul.f32 %v3281_v45, %v1747_v12  ;;  %v2637_v41 = vmul.f32 %v3282_v36, %v1747_v12  ;;  %v2123_v21 = vmul.f32 %v3281_v45, %v1742_v35  ;;  %v2636_v49 = vmul.f32 %v3282_v36, %v1742_v35  ;;  %v5618_v0 = vld [vmem:[%s6570_s0 + $0x68] ss:$0 sm:$0xff] }
 0x277   :  { %v2390_v58 = vadd.f32 %v2262_v34, %v2134_v9  ;;  %v2903_v19 = vsub.f32 %v2647_v14, %v2775_v60  ;;  %v2268_v34 = vmul.f32 %v5618_v0, %v6776_v52  ;;  %v2781_v60 = vmul.f32 %v5613_v3, %v6776_v52  ;;  %v6782_v52 = vld [vmem:[#allocation52_spill] sm:$0xff] }
 0x278   :  { %v2380_v5 = vadd.f32 %v2252_v24, %v2124_v33  ;;  %v2893_v26 = vsub.f32 %v2637_v41, %v2765_v8  ;;  %v2379_v40 = vadd.f32 %v2251_v16, %v2123_v21  ;;  %v2892_v4 = vsub.f32 %v2636_v49, %v2764_v25 }
 0x279   :  { %2519 = vst.msk [vmem:[%s6571_s2 + $0x258] sm:$0xff] %vm2443_vm0, %v2390_v58  ;;  %v2771_v8 = vmul.f32 %v3287_v44, %v6775_v43  ;;  %v2770_v25 = vmul.f32 %v3287_v44, %v6777_v1 }
 0x27a   :  { %3164 = vst.msk [vmem:[%s6571_s2 + $0x658] sm:$0xff] %vm2443_vm0, %v2903_v19  ;;  %1976 = vperm.xlu2 %3220, %v378_v6   ;;  %v384_v6 = vld [vmem:[%s6569_s1 + $0x7a8] sm:$0xff] }
 0x27b   :  { %2509 = vst.msk [vmem:[%s6571_s2 + $0x208] sm:$0xff] %vm2443_vm0, %v2380_v5  ;;  %1971 = vperm.xlu1 %3219, %v377_v39   ;;  %1966 = vperm.xlu0 %3218, %v376_v29   ;;  %v383_v39 = vld [vmem:[%s6569_s1 + $0x7a0] sm:$0xff]  ;;  %v382_v29 = vld [vmem:[%s6569_s1 + $0x798] sm:$0xff] }
 0x27c   :  { %3154 = vst.msk [vmem:[%s6571_s2 + $0x608] sm:$0xff] %vm2443_vm0, %v2893_v26  ;;  %v1812_v13 = vpop.permute.xlu2 %1811 }
 0x27d   :  { %2508 = vst.msk [vmem:[%s6571_s2 + $0x200] sm:$0xff] %vm2443_vm0, %v2379_v40  ;;  %v2137_v11 = vmul.f32 %v5538_v15, %v1812_v13  ;;  %v2650_v57 = vmul.f32 %v5543_v2, %v1812_v13  ;;  %v1762_v31 = vpop.permute.xlu1 %1761  ;;  %v1757_v20 = vpop.permute.xlu0 %1756  ;;  %v5658_v40 = vld [vmem:[%s6570_s0 + $0x2a] ss:$0 sm:$0xff] }
 0x27e   :  { %3153 = vst.msk [vmem:[%s6571_s2 + $0x600] sm:$0xff] %vm2443_vm0, %v2892_v4  ;;  %v2127_v54 = vmul.f32 %v5373_v32, %v1762_v31  ;;  %v2640_v55 = vmul.f32 %v5378_v28, %v1762_v31  ;;  %v2126_v45 = vmul.f32 %v5298_v42, %v1757_v20  ;;  %v2639_v48 = vmul.f32 %v5303_v46, %v1757_v20  ;;  %v3288_v32 = vld [vmem:[%s6570_s0 + $0x63] ss:$0 sm:$0xff]  ;;  %v5663_v4 = vld [vmem:[%s6570_s0 + $0x6a] ss:$0 sm:$0xff] }
 0x27f   :  { %v2393_v50 = vadd.f32 %v2265_v61, %v2137_v11  ;;  %v2906_v36 = vsub.f32 %v2650_v57, %v2778_v38  ;;  %v2767_v28 = vmul.f32 %v5298_v42, %v6774_v62  ;;  %v379_v46 = vld [vmem:[%s6569_s1 + $0x780] sm:$0xff]  ;;  %v2258_v24 = vmul.f32 %v3288_v32, %v6775_v43  ;;  %v6779_v38 = vld [vmem:[#allocation49_spill] sm:$0xff] }
 0x280   :  { %v2383_v22 = vadd.f32 %v2255_v27, %v2127_v54  ;;  %v2896_v59 = vsub.f32 %v2640_v55, %v2768_v18  ;;  %v2382_v53 = vadd.f32 %v2254_v47, %v2126_v45  ;;  %v2257_v16 = vmul.f32 %v3288_v32, %v6777_v1  ;;  %v6778_v18 = vld [vmem:[#allocation26_spill] sm:$0xff]  ;;  %v6781_v43 = vld [vmem:[#allocation29_spill] sm:$0xff]  ;;  %v6783_v1 = vld [vmem:[#allocation39_spill] sm:$0xff] }
 0x281   :  { %2522 = vst.msk [vmem:[%s6571_s2 + $0x270] sm:$0xff] %vm2443_vm0, %v2393_v50  ;;  %v2895_v42 = vsub.f32 %v2639_v48, %v2767_v28  ;;  %v2261_v13 = vmul.f32 %v5498_v23, %v6778_v18  ;;  %v2774_v37 = vmul.f32 %v5493_v17, %v6778_v18  ;;  %v2271_v11 = vmul.f32 %v5663_v4, %v6779_v38  ;;  %v3293_v47 = vld [vmem:[%s6570_s0 + $0x26] ss:$0 sm:$0xff]  ;;  %v6780_v50 = vld [vmem:[#allocation36_spill] sm:$0xff] }
 0x282   :  { %3167 = vst.msk [vmem:[%s6571_s2 + $0x670] sm:$0xff] %vm2443_vm0, %v2906_v36  ;;  %1991 = vperm.xlu2 %3220, %v381_v10   ;;  %v2784_v57 = vmul.f32 %v5658_v40, %v6779_v38  ;;  %v2260_v36 = vmul.f32 %v5423_v56, %v6780_v50  ;;  %v387_v28 = vld [vmem:[%s6569_s1 + $0x7c0] sm:$0xff] }
 0x283   :  { %2512 = vst.msk [vmem:[%s6571_s2 + $0x220] sm:$0xff] %vm2443_vm0, %v2383_v22  ;;  %1986 = vperm.xlu1 %3219, %v380_v7   ;;  %1981 = vperm.xlu0 %3218, %v379_v46   ;;  %v386_v7 = vld [vmem:[%s6569_s1 + $0x7b8] sm:$0xff] }
 0x284   :  { %3157 = vst.msk [vmem:[%s6571_s2 + $0x620] sm:$0xff] %vm2443_vm0, %v2896_v59  ;;  %v1827_v30 = vpop.permute.xlu2 %1826 }
 0x285   :  { %2511 = vst.msk [vmem:[%s6571_s2 + $0x218] sm:$0xff] %vm2443_vm0, %v2382_v53  ;;  %v2140_v9 = vmul.f32 %v5613_v3, %v1827_v30  ;;  %v2653_v14 = vmul.f32 %v5618_v0, %v1827_v30  ;;  %v1777_v12 = vpop.permute.xlu1 %1776  ;;  %v1772_v35 = vpop.permute.xlu0 %1771  ;;  %v5733_v53 = vld [vmem:[%s6570_s0 + $0x2b] ss:$0 sm:$0xff] }
 0x286   :  { %3156 = vst.msk [vmem:[%s6571_s2 + $0x618] sm:$0xff] %vm2443_vm0, %v2895_v42  ;;  %v2130_v33 = vmul.f32 %v3287_v44, %v1777_v12  ;;  %v2643_v41 = vmul.f32 %v3288_v32, %v1777_v12  ;;  %v2129_v21 = vmul.f32 %v3287_v44, %v1772_v35  ;;  %v2642_v49 = vmul.f32 %v3288_v32, %v1772_v35  ;;  %v5738_v42 = vld [vmem:[%s6570_s0 + $0x6b] ss:$0 sm:$0xff] }
 0x287   :  { %v2396_v58 = vadd.f32 %v2268_v34, %v2140_v9  ;;  %v2909_v19 = vsub.f32 %v2653_v14, %v2781_v60  ;;  %v2274_v34 = vmul.f32 %v5738_v42, %v6782_v52  ;;  %v2787_v60 = vmul.f32 %v5733_v53, %v6782_v52  ;;  %v6788_v52 = vld [vmem:[#allocation58_spill] sm:$0xff] }
 0x288   :  { %v2386_v5 = vadd.f32 %v2258_v24, %v2130_v33  ;;  %v2899_v26 = vsub.f32 %v2643_v41, %v2771_v8  ;;  %v2385_v51 = vadd.f32 %v2257_v16, %v2129_v21  ;;  %v2898_v27 = vsub.f32 %v2642_v49, %v2770_v25 }
 0x289   :  { %2525 = vst.msk [vmem:[%s6571_s2 + $0x288] sm:$0xff] %vm2443_vm0, %v2396_v58  ;;  %v2777_v8 = vmul.f32 %v3293_v47, %v6781_v43  ;;  %v2776_v25 = vmul.f32 %v3293_v47, %v6783_v1 }
 0x28a   :  { %3170 = vst.msk [vmem:[%s6571_s2 + $0x688] sm:$0xff] %vm2443_vm0, %v2909_v19  ;;  %2006 = vperm.xlu2 %3220, %v384_v6   ;;  %v390_v6 = vld [vmem:[%s6569_s1 + $0x7d8] sm:$0xff] }
 0x28b   :  { %2515 = vst.msk [vmem:[%s6571_s2 + $0x238] sm:$0xff] %vm2443_vm0, %v2386_v5  ;;  %2001 = vperm.xlu1 %3219, %v383_v39   ;;  %1996 = vperm.xlu0 %3218, %v382_v29   ;;  %v389_v39 = vld [vmem:[%s6569_s1 + $0x7d0] sm:$0xff]  ;;  %v388_v29 = vld [vmem:[%s6569_s1 + $0x7c8] sm:$0xff] }
 0x28c   :  { %3160 = vst.msk [vmem:[%s6571_s2 + $0x638] sm:$0xff] %vm2443_vm0, %v2899_v26  ;;  %v1842_v61 = vpop.permute.xlu2 %1841 }
 0x28d   :  { %2514 = vst.msk [vmem:[%s6571_s2 + $0x230] sm:$0xff] %vm2443_vm0, %v2385_v51  ;;  %v2143_v31 = vmul.f32 %v5658_v40, %v1842_v61  ;;  %v2656_v20 = vmul.f32 %v5663_v4, %v1842_v61  ;;  %v1792_v54 = vpop.permute.xlu1 %1791  ;;  %v1787_v55 = vpop.permute.xlu0 %1786  ;;  %v5778_v51 = vld [vmem:[%s6570_s0 + $0x2d] ss:$0 sm:$0xff] }
 0x28e   :  { %3159 = vst.msk [vmem:[%s6571_s2 + $0x630] sm:$0xff] %vm2443_vm0, %v2898_v27  ;;  %v2133_v45 = vmul.f32 %v5493_v17, %v1792_v54  ;;  %v2646_v48 = vmul.f32 %v5498_v23, %v1792_v54  ;;  %v2132_v44 = vmul.f32 %v5418_v63, %v1787_v55  ;;  %v2645_v62 = vmul.f32 %v5423_v56, %v1787_v55  ;;  %v3294_v17 = vld [vmem:[%s6570_s0 + $0x66] ss:$0 sm:$0xff]  ;;  %v385_v56 = vld [vmem:[%s6569_s1 + $0x7b0] sm:$0xff]  ;;  %v5783_v27 = vld [vmem:[%s6570_s0 + $0x6d] ss:$0 sm:$0xff] }
 0x28f   :  { %v2399_v10 = vadd.f32 %v2271_v11, %v2143_v31  ;;  %v2912_v32 = vsub.f32 %v2656_v20, %v2784_v57  ;;  %v2773_v23 = vmul.f32 %v5418_v63, %v6780_v50  ;;  %v2264_v24 = vmul.f32 %v3294_v17, %v6781_v43  ;;  %v6785_v57 = vld [vmem:[#allocation55_spill] sm:$0xff] }
 0x290   :  { %v2389_v22 = vadd.f32 %v2261_v13, %v2133_v45  ;;  %v2902_v59 = vsub.f32 %v2646_v48, %v2774_v37  ;;  %v2388_v46 = vadd.f32 %v2260_v36, %v2132_v44  ;;  %v2263_v16 = vmul.f32 %v3294_v17, %v6783_v1  ;;  %v6784_v37 = vld [vmem:[#allocation32_spill] sm:$0xff]  ;;  %v3299_v36 = vld [vmem:[%s6570_s0 + $0x29] ss:$0 sm:$0xff]  ;;  %v6789_v1 = vld [vmem:[#allocation45_spill] sm:$0xff] }
 0x291   :  { %2528 = vst.msk [vmem:[%s6571_s2 + $0x2a0] sm:$0xff] %vm2443_vm0, %v2399_v10  ;;  %v2901_v63 = vsub.f32 %v2645_v62, %v2773_v23  ;;  %v2267_v61 = vmul.f32 %v5618_v0, %v6784_v37  ;;  %v2780_v38 = vmul.f32 %v5613_v3, %v6784_v37  ;;  %v2277_v31 = vmul.f32 %v5783_v27, %v6785_v57  ;;  %v6786_v10 = vld [vmem:[#allocation42_spill] sm:$0xff]  ;;  %v393_v23 = vld [vmem:[%s6569_s1 + $0x7f0] sm:$0xff]  ;;  %v6787_v43 = vld [vmem:[#allocation35_spill] sm:$0xff] }
 0x292   :  { %3173 = vst.msk [vmem:[%s6571_s2 + $0x6a0] sm:$0xff] %vm2443_vm0, %v2912_v32  ;;  %2021 = vperm.xlu2 %3220, %v387_v28   ;;  %v2790_v20 = vmul.f32 %v5778_v51, %v6785_v57  ;;  %v2266_v32 = vmul.f32 %v5543_v2, %v6786_v10  ;;  %v6790_v37 = vld [vmem:[#allocation38_spill] sm:$0xff]  ;;  %v6791_v57 = vld [vmem:[#allocation61_spill] sm:$0xff] }
 0x293   :  { %2518 = vst.msk [vmem:[%s6571_s2 + $0x250] sm:$0xff] %vm2443_vm0, %v2389_v22  ;;  %2016 = vperm.xlu1 %3219, %v386_v7   ;;  %2011 = vperm.xlu0 %3218, %v385_v56   ;;  %v392_v7 = vld [vmem:[%s6569_s1 + $0x7e8] sm:$0xff] }
 0x294   :  { %3163 = vst.msk [vmem:[%s6571_s2 + $0x650] sm:$0xff] %vm2443_vm0, %v2902_v59  ;;  %v1857_v30 = vpop.permute.xlu2 %1856 }
 0x295   :  { %2517 = vst.msk [vmem:[%s6571_s2 + $0x248] sm:$0xff] %vm2443_vm0, %v2388_v46  ;;  %v2146_v9 = vmul.f32 %v5733_v53, %v1857_v30  ;;  %v2659_v14 = vmul.f32 %v5738_v42, %v1857_v30  ;;  %v1807_v12 = vpop.permute.xlu1 %1806  ;;  %v1802_v35 = vpop.permute.xlu0 %1801  ;;  %v5853_v46 = vld [vmem:[%s6570_s0 + $0x2e] ss:$0 sm:$0xff] }
 0x296   :  { %3162 = vst.msk [vmem:[%s6571_s2 + $0x648] sm:$0xff] %vm2443_vm0, %v2901_v63  ;;  %v2136_v33 = vmul.f32 %v3293_v47, %v1807_v12  ;;  %v2649_v41 = vmul.f32 %v3294_v17, %v1807_v12  ;;  %v2135_v21 = vmul.f32 %v3293_v47, %v1802_v35  ;;  %v2648_v49 = vmul.f32 %v3294_v17, %v1802_v35  ;;  %v5858_v63 = vld [vmem:[%s6570_s0 + $0x6e] ss:$0 sm:$0xff] }
 0x297   :  { %v2402_v58 = vadd.f32 %v2274_v34, %v2146_v9  ;;  %v2915_v19 = vsub.f32 %v2659_v14, %v2787_v60  ;;  %v2280_v34 = vmul.f32 %v5858_v63, %v6788_v52  ;;  %v2793_v60 = vmul.f32 %v5853_v46, %v6788_v52 }
 0x298   :  { %v2392_v5 = vadd.f32 %v2264_v24, %v2136_v33  ;;  %v2905_v26 = vsub.f32 %v2649_v41, %v2777_v8  ;;  %v2391_v18 = vadd.f32 %v2263_v16, %v2135_v21  ;;  %v2904_v13 = vsub.f32 %v2648_v49, %v2776_v25 }
 0x299   :  { %2531 = vst.msk [vmem:[%s6571_s2 + $0x2b8] sm:$0xff] %vm2443_vm0, %v2402_v58  ;;  %v2783_v8 = vmul.f32 %v3299_v36, %v6787_v43 }
 0x29a   :  { %3176 = vst.msk [vmem:[%s6571_s2 + $0x6b8] sm:$0xff] %vm2443_vm0, %v2915_v19  ;;  %2036 = vperm.xlu2 %3220, %v390_v6   ;;  %v2782_v6 = vmul.f32 %v3299_v36, %v6789_v1 }
 0x29b   :  { %2521 = vst.msk [vmem:[%s6571_s2 + $0x268] sm:$0xff] %vm2443_vm0, %v2392_v5  ;;  %2031 = vperm.xlu1 %3219, %v389_v39   ;;  %2026 = vperm.xlu0 %3218, %v388_v29   ;;  %v5892_v39 = vld [vmem:[%s6570_s0 + $0x30] ss:$0 sm:$0xff] }
 0x29c   :  { %3166 = vst.msk [vmem:[%s6571_s2 + $0x668] sm:$0xff] %vm2443_vm0, %v2905_v26  ;;  %v1872_v11 = vpop.permute.xlu2 %1871  ;;  %v394_v26 = vld [vmem:[%s6569_s1 + $0x7f8] sm:$0xff]  ;;  %v5897_v29 = vld [vmem:[%s6570_s0 + $0x70] ss:$0 sm:$0xff] }
 0x29d   :  { %2520 = vst.msk [vmem:[%s6571_s2 + $0x260] sm:$0xff] %vm2443_vm0, %v2391_v18  ;;  %v2149_v54 = vmul.f32 %v5778_v51, %v1872_v11  ;;  %v2662_v55 = vmul.f32 %v5783_v27, %v1872_v11  ;;  %v1822_v45 = vpop.permute.xlu1 %1821  ;;  %v1817_v48 = vpop.permute.xlu0 %1816 }
 0x29e   :  { %3165 = vst.msk [vmem:[%s6571_s2 + $0x660] sm:$0xff] %vm2443_vm0, %v2904_v13  ;;  %v2139_v44 = vmul.f32 %v5613_v3, %v1822_v45  ;;  %v2652_v62 = vmul.f32 %v5618_v0, %v1822_v45  ;;  %v2138_v47 = vmul.f32 %v5538_v15, %v1817_v48  ;;  %v2651_v50 = vmul.f32 %v5543_v2, %v1817_v48  ;;  %v3300_v3 = vld [vmem:[%s6570_s0 + $0x69] ss:$0 sm:$0xff]  ;;  %v391_v2 = vld [vmem:[%s6569_s1 + $0x7e0] sm:$0xff] }
 0x29f   :  { %v2405_v28 = vadd.f32 %v2277_v31, %v2149_v54  ;;  %v2918_v17 = vsub.f32 %v2662_v55, %v2790_v20  ;;  %v2779_v0 = vmul.f32 %v5538_v15, %v6786_v10  ;;  %v2270_v24 = vmul.f32 %v3300_v3, %v6787_v43 }
 0x2a0   :  { %v2395_v22 = vadd.f32 %v2267_v61, %v2139_v44  ;;  %v2908_v59 = vsub.f32 %v2652_v62, %v2780_v38  ;;  %v2394_v56 = vadd.f32 %v2266_v32, %v2138_v47  ;;  %v2269_v16 = vmul.f32 %v3300_v3, %v6789_v1 }
 0x2a1   :  { %2534 = vst.msk [vmem:[%s6571_s2 + $0x2d0] sm:$0xff] %vm2443_vm0, %v2405_v28  ;;  %v2907_v15 = vsub.f32 %v2651_v50, %v2779_v0  ;;  %v2273_v61 = vmul.f32 %v5738_v42, %v6790_v37  ;;  %v2786_v38 = vmul.f32 %v5733_v53, %v6790_v37  ;;  %v2283_v31 = vmul.f32 %v5897_v29, %v6791_v57  ;;  %v6797_v37 = vld [vmem:[#allocation67_spill] sm:$0xff] }
 0x2a2   :  { %3179 = vst.msk [vmem:[%s6571_s2 + $0x6d0] sm:$0xff] %vm2443_vm0, %v2918_v17  ;;  %2051 = vperm.xlu2 %3220, %v393_v23   ;;  %v2796_v20 = vmul.f32 %v5892_v39, %v6791_v57  ;;  %v3305_v17 = vld [vmem:[%s6570_s0 + $0x2c] ss:$0 sm:$0xff] }
 0x2a3   :  { %2524 = vst.msk [vmem:[%s6571_s2 + $0x280] sm:$0xff] %vm2443_vm0, %v2395_v22  ;;  %2046 = vperm.xlu1 %3219, %v392_v7   ;;  %2041 = vperm.xlu0 %3218, %v391_v2   ;;  %v3306_v23 = vld [vmem:[%s6570_s0 + $0x6c] ss:$0 sm:$0xff]  ;;  %v5958_v22 = vld [vmem:[%s6570_s0 + $0x31] ss:$0 sm:$0xff] }
 0x2a4   :  { %3169 = vst.msk [vmem:[%s6571_s2 + $0x680] sm:$0xff] %vm2443_vm0, %v2908_v59  ;;  %v1887_v30 = vpop.permute.xlu2 %1886  ;;  %v6793_v59 = vld [vmem:[#allocation41_spill] sm:$0xff] }
 0x2a5   :  { %2523 = vst.msk [vmem:[%s6571_s2 + $0x278] sm:$0xff] %vm2443_vm0, %v2394_v56  ;;  %v2152_v9 = vmul.f32 %v5853_v46, %v1887_v30  ;;  %v2665_v14 = vmul.f32 %v5858_v63, %v1887_v30  ;;  %v1837_v12 = vpop.permute.xlu1 %1836  ;;  %v1832_v35 = vpop.permute.xlu0 %1831  ;;  %v2276_v7 = vmul.f32 %v3306_v23, %v6793_v59  ;;  %v2789_v2 = vmul.f32 %v3305_v17, %v6793_v59 }
 0x2a6   :  { %3168 = vst.msk [vmem:[%s6571_s2 + $0x678] sm:$0xff] %vm2443_vm0, %v2907_v15  ;;  %v2142_v33 = vmul.f32 %v3299_v36, %v1837_v12  ;;  %v2655_v41 = vmul.f32 %v3300_v3, %v1837_v12  ;;  %v2141_v21 = vmul.f32 %v3299_v36, %v1832_v35  ;;  %v2654_v49 = vmul.f32 %v3300_v3, %v1832_v35  ;;  %v6792_v36 = vld [vmem:[#allocation48_spill] sm:$0xff]  ;;  %v6795_v35 = vld [vmem:[#allocation51_spill] sm:$0xff] }
 0x2a7   :  { %v2408_v58 = vadd.f32 %v2280_v34, %v2152_v9  ;;  %v2921_v19 = vsub.f32 %v2665_v14, %v2793_v60  ;;  %v2272_v10 = vmul.f32 %v5663_v4, %v6792_v36  ;;  %v6794_v15 = vld [vmem:[#allocation64_spill] sm:$0xff] }
 0x2a8   :  { %v2398_v25 = vadd.f32 %v2270_v24, %v2142_v33  ;;  %v2911_v5 = vsub.f32 %v2655_v41, %v2783_v8  ;;  %v2397_v18 = vadd.f32 %v2269_v16, %v2141_v21  ;;  %v2910_v13 = vsub.f32 %v2654_v49, %v2782_v6 }
 0x2a9   :  { %2537 = vst.msk [vmem:[%s6571_s2 + $0x2e8] sm:$0xff] %vm2443_vm0, %v2408_v58  ;;  %v2799_v24 = vmul.f32 %v5958_v22, %v6794_v15  ;;  %v2275_v33 = vmul.f32 %v3306_v23, %v6795_v35  ;;  %v2788_v49 = vmul.f32 %v3305_v17, %v6795_v35  ;;  %v5994_v58 = vld [vmem:[%s6570_s0 + $0x33] ss:$0 sm:$0xff] }
 0x2aa   :  { %3182 = vst.msk [vmem:[%s6571_s2 + $0x6e8] sm:$0xff] %vm2443_vm0, %v2921_v19  ;;  %v5999_v19 = vld [vmem:[%s6570_s0 + $0x73] ss:$0 sm:$0xff] }
 0x2ab   :  { %2527 = vst.msk [vmem:[%s6571_s2 + $0x298] sm:$0xff] %vm2443_vm0, %v2398_v25  ;;  %2056 = vperm.xlu0 %3218, %v394_v26  }
 0x2ac   :  { %3172 = vst.msk [vmem:[%s6571_s2 + $0x698] sm:$0xff] %vm2443_vm0, %v2911_v5  ;;  %v1902_v11 = vpop.permute.xlu2 %1901  ;;  %v6796_v5 = vld [vmem:[#allocation44_spill] sm:$0xff] }
 0x2ad   :  { %2526 = vst.msk [vmem:[%s6571_s2 + $0x290] sm:$0xff] %vm2443_vm0, %v2397_v18  ;;  %v2155_v54 = vmul.f32 %v5892_v39, %v1902_v11  ;;  %v2668_v55 = vmul.f32 %v5897_v29, %v1902_v11  ;;  %v1852_v45 = vpop.permute.xlu1 %1851  ;;  %v1847_v48 = vpop.permute.xlu0 %1846  ;;  %v2279_v26 = vmul.f32 %v5858_v63, %v6796_v5  ;;  %v2792_v18 = vmul.f32 %v5853_v46, %v6796_v5  ;;  %v6803_v5 = vld [vmem:[#allocation73_spill] sm:$0xff] }
 0x2ae   :  { %3171 = vst.msk [vmem:[%s6571_s2 + $0x690] sm:$0xff] %vm2443_vm0, %v2910_v13  ;;  %v2145_v44 = vmul.f32 %v5733_v53, %v1852_v45  ;;  %v2658_v62 = vmul.f32 %v5738_v42, %v1852_v45  ;;  %v2144_v47 = vmul.f32 %v5658_v40, %v1847_v48  ;;  %v2657_v50 = vmul.f32 %v5663_v4, %v1847_v48 }
 0x2af   :  { %v2411_v32 = vadd.f32 %v2283_v31, %v2155_v54  ;;  %v2924_v28 = vsub.f32 %v2668_v55, %v2796_v20  ;;  %v2785_v53 = vmul.f32 %v5658_v40, %v6792_v36  ;;  %v5963_v40 = vld [vmem:[%s6570_s0 + $0x71] ss:$0 sm:$0xff]  ;;  %v3311_v36 = vld [vmem:[%s6570_s0 + $0x2f] ss:$0 sm:$0xff] }
 0x2b0   :  { %v2401_v42 = vadd.f32 %v2273_v61, %v2145_v44  ;;  %v2914_v3 = vsub.f32 %v2658_v62, %v2786_v38  ;;  %v2400_v4 = vadd.f32 %v2272_v10, %v2144_v47  ;;  %v2286_v43 = vmul.f32 %v5963_v40, %v6794_v15  ;;  %v6798_v44 = vld [vmem:[#allocation54_spill] sm:$0xff]  ;;  %v3312_v10 = vld [vmem:[%s6570_s0 + $0x6f] ss:$0 sm:$0xff] }
 0x2b1   :  { %2540 = vst.msk [vmem:[%s6571_s2 + $0x300] sm:$0xff] %vm2443_vm0, %v2411_v32  ;;  %v2913_v0 = vsub.f32 %v2657_v50, %v2785_v53  ;;  %v2289_v61 = vmul.f32 %v5999_v19, %v6797_v37  ;;  %v2802_v38 = vmul.f32 %v5994_v58, %v6797_v37  ;;  %v2278_v62 = vmul.f32 %v5783_v27, %v6798_v44 }
 0x2b2   :  { %3185 = vst.msk [vmem:[%s6571_s2 + $0x700] sm:$0xff] %vm2443_vm0, %v2924_v28 }
 0x2b3   :  { %2530 = vst.msk [vmem:[%s6571_s2 + $0x2b0] sm:$0xff] %vm2443_vm0, %v2401_v42 }
 0x2b4   :  { %3175 = vst.msk [vmem:[%s6571_s2 + $0x6b0] sm:$0xff] %vm2443_vm0, %v2914_v3  ;;  %v1917_v56 = vpop.permute.xlu2 %1916 }
 0x2b5   :  { %2529 = vst.msk [vmem:[%s6571_s2 + $0x2a8] sm:$0xff] %vm2443_vm0, %v2400_v4  ;;  %v2158_v8 = vmul.f32 %v5958_v22, %v1917_v56  ;;  %v2671_v30 = vmul.f32 %v5963_v40, %v1917_v56  ;;  %v1867_v52 = vpop.permute.xlu1 %1866  ;;  %v1862_v34 = vpop.permute.xlu0 %1861  ;;  %v6800_v4 = vld [vmem:[#allocation70_spill] sm:$0xff] }
 0x2b6   :  { %3174 = vst.msk [vmem:[%s6571_s2 + $0x6a8] sm:$0xff] %vm2443_vm0, %v2913_v0  ;;  %v2148_v60 = vmul.f32 %v3305_v17, %v1867_v52  ;;  %v2661_v9 = vmul.f32 %v3306_v23, %v1867_v52  ;;  %v2147_v14 = vmul.f32 %v3305_v17, %v1862_v34  ;;  %v2660_v12 = vmul.f32 %v3306_v23, %v1862_v34  ;;  %v6060_v17 = vld [vmem:[%s6570_s0 + $0x34] ss:$0 sm:$0xff]  ;;  %v6799_v23 = vld [vmem:[#allocation47_spill] sm:$0xff]  ;;  %v6801_v52 = vld [vmem:[#allocation57_spill] sm:$0xff] }
 0x2b7   :  { %v2414_v41 = vadd.f32 %v2286_v43, %v2158_v8  ;;  %v2927_v21 = vsub.f32 %v2671_v30, %v2799_v24  ;;  %v2282_v53 = vmul.f32 %v3312_v10, %v6799_v23  ;;  %v2795_v42 = vmul.f32 %v3311_v36, %v6799_v23 }
 0x2b8   :  { %v2404_v1 = vadd.f32 %v2276_v7, %v2148_v60  ;;  %v2917_v16 = vsub.f32 %v2661_v9, %v2789_v2  ;;  %v2403_v6 = vadd.f32 %v2275_v33, %v2147_v14  ;;  %v2916_v25 = vsub.f32 %v2660_v12, %v2788_v49  ;;  %v6096_v33 = vld [vmem:[%s6570_s0 + $0x36] ss:$0 sm:$0xff] }
 0x2b9   :  { %2543 = vst.msk [vmem:[%s6571_s2 + $0x318] sm:$0xff] %vm2443_vm0, %v2414_v41  ;;  %v2805_v59 = vmul.f32 %v6060_v17, %v6800_v4  ;;  %v2281_v34 = vmul.f32 %v3312_v10, %v6801_v52  ;;  %v2794_v14 = vmul.f32 %v3311_v36, %v6801_v52  ;;  %v6101_v41 = vld [vmem:[%s6570_s0 + $0x76] ss:$0 sm:$0xff] }
 0x2ba   :  { %3188 = vst.msk [vmem:[%s6571_s2 + $0x718] sm:$0xff] %vm2443_vm0, %v2927_v21 }
 0x2bb   :  { %2533 = vst.msk [vmem:[%s6571_s2 + $0x2c8] sm:$0xff] %vm2443_vm0, %v2404_v1  ;;  %v6802_v1 = vld [vmem:[#allocation50_spill] sm:$0xff] }
 0x2bc   :  { %3178 = vst.msk [vmem:[%s6571_s2 + $0x6c8] sm:$0xff] %vm2443_vm0, %v2917_v16  ;;  %v1932_v13 = vpop.permute.xlu2 %1931  ;;  %v2285_v16 = vmul.f32 %v5963_v40, %v6802_v1 }
 0x2bd   :  { %2532 = vst.msk [vmem:[%s6571_s2 + $0x2c0] sm:$0xff] %vm2443_vm0, %v2403_v6  ;;  %v2161_v11 = vmul.f32 %v5994_v58, %v1932_v13  ;;  %v2674_v57 = vmul.f32 %v5999_v19, %v1932_v13  ;;  %v1882_v31 = vpop.permute.xlu1 %1881  ;;  %v1877_v20 = vpop.permute.xlu0 %1876  ;;  %v2798_v6 = vmul.f32 %v5958_v22, %v6802_v1  ;;  %v6809_v1 = vld [vmem:[#allocation79_spill] sm:$0xff] }
 0x2be   :  { %3177 = vst.msk [vmem:[%s6571_s2 + $0x6c0] sm:$0xff] %vm2443_vm0, %v2916_v25  ;;  %v2151_v54 = vmul.f32 %v5853_v46, %v1882_v31  ;;  %v2664_v55 = vmul.f32 %v5858_v63, %v1882_v31  ;;  %v2150_v45 = vmul.f32 %v5778_v51, %v1877_v20  ;;  %v2663_v48 = vmul.f32 %v5783_v27, %v1877_v20 }
 0x2bf   :  { %v2417_v47 = vadd.f32 %v2289_v61, %v2161_v11  ;;  %v2930_v50 = vsub.f32 %v2674_v57, %v2802_v38  ;;  %v2791_v46 = vmul.f32 %v5778_v51, %v6798_v44  ;;  %v6065_v51 = vld [vmem:[%s6570_s0 + $0x74] ss:$0 sm:$0xff]  ;;  %v3317_v44 = vld [vmem:[%s6570_s0 + $0x32] ss:$0 sm:$0xff] }
 0x2c0   :  { %v2407_v63 = vadd.f32 %v2279_v26, %v2151_v54  ;;  %v2920_v32 = vsub.f32 %v2664_v55, %v2792_v18  ;;  %v2406_v27 = vadd.f32 %v2278_v62, %v2150_v45  ;;  %v2292_v0 = vmul.f32 %v6065_v51, %v6800_v4  ;;  %v6804_v54 = vld [vmem:[#allocation60_spill] sm:$0xff] }
 0x2c1   :  { %2546 = vst.msk [vmem:[%s6571_s2 + $0x330] sm:$0xff] %vm2443_vm0, %v2417_v47  ;;  %v2919_v28 = vsub.f32 %v2663_v48, %v2791_v46  ;;  %v2295_v26 = vmul.f32 %v6101_v41, %v6803_v5  ;;  %v2808_v18 = vmul.f32 %v6096_v33, %v6803_v5  ;;  %v2284_v55 = vmul.f32 %v5897_v29, %v6804_v54  ;;  %v3318_v62 = vld [vmem:[%s6570_s0 + $0x72] ss:$0 sm:$0xff] }
 0x2c2   :  { %3191 = vst.msk [vmem:[%s6571_s2 + $0x730] sm:$0xff] %vm2443_vm0, %v2930_v50 }
 0x2c3   :  { %2536 = vst.msk [vmem:[%s6571_s2 + $0x2e0] sm:$0xff] %vm2443_vm0, %v2407_v63 }
 0x2c4   :  { %3181 = vst.msk [vmem:[%s6571_s2 + $0x6e0] sm:$0xff] %vm2443_vm0, %v2920_v32  ;;  %v1947_v3 = vpop.permute.xlu2 %1946 }
 0x2c5   :  { %2535 = vst.msk [vmem:[%s6571_s2 + $0x2d8] sm:$0xff] %vm2443_vm0, %v2406_v27  ;;  %v2164_v7 = vmul.f32 %v6060_v17, %v1947_v3  ;;  %v2677_v2 = vmul.f32 %v6065_v51, %v1947_v3  ;;  %v1897_v56 = vpop.permute.xlu1 %1896  ;;  %v1892_v15 = vpop.permute.xlu0 %1891  ;;  %v6806_v27 = vld [vmem:[#allocation76_spill] sm:$0xff] }
 0x2c6   :  { %3180 = vst.msk [vmem:[%s6571_s2 + $0x6d8] sm:$0xff] %vm2443_vm0, %v2919_v28  ;;  %v2154_v43 = vmul.f32 %v3311_v36, %v1897_v56  ;;  %v2667_v24 = vmul.f32 %v3312_v10, %v1897_v56  ;;  %v2153_v8 = vmul.f32 %v3311_v36, %v1892_v15  ;;  %v2666_v30 = vmul.f32 %v3312_v10, %v1892_v15  ;;  %v6162_v36 = vld [vmem:[%s6570_s0 + $0x37] ss:$0 sm:$0xff]  ;;  %v6805_v10 = vld [vmem:[#allocation53_spill] sm:$0xff]  ;;  %v6807_v56 = vld [vmem:[#allocation63_spill] sm:$0xff] }
 0x2c7   :  { %v2420_v60 = vadd.f32 %v2292_v0, %v2164_v7  ;;  %v2933_v9 = vsub.f32 %v2677_v2, %v2805_v59  ;;  %v2288_v46 = vmul.f32 %v3318_v62, %v6805_v10  ;;  %v2801_v63 = vmul.f32 %v3317_v44, %v6805_v10 }
 0x2c8   :  { %v2410_v12 = vadd.f32 %v2282_v53, %v2154_v43  ;;  %v2923_v35 = vsub.f32 %v2667_v24, %v2795_v42  ;;  %v2409_v21 = vadd.f32 %v2281_v34, %v2153_v8  ;;  %v2922_v49 = vsub.f32 %v2666_v30, %v2794_v14  ;;  %v6198_v34 = vld [vmem:[%s6570_s0 + $0x39] ss:$0 sm:$0xff] }
 0x2c9   :  { %2549 = vst.msk [vmem:[%s6571_s2 + $0x348] sm:$0xff] %vm2443_vm0, %v2420_v60  ;;  %v2811_v23 = vmul.f32 %v6162_v36, %v6806_v27  ;;  %v2287_v15 = vmul.f32 %v3318_v62, %v6807_v56  ;;  %v2800_v8 = vmul.f32 %v3317_v44, %v6807_v56  ;;  %v6203_v60 = vld [vmem:[%s6570_s0 + $0x79] ss:$0 sm:$0xff] }
 0x2ca   :  { %3194 = vst.msk [vmem:[%s6571_s2 + $0x748] sm:$0xff] %vm2443_vm0, %v2933_v9 }
 0x2cb   :  { %2539 = vst.msk [vmem:[%s6571_s2 + $0x2f8] sm:$0xff] %vm2443_vm0, %v2410_v12  ;;  %v6808_v12 = vld [vmem:[#allocation56_spill] sm:$0xff] }
 0x2cc   :  { %3184 = vst.msk [vmem:[%s6571_s2 + $0x6f8] sm:$0xff] %vm2443_vm0, %v2923_v35  ;;  %v1962_v25 = vpop.permute.xlu2 %1961  ;;  %v2291_v35 = vmul.f32 %v6065_v51, %v6808_v12 }
 0x2cd   :  { %2538 = vst.msk [vmem:[%s6571_s2 + $0x2f0] sm:$0xff] %vm2443_vm0, %v2409_v21  ;;  %v2167_v13 = vmul.f32 %v6096_v33, %v1962_v25  ;;  %v2680_v37 = vmul.f32 %v6101_v41, %v1962_v25  ;;  %v1912_v61 = vpop.permute.xlu1 %1911  ;;  %v1907_v38 = vpop.permute.xlu0 %1906  ;;  %v2804_v21 = vmul.f32 %v6060_v17, %v6808_v12  ;;  %v6815_v12 = vld [vmem:[#allocation83_spill] sm:$0xff] }
 0x2ce   :  { %3183 = vst.msk [vmem:[%s6571_s2 + $0x6f0] sm:$0xff] %vm2443_vm0, %v2922_v49  ;;  %v2157_v11 = vmul.f32 %v5958_v22, %v1912_v61  ;;  %v2670_v57 = vmul.f32 %v5963_v40, %v1912_v61  ;;  %v2156_v31 = vmul.f32 %v5892_v39, %v1907_v38  ;;  %v2669_v20 = vmul.f32 %v5897_v29, %v1907_v38 }
 0x2cf   :  { %v2423_v45 = vadd.f32 %v2295_v26, %v2167_v13  ;;  %v2936_v48 = vsub.f32 %v2680_v37, %v2808_v18  ;;  %v2797_v22 = vmul.f32 %v5892_v39, %v6804_v54  ;;  %v6167_v39 = vld [vmem:[%s6570_s0 + $0x77] ss:$0 sm:$0xff]  ;;  %v3323_v54 = vld [vmem:[%s6570_s0 + $0x35] ss:$0 sm:$0xff] }
 0x2d0   :  { %v2413_v40 = vadd.f32 %v2285_v16, %v2157_v11  ;;  %v2926_v47 = vsub.f32 %v2670_v57, %v2798_v6  ;;  %v2412_v29 = vadd.f32 %v2284_v55, %v2156_v31  ;;  %v2298_v28 = vmul.f32 %v6167_v39, %v6806_v27  ;;  %v6810_v11 = vld [vmem:[#allocation66_spill] sm:$0xff]  ;;  %v3324_v55 = vld [vmem:[%s6570_s0 + $0x75] ss:$0 sm:$0xff] }
 0x2d1   :  { %2552 = vst.msk [vmem:[%s6571_s2 + $0x360] sm:$0xff] %vm2443_vm0, %v2423_v45  ;;  %v2925_v50 = vsub.f32 %v2669_v20, %v2797_v22  ;;  %v2301_v16 = vmul.f32 %v6203_v60, %v6809_v1  ;;  %v2814_v6 = vmul.f32 %v6198_v34, %v6809_v1  ;;  %v2290_v57 = vmul.f32 %v5999_v19, %v6810_v11 }
 0x2d2   :  { %3197 = vst.msk [vmem:[%s6571_s2 + $0x760] sm:$0xff] %vm2443_vm0, %v2936_v48 }
 0x2d3   :  { %2542 = vst.msk [vmem:[%s6571_s2 + $0x310] sm:$0xff] %vm2443_vm0, %v2413_v40 }
 0x2d4   :  { %3187 = vst.msk [vmem:[%s6571_s2 + $0x710] sm:$0xff] %vm2443_vm0, %v2926_v47  ;;  %v1977_v32 = vpop.permute.xlu2 %1976 }
 0x2d5   :  { %2541 = vst.msk [vmem:[%s6571_s2 + $0x308] sm:$0xff] %vm2443_vm0, %v2412_v29  ;;  %v2170_v53 = vmul.f32 %v6162_v36, %v1977_v32  ;;  %v2683_v42 = vmul.f32 %v6167_v39, %v1977_v32  ;;  %v1927_v3 = vpop.permute.xlu1 %1926  ;;  %v1922_v4 = vpop.permute.xlu0 %1921  ;;  %v6812_v29 = vld [vmem:[#allocation81_spill] sm:$0xff] }
 0x2d6   :  { %3186 = vst.msk [vmem:[%s6571_s2 + $0x708] sm:$0xff] %vm2443_vm0, %v2925_v50  ;;  %v2160_v0 = vmul.f32 %v3317_v44, %v1927_v3  ;;  %v2673_v59 = vmul.f32 %v3318_v62, %v1927_v3  ;;  %v2159_v7 = vmul.f32 %v3317_v44, %v1922_v4  ;;  %v2672_v2 = vmul.f32 %v3318_v62, %v1922_v4  ;;  %v6264_v44 = vld [vmem:[%s6570_s0 + $0x3a] ss:$0 sm:$0xff]  ;;  %v6811_v62 = vld [vmem:[#allocation59_spill] sm:$0xff] }
 0x2d7   :  { %v2426_v43 = vadd.f32 %v2298_v28, %v2170_v53  ;;  %v2939_v24 = vsub.f32 %v2683_v42, %v2811_v23  ;;  %v2294_v22 = vmul.f32 %v3324_v55, %v6811_v62  ;;  %v2807_v40 = vmul.f32 %v3323_v54, %v6811_v62  ;;  %v6813_v3 = vld [vmem:[#allocation69_spill] sm:$0xff] }
 0x2d8   :  { %v2416_v30 = vadd.f32 %v2288_v46, %v2160_v0  ;;  %v2929_v52 = vsub.f32 %v2673_v59, %v2801_v63  ;;  %v2415_v9 = vadd.f32 %v2287_v15, %v2159_v7  ;;  %v2928_v14 = vsub.f32 %v2672_v2, %v2800_v8  ;;  %v6300_v15 = vld [vmem:[%s6570_s0 + $0x3c] ss:$0 sm:$0xff] }
 0x2d9   :  { %2555 = vst.msk [vmem:[%s6571_s2 + $0x378] sm:$0xff] %vm2443_vm0, %v2426_v43  ;;  %v2817_v10 = vmul.f32 %v6264_v44, %v6812_v29  ;;  %v2293_v4 = vmul.f32 %v3324_v55, %v6813_v3  ;;  %v2806_v7 = vmul.f32 %v3323_v54, %v6813_v3  ;;  %v6305_v43 = vld [vmem:[%s6570_s0 + $0x7c] ss:$0 sm:$0xff] }
 0x2da   :  { %3200 = vst.msk [vmem:[%s6571_s2 + $0x778] sm:$0xff] %vm2443_vm0, %v2939_v24 }
 0x2db   :  { %2545 = vst.msk [vmem:[%s6571_s2 + $0x328] sm:$0xff] %vm2443_vm0, %v2416_v30  ;;  %v6814_v30 = vld [vmem:[#allocation62_spill] sm:$0xff] }
 0x2dc   :  { %3190 = vst.msk [vmem:[%s6571_s2 + $0x728] sm:$0xff] %vm2443_vm0, %v2929_v52  ;;  %v1992_v49 = vpop.permute.xlu2 %1991  ;;  %v2297_v52 = vmul.f32 %v6167_v39, %v6814_v30 }
 0x2dd   :  { %2544 = vst.msk [vmem:[%s6571_s2 + $0x320] sm:$0xff] %vm2443_vm0, %v2415_v9  ;;  %v2173_v25 = vmul.f32 %v6198_v34, %v1992_v49  ;;  %v2686_v5 = vmul.f32 %v6203_v60, %v1992_v49  ;;  %v1942_v26 = vpop.permute.xlu1 %1941  ;;  %v1937_v18 = vpop.permute.xlu0 %1936  ;;  %v2810_v9 = vmul.f32 %v6162_v36, %v6814_v30  ;;  %v6821_v30 = vld [vmem:[#allocation87_spill] sm:$0xff] }
 0x2de   :  { %3189 = vst.msk [vmem:[%s6571_s2 + $0x720] sm:$0xff] %vm2443_vm0, %v2928_v14  ;;  %v2163_v13 = vmul.f32 %v6060_v17, %v1942_v26  ;;  %v2676_v37 = vmul.f32 %v6065_v51, %v1942_v26  ;;  %v2162_v61 = vmul.f32 %v5994_v58, %v1937_v18  ;;  %v2675_v38 = vmul.f32 %v5999_v19, %v1937_v18 }
 0x2df   :  { %v2429_v31 = vadd.f32 %v2301_v16, %v2173_v25  ;;  %v2942_v20 = vsub.f32 %v2686_v5, %v2814_v6  ;;  %v2803_v17 = vmul.f32 %v5994_v58, %v6810_v11  ;;  %v6269_v58 = vld [vmem:[%s6570_s0 + $0x7a] ss:$0 sm:$0xff]  ;;  %v3329_v11 = vld [vmem:[%s6570_s0 + $0x38] ss:$0 sm:$0xff] }
 0x2e0   :  { %v2419_v51 = vadd.f32 %v2291_v35, %v2163_v13  ;;  %v2932_v45 = vsub.f32 %v2676_v37, %v2804_v21  ;;  %v2418_v19 = vadd.f32 %v2290_v57, %v2162_v61  ;;  %v2304_v50 = vmul.f32 %v6269_v58, %v6812_v29  ;;  %v6816_v13 = vld [vmem:[#allocation72_spill] sm:$0xff]  ;;  %v3330_v57 = vld [vmem:[%s6570_s0 + $0x78] ss:$0 sm:$0xff] }
 0x2e1   :  { %2558 = vst.msk [vmem:[%s6571_s2 + $0x390] sm:$0xff] %vm2443_vm0, %v2429_v31  ;;  %v2931_v48 = vsub.f32 %v2675_v38, %v2803_v17  ;;  %v2307_v35 = vmul.f32 %v6305_v43, %v6815_v12  ;;  %v2820_v21 = vmul.f32 %v6300_v15, %v6815_v12  ;;  %v2296_v37 = vmul.f32 %v6101_v41, %v6816_v13 }
 0x2e2   :  { %3203 = vst.msk [vmem:[%s6571_s2 + $0x790] sm:$0xff] %vm2443_vm0, %v2942_v20 }
 0x2e3   :  { %2548 = vst.msk [vmem:[%s6571_s2 + $0x340] sm:$0xff] %vm2443_vm0, %v2419_v51 }
 0x2e4   :  { %3193 = vst.msk [vmem:[%s6571_s2 + $0x740] sm:$0xff] %vm2443_vm0, %v2932_v45  ;;  %v2007_v47 = vpop.permute.xlu2 %2006 }
 0x2e5   :  { %2547 = vst.msk [vmem:[%s6571_s2 + $0x338] sm:$0xff] %vm2443_vm0, %v2418_v19  ;;  %v2176_v46 = vmul.f32 %v6264_v44, %v2007_v47  ;;  %v2689_v63 = vmul.f32 %v6269_v58, %v2007_v47  ;;  %v1957_v32 = vpop.permute.xlu1 %1956  ;;  %v1952_v27 = vpop.permute.xlu0 %1951  ;;  %v6818_v19 = vld [vmem:[#allocation85_spill] sm:$0xff] }
 0x2e6   :  { %3192 = vst.msk [vmem:[%s6571_s2 + $0x738] sm:$0xff] %vm2443_vm0, %v2931_v48  ;;  %v2166_v28 = vmul.f32 %v3323_v54, %v1957_v32  ;;  %v2679_v23 = vmul.f32 %v3324_v55, %v1957_v32  ;;  %v2165_v53 = vmul.f32 %v3323_v54, %v1952_v27  ;;  %v2678_v42 = vmul.f32 %v3324_v55, %v1952_v27  ;;  %v6366_v54 = vld [vmem:[%s6570_s0 + $0x3d] ss:$0 sm:$0xff]  ;;  %v6819_v32 = vld [vmem:[#allocation75_spill] sm:$0xff] }
 0x2e7   :  { %v2432_v0 = vadd.f32 %v2304_v50, %v2176_v46  ;;  %v2945_v59 = vsub.f32 %v2689_v63, %v2817_v10  ;;  %v6817_v55 = vld [vmem:[#allocation65_spill] sm:$0xff]  ;;  %v2823_v62 = vmul.f32 %v6366_v54, %v6818_v19  ;;  %v2299_v27 = vmul.f32 %v3330_v57, %v6819_v32 }
 0x2e8   :  { %v2422_v2 = vadd.f32 %v2294_v22, %v2166_v28  ;;  %v2935_v56 = vsub.f32 %v2679_v23, %v2807_v40  ;;  %v2421_v24 = vadd.f32 %v2293_v4, %v2165_v53  ;;  %v2934_v8 = vsub.f32 %v2678_v42, %v2806_v7  ;;  %v6402_v4 = vld [vmem:[%s6570_s0 + $0x3f] ss:$0 sm:$0xff] }
 0x2e9   :  { %2561 = vst.msk [vmem:[%s6571_s2 + $0x3a8] sm:$0xff] %vm2443_vm0, %v2432_v0  ;;  %v2300_v17 = vmul.f32 %v3330_v57, %v6817_v55  ;;  %v2813_v51 = vmul.f32 %v3329_v11, %v6817_v55  ;;  %v2812_v53 = vmul.f32 %v3329_v11, %v6819_v32  ;;  %v6407_v0 = vld [vmem:[%s6570_s0 + $0x7f] ss:$0 sm:$0xff] }
 0x2ea   :  { %3206 = vst.msk [vmem:[%s6571_s2 + $0x7a8] sm:$0xff] %vm2443_vm0, %v2945_v59 }
 0x2eb   :  { %2551 = vst.msk [vmem:[%s6571_s2 + $0x358] sm:$0xff] %vm2443_vm0, %v2422_v2  ;;  %v6820_v2 = vld [vmem:[#allocation68_spill] sm:$0xff] }
 0x2ec   :  { %3196 = vst.msk [vmem:[%s6571_s2 + $0x758] sm:$0xff] %vm2443_vm0, %v2935_v56  ;;  %v2022_v14 = vpop.permute.xlu2 %2021  ;;  %v2303_v56 = vmul.f32 %v6269_v58, %v6820_v2 }
 0x2ed   :  { %2550 = vst.msk [vmem:[%s6571_s2 + $0x350] sm:$0xff] %vm2443_vm0, %v2421_v24  ;;  %v2179_v49 = vmul.f32 %v6300_v15, %v2022_v14  ;;  %v2692_v1 = vmul.f32 %v6305_v43, %v2022_v14  ;;  %v1972_v16 = vpop.permute.xlu1 %1971  ;;  %v1967_v6 = vpop.permute.xlu0 %1966  ;;  %v2816_v24 = vmul.f32 %v6264_v44, %v6820_v2 }
 0x2ee   :  { %3195 = vst.msk [vmem:[%s6571_s2 + $0x750] sm:$0xff] %vm2443_vm0, %v2934_v8  ;;  %v2169_v25 = vmul.f32 %v6162_v36, %v1972_v16  ;;  %v2682_v5 = vmul.f32 %v6167_v39, %v1972_v16  ;;  %v2168_v26 = vmul.f32 %v6096_v33, %v1967_v6  ;;  %v2681_v18 = vmul.f32 %v6101_v41, %v1967_v6 }
 0x2ef   :  { %v2435_v61 = vadd.f32 %v2307_v35, %v2179_v49  ;;  %v2948_v38 = vsub.f32 %v2692_v1, %v2820_v21  ;;  %v2809_v36 = vmul.f32 %v6096_v33, %v6816_v13  ;;  %v6371_v33 = vld [vmem:[%s6570_s0 + $0x7d] ss:$0 sm:$0xff] }
 0x2f0   :  { %v2425_v39 = vadd.f32 %v2297_v52, %v2169_v25  ;;  %v2938_v31 = vsub.f32 %v2682_v5, %v2810_v9  ;;  %v2424_v41 = vadd.f32 %v2296_v37, %v2168_v26  ;;  %v2310_v48 = vmul.f32 %v6371_v33, %v6818_v19  ;;  %v6822_v25 = vld [vmem:[#allocation78_spill] sm:$0xff] }
 0x2f1   :  { %2564 = vst.msk [vmem:[%s6571_s2 + $0x3c0] sm:$0xff] %vm2443_vm0, %v2435_v61  ;;  %v2937_v20 = vsub.f32 %v2681_v18, %v2809_v36  ;;  %v2313_v52 = vmul.f32 %v6407_v0, %v6821_v30  ;;  %v2826_v9 = vmul.f32 %v6402_v4, %v6821_v30  ;;  %v2302_v5 = vmul.f32 %v6203_v60, %v6822_v25  ;;  %v6824_v36 = vld [vmem:[#allocation80_spill] sm:$0xff] }
 0x2f2   :  { %3209 = vst.msk [vmem:[%s6571_s2 + $0x7c0] sm:$0xff] %vm2443_vm0, %v2948_v38  ;;  %v2815_v13 = vmul.f32 %v6198_v34, %v6822_v25  ;;  %v6823_v38 = vld [vmem:[#allocation71_spill] sm:$0xff]  ;;  %v6829_v25 = vld [vmem:[#allocation86_spill] sm:$0xff] }
 0x2f3   :  { %2554 = vst.msk [vmem:[%s6571_s2 + $0x370] sm:$0xff] %vm2443_vm0, %v2425_v39 }
 0x2f4   :  { %3199 = vst.msk [vmem:[%s6571_s2 + $0x770] sm:$0xff] %vm2443_vm0, %v2938_v31  ;;  %v2037_v45 = vpop.permute.xlu2 %2036 }
 0x2f5   :  { %2553 = vst.msk [vmem:[%s6571_s2 + $0x368] sm:$0xff] %vm2443_vm0, %v2424_v41  ;;  %v2182_v22 = vmul.f32 %v6366_v54, %v2037_v45  ;;  %v2695_v40 = vmul.f32 %v6371_v33, %v2037_v45  ;;  %v1987_v47 = vpop.permute.xlu1 %1986  ;;  %v1982_v29 = vpop.permute.xlu0 %1981 }
 0x2f6   :  { %3198 = vst.msk [vmem:[%s6571_s2 + $0x768] sm:$0xff] %vm2443_vm0, %v2937_v20  ;;  %v2172_v50 = vmul.f32 %v3329_v11, %v1987_v47  ;;  %v2685_v10 = vmul.f32 %v3330_v57, %v1987_v47  ;;  %v2171_v46 = vmul.f32 %v3329_v11, %v1982_v29  ;;  %v2684_v63 = vmul.f32 %v3330_v57, %v1982_v29 }
 0x2f7   :  { %v2438_v28 = vadd.f32 %v2310_v48, %v2182_v22  ;;  %v2951_v23 = vsub.f32 %v2695_v40, %v2823_v62  ;;  %v6825_v40 = vld [vmem:[#allocation74_spill] sm:$0xff] }
 0x2f8   :  { %v2428_v42 = vadd.f32 %v2300_v17, %v2172_v50  ;;  %v2941_v3 = vsub.f32 %v2685_v10, %v2813_v51  ;;  %v2427_v59 = vadd.f32 %v2299_v27, %v2171_v46  ;;  %v2940_v7 = vsub.f32 %v2684_v63, %v2812_v53  ;;  %v6826_v50 = vld [vmem:[#allocation82_spill] sm:$0xff] }
 0x2f9   :  { %2567 = vst.msk [vmem:[%s6571_s2 + $0x3d8] sm:$0xff] %vm2443_vm0, %v2438_v28  ;;  %v2309_v47 = vmul.f32 %v6371_v33, %v6825_v40  ;;  %v2822_v29 = vmul.f32 %v6366_v54, %v6825_v40  ;;  %v2308_v10 = vmul.f32 %v6305_v43, %v6826_v50  ;;  %v2821_v53 = vmul.f32 %v6300_v15, %v6826_v50 }
 0x2fa   :  { %3212 = vst.msk [vmem:[%s6571_s2 + $0x7d8] sm:$0xff] %vm2443_vm0, %v2951_v23 }
 0x2fb   :  { %2557 = vst.msk [vmem:[%s6571_s2 + $0x388] sm:$0xff] %vm2443_vm0, %v2428_v42 }
 0x2fc   :  { %3202 = vst.msk [vmem:[%s6571_s2 + $0x788] sm:$0xff] %vm2443_vm0, %v2941_v3  ;;  %v2052_v8 = vpop.permute.xlu2 %2051 }
 0x2fd   :  { %2556 = vst.msk [vmem:[%s6571_s2 + $0x380] sm:$0xff] %vm2443_vm0, %v2427_v59  ;;  %v2185_v14 = vmul.f32 %v6402_v4, %v2052_v8  ;;  %v2698_v12 = vmul.f32 %v6407_v0, %v2052_v8  ;;  %v2002_v35 = vpop.permute.xlu1 %2001  ;;  %v1997_v21 = vpop.permute.xlu0 %1996 }
 0x2fe   :  { %3201 = vst.msk [vmem:[%s6571_s2 + $0x780] sm:$0xff] %vm2443_vm0, %v2940_v7  ;;  %v2175_v49 = vmul.f32 %v6264_v44, %v2002_v35  ;;  %v2688_v1 = vmul.f32 %v6269_v58, %v2002_v35  ;;  %v2174_v16 = vmul.f32 %v6198_v34, %v1997_v21  ;;  %v2687_v6 = vmul.f32 %v6203_v60, %v1997_v21  ;;  %v3335_v44 = vld [vmem:[%s6570_s0 + $0x3b] ss:$0 sm:$0xff]  ;;  %v3341_v7 = vld [vmem:[%s6570_s0 + $0x3e] ss:$0 sm:$0xff] }
 0x2ff   :  { %v2441_v26 = vadd.f32 %v2313_v52, %v2185_v14  ;;  %v2954_v18 = vsub.f32 %v2698_v12, %v2826_v9  ;;  %v3336_v58 = vld [vmem:[%s6570_s0 + $0x7b] ss:$0 sm:$0xff]  ;;  %v2819_v57 = vmul.f32 %v3335_v44, %v6823_v38  ;;  %v2818_v45 = vmul.f32 %v3335_v44, %v6824_v36 }
 0x300   :  { %v2431_v37 = vadd.f32 %v2303_v56, %v2175_v49  ;;  %v2944_v61 = vsub.f32 %v2688_v1, %v2816_v24  ;;  %v2430_v60 = vadd.f32 %v2302_v5, %v2174_v16  ;;  %v2943_v34 = vsub.f32 %v2687_v6, %v2815_v13  ;;  %v6828_v56 = vld [vmem:[#allocation84_spill] sm:$0xff] }
 0x301   :  { %2570 = vst.msk [vmem:[%s6571_s2 + $0x3f0] sm:$0xff] %vm2443_vm0, %v2441_v26  ;;  %v2306_v11 = vmul.f32 %v3336_v58, %v6823_v38  ;;  %v2305_v39 = vmul.f32 %v3336_v58, %v6824_v36  ;;  %v2824_v35 = vmul.f32 %v3341_v7, %v6828_v56  ;;  %v2314_v5 = vmul.f32 %v6407_v0, %v6829_v25 }
 0x302   :  { %3215 = vst.msk [vmem:[%s6571_s2 + $0x7f0] sm:$0xff] %vm2443_vm0, %v2954_v18  ;;  %v2827_v26 = vmul.f32 %v6402_v4, %v6829_v25 }
 0x303   :  { %2560 = vst.msk [vmem:[%s6571_s2 + $0x3a0] sm:$0xff] %vm2443_vm0, %v2431_v37 }
 0x304   :  { %3205 = vst.msk [vmem:[%s6571_s2 + $0x7a0] sm:$0xff] %vm2443_vm0, %v2944_v61 }
 0x305   :  { %2559 = vst.msk [vmem:[%s6571_s2 + $0x398] sm:$0xff] %vm2443_vm0, %v2430_v60  ;;  %v2017_v31 = vpop.permute.xlu1 %2016  ;;  %v2012_v41 = vpop.permute.xlu0 %2011 }
 0x306   :  { %3204 = vst.msk [vmem:[%s6571_s2 + $0x798] sm:$0xff] %vm2443_vm0, %v2943_v34  ;;  %v2178_v20 = vmul.f32 %v3335_v44, %v2017_v31  ;;  %v2691_v55 = vmul.f32 %v3336_v58, %v2017_v31  ;;  %v2177_v17 = vmul.f32 %v3335_v44, %v2012_v41  ;;  %v2690_v51 = vmul.f32 %v3336_v58, %v2012_v41 }
 0x308   :  { %v2434_v19 = vadd.f32 %v2306_v11, %v2178_v20  ;;  %v2947_v48 = vsub.f32 %v2691_v55, %v2819_v57  ;;  %v2433_v62 = vadd.f32 %v2305_v39, %v2177_v17  ;;  %v2946_v22 = vsub.f32 %v2690_v51, %v2818_v45 }
 0x30a   :  { %2563 = vst.msk [vmem:[%s6571_s2 + $0x3b8] sm:$0xff] %vm2443_vm0, %v2434_v19 }
 0x30b   :  { %3208 = vst.msk [vmem:[%s6571_s2 + $0x7b8] sm:$0xff] %vm2443_vm0, %v2947_v48 }
 0x30c   :  { %2562 = vst.msk [vmem:[%s6571_s2 + $0x3b0] sm:$0xff] %vm2443_vm0, %v2433_v62 }
 0x30d   :  { %3207 = vst.msk [vmem:[%s6571_s2 + $0x7b0] sm:$0xff] %vm2443_vm0, %v2946_v22  ;;  %v2032_v46 = vpop.permute.xlu1 %2031  ;;  %v2027_v63 = vpop.permute.xlu0 %2026 }
 0x30e   :  { %v2181_v32 = vmul.f32 %v6366_v54, %v2032_v46  ;;  %v2694_v27 = vmul.f32 %v6371_v33, %v2032_v46  ;;  %v2180_v28 = vmul.f32 %v6300_v15, %v2027_v63  ;;  %v2693_v23 = vmul.f32 %v6305_v43, %v2027_v63  ;;  %v3342_v54 = vld [vmem:[%s6570_s0 + $0x7e] ss:$0 sm:$0xff] }
 0x30f   :  { %v6827_v15 = vld [vmem:[#allocation77_spill] sm:$0xff]  ;;  %v2311_v24 = vmul.f32 %v3342_v54, %v6828_v56 }
 0x310   :  { %v2437_v42 = vadd.f32 %v2309_v47, %v2181_v32  ;;  %v2950_v3 = vsub.f32 %v2694_v27, %v2822_v29  ;;  %v2436_v59 = vadd.f32 %v2308_v10, %v2180_v28  ;;  %v2949_v2 = vsub.f32 %v2693_v23, %v2821_v53 }
 0x311   :  { %v2312_v43 = vmul.f32 %v3342_v54, %v6827_v15  ;;  %v2825_v33 = vmul.f32 %v3341_v7, %v6827_v15 }
 0x312   :  { %2566 = vst.msk [vmem:[%s6571_s2 + $0x3d0] sm:$0xff] %vm2443_vm0, %v2437_v42 }
 0x313   :  { %3211 = vst.msk [vmem:[%s6571_s2 + $0x7d0] sm:$0xff] %vm2443_vm0, %v2950_v3 }
 0x314   :  { %2565 = vst.msk [vmem:[%s6571_s2 + $0x3c8] sm:$0xff] %vm2443_vm0, %v2436_v59 }
 0x315   :  { %3210 = vst.msk [vmem:[%s6571_s2 + $0x7c8] sm:$0xff] %vm2443_vm0, %v2949_v2  ;;  %v2047_v8 = vpop.permute.xlu1 %2046  ;;  %v2042_v30 = vpop.permute.xlu0 %2041 }
 0x316   :  { %v2184_v52 = vmul.f32 %v3341_v7, %v2047_v8  ;;  %v2697_v9 = vmul.f32 %v3342_v54, %v2047_v8  ;;  %v2183_v14 = vmul.f32 %v3341_v7, %v2042_v30  ;;  %v2696_v12 = vmul.f32 %v3342_v54, %v2042_v30 }
 0x318   :  { %v2440_v21 = vadd.f32 %v2312_v43, %v2184_v52  ;;  %v2953_v49 = vsub.f32 %v2697_v9, %v2825_v33  ;;  %v2439_v1 = vadd.f32 %v2311_v24, %v2183_v14  ;;  %v2952_v16 = vsub.f32 %v2696_v12, %v2824_v35 }
 0x31a   :  { %2569 = vst.msk [vmem:[%s6571_s2 + $0x3e8] sm:$0xff] %vm2443_vm0, %v2440_v21 }
 0x31b   :  { %3214 = vst.msk [vmem:[%s6571_s2 + $0x7e8] sm:$0xff] %vm2443_vm0, %v2953_v49 }
 0x31c   :  { %2568 = vst.msk [vmem:[%s6571_s2 + $0x3e0] sm:$0xff] %vm2443_vm0, %v2439_v1 }
 0x31d   :  { %3213 = vst.msk [vmem:[%s6571_s2 + $0x7e0] sm:$0xff] %vm2443_vm0, %v2952_v16  ;;  %v2057_v6 = vpop.permute.xlu0 %2056 }
 0x31e   :  { %v2186_v18 = vmul.f32 %v6402_v4, %v2057_v6  ;;  %v2699_v13 = vmul.f32 %v6407_v0, %v2057_v6 }
 0x320   :  { %v2442_v37 = vadd.f32 %v2314_v5, %v2186_v18  ;;  %v2955_v61 = vsub.f32 %v2699_v13, %v2827_v26 }
 0x322   :  { %2571 = vst.msk [vmem:[%s6571_s2 + $0x3f8] sm:$0xff] %vm2443_vm0, %v2442_v37 }
 0x323   :  { %3216 = vst.msk [vmem:[%s6571_s2 + $0x7f8] sm:$0xff] %vm2443_vm0, %v2955_v61 }

</bundles_post_ra>
